<compile_context>
chip_gen: v6e
topology: v6e:2x2x1
jax: 0.10.0
libtpu: 0.0.40
codegen_flags: <defaults>
</compile_context>

<pallas_src>
import functools

import jax
import jax.numpy as jnp
from jax import lax
from jax.experimental import pallas as pl
from jax.experimental.pallas import tpu as pltpu


# ---------------------------------------------------------------------------
# Fused forward kernel (one batch tile per grid step)
# ---------------------------------------------------------------------------
def _net2_kernel(xs_ref, w1_ref, b1_ref, w2_ref, b2_ref,
                 wf1_ref, bf1_ref, wf2_ref, bf2_ref, wf3_ref, bf3_ref,
                 out_ref, a1_ref, pp_ref, a2_ref):
    f32 = jnp.float32
    tb = xs_ref.shape[0]          # batch tile
    m1 = tb * 16 * 16             # conv1 output pixels in this tile
    m2 = tb * 4 * 4               # conv2 output pixels in this tile

    # ---- conv1 (3->6, k=4, s=2, p=1) + ReLU --------------------------------
    # xs is the padded input in space-to-depth form xs[b, h2, w2, (ri,rj,cin)],
    # so the 4 remaining taps are contiguous slices; they are folded into the
    # contraction dim (im2col, K=48) and issued as ONE batched MXU matmul.
    cols1 = jnp.concatenate(
        [xs_ref[:, a:a + 16, b:b + 16, :].reshape(m1, 12)
         for a in range(2) for b in range(2)],
        axis=-1)                                                  # (M1, 48)
    a1 = jnp.dot(cols1, w1_ref[...], preferred_element_type=f32) + b1_ref[...]
    a1_ref[...] = jnp.maximum(a1, 0.0).reshape(tb, 16, 16, 6)

    # ---- maxpool 2x2 -> (TB, 8, 8, 6): 4 batched reads + VPU maxes ---------
    p1 = jnp.maximum(
        jnp.maximum(
            a1_ref[:, pl.ds(0, 8, stride=2), pl.ds(0, 8, stride=2), :],
            a1_ref[:, pl.ds(0, 8, stride=2), pl.ds(1, 8, stride=2), :]),
        jnp.maximum(
            a1_ref[:, pl.ds(1, 8, stride=2), pl.ds(0, 8, stride=2), :],
            a1_ref[:, pl.ds(1, 8, stride=2), pl.ds(1, 8, stride=2), :]))

    # ---- padded conv2 input: zero ONLY the halo, then one payload store ----
    # pp[b, r, c, :] == zero-padded pool1 at padded (r, c), r, c in 0..9
    # (columns 10..15 of the 16-wide scratch are never read).
    pp_ref[:, 0, :, :] = jnp.zeros((tb, 16, 6), f32)
    pp_ref[:, 9, :, :] = jnp.zeros((tb, 16, 6), f32)
    pp_ref[:, :, 0, :] = jnp.zeros((tb, 10, 6), f32)
    pp_ref[:, :, 9, :] = jnp.zeros((tb, 10, 6), f32)
    pp_ref[:, 1:9, 1:9, :] = p1

    # ---- conv2 (6->16, k=4, s=2, p=1) + ReLU: im2col K=96, ONE matmul ------
    cols2 = jnp.concatenate(
        [pp_ref[:, pl.ds(kh, 4, stride=2), pl.ds(kw, 4, stride=2), :]
         .reshape(m2, 6)
         for kh in range(4) for kw in range(4)],
        axis=-1)                                                  # (M2, 96)
    a2 = jnp.dot(cols2, w2_ref[...], preferred_element_type=f32) + b2_ref[...]
    a2_ref[...] = jnp.maximum(a2, 0.0).reshape(tb, 4, 4, 16)

    # ---- maxpool 2x2 + flatten ---------------------------------------------
    # fc1 weights were pre-permuted to PyTorch's NCHW x.view(-1, 64) order, so
    # the kernel flattens position-major / channel-minor (NHWC).
    pooled = []
    for i in range(2):
        for j in range(2):
            pooled.append(jnp.maximum(
                jnp.maximum(a2_ref[:, 2 * i, 2 * j, :],
                            a2_ref[:, 2 * i, 2 * j + 1, :]),
                jnp.maximum(a2_ref[:, 2 * i + 1, 2 * j, :],
                            a2_ref[:, 2 * i + 1, 2 * j + 1, :])))
    flat = jnp.concatenate(pooled, axis=-1)                       # (TB, 64)

    # ---- FC chain: three batched matmuls, one store of all logits ----------
    h1 = jnp.maximum(
        jnp.dot(flat, wf1_ref[...], preferred_element_type=f32) + bf1_ref[...],
        0.0)                                                      # (TB, 128)
    h2 = jnp.maximum(
        jnp.dot(h1, wf2_ref[...], preferred_element_type=f32) + bf2_ref[...],
        0.0)                                                      # (TB, 128)
    out_ref[...] = (jnp.dot(h2, wf3_ref[...], preferred_element_type=f32)
                    + bf3_ref[...])                               # (TB, 10)


# ---------------------------------------------------------------------------
# Wrapper: batch-tiled pallas_call + one-time input space-to-depth repack
# ---------------------------------------------------------------------------
@functools.partial(jax.jit, static_argnames=("batch_tile",))
def net2_forward(kparams, x_nchw, batch_tile=None):
    """Net2 forward pass.  x_nchw: (B, 3, 32, 32) float32 -> (B, 10) logits."""
    batch = x_nchw.shape[0]
    if batch_tile is None:
        batch_tile = batch if batch <= 128 else 128
    if batch % batch_tile != 0:
        raise ValueError("batch must be divisible by batch_tile")
    tb = batch_tile
    grid = (batch // tb,)

    # One-time fused XLA prep: NCHW -> padded NHWC -> space-to-depth (fold the
    # stride-2 parity into channels) so every conv1 tap is a contiguous slice.
    xp = jnp.pad(jnp.transpose(x_nchw, (0, 2, 3, 1)),
                 ((0, 0), (1, 1), (1, 1), (0, 0)))                # (B,34,34,3)
    xs = xp.reshape(batch, 17, 2, 17, 2, 3).transpose(
        0, 1, 3, 2, 4, 5).reshape(batch, 17, 17, 12)              # (B,17,17,12)

    weights = (kparams["w1p"], kparams["b1"], kparams["w2p"], kparams["b2"],
               kparams["wf1"], kparams["bf1"], kparams["wf2"], kparams["bf2"],
               kparams["wf3"], kparams["bf3"])

    grid_spec = pltpu.PrefetchScalarGridSpec(
        num_scalar_prefetch=0,
        grid=grid,
        in_specs=[pl.BlockSpec((tb, 17, 17, 12), lambda i: (i, 0, 0, 0))]
                 + [pl.BlockSpec(w.shape, lambda i: (0, 0)) for w in weights],
        out_specs=pl.BlockSpec((tb, 10), lambda i: (i, 0)),
        scratch_shapes=[
            pltpu.VMEM((tb, 16, 16, 6), jnp.float32),   # conv1+ReLU output
            pltpu.VMEM((tb, 10, 16, 6), jnp.float32),   # zero-padded pool1
            pltpu.VMEM((tb, 4, 4, 16), jnp.float32),    # conv2+ReLU output
        ])

    return pl.pallas_call(
        _net2_kernel,
        out_shape=jax.ShapeDtypeStruct((batch, 10), jnp.float32),
        grid_spec=grid_spec,
        compiler_params=pltpu.CompilerParams(
            dimension_semantics=("parallel",),
            vmem_limit_bytes=64 * 1024 * 1024),
    )(xs, *weights)


# ---------------------------------------------------------------------------
# Parameters: PyTorch-layout init + one-time repack into kernel layouts
# ---------------------------------------------------------------------------
def init_params(key):
    def uinit(k, fan_in, shape):
        bound = 1.0 / float(fan_in) ** 0.5
        return jax.random.uniform(k, shape, jnp.float32, -bound, bound)

    ks = jax.random.split(key, 10)
    return {
        "conv1_w": uinit(ks[0], 3 * 4 * 4, (6, 3, 4, 4)),
        "conv1_b": uinit(ks[1], 3 * 4 * 4, (6,)),
        "conv2_w": uinit(ks[2], 6 * 4 * 4, (16, 6, 4, 4)),
        "conv2_b": uinit(ks[3], 6 * 4 * 4, (16,)),
        "fc1_w": uinit(ks[4], 64, (120, 64)),
        "fc1_b": uinit(ks[5], 64, (120,)),
        "fc2_w": uinit(ks[6], 120, (84, 120)),
        "fc2_b": uinit(ks[7], 120, (84,)),
        "fc3_w": uinit(ks[8], 84, (10, 84)),
        "fc3_b": uinit(ks[9], 84, (10,)),
    }


def prepare_params(p):
    """One-time repack of PyTorch-layout weights into kernel im2col layouts."""
    # conv1: (cout,cin,kh,kw), kh=(a,ri), kw=(b,rj) -> lane (a,b,ri,rj,cin).
    w1 = p["conv1_w"].reshape(6, 3, 2, 2, 2, 2)          # (cout,cin,a,ri,b,rj)
    w1p = jnp.transpose(w1, (2, 4, 3, 5, 1, 0)).reshape(48, 6)
    # conv2: lane order (kh, kw, cin) matching the in-kernel tap concat.
    w2p = jnp.transpose(p["conv2_w"], (2, 3, 1, 0)).reshape(96, 16)
    # fc1: reorder rows from torch's NCHW flatten (c*4 + i*2 + j) into the
    # kernel's NHWC flatten ((i*2+j)*16 + c); pad 120 -> 128 output lanes.
    wf1 = jnp.transpose(p["fc1_w"].reshape(120, 16, 2, 2),
                        (2, 3, 1, 0)).reshape(64, 120)
    wf1 = jnp.pad(wf1, ((0, 0), (0, 8)))                               # (64,128)
    bf1 = jnp.pad(p["fc1_b"], (0, 8)).reshape(1, 128)
    wf2 = jnp.pad(jnp.transpose(p["fc2_w"]), ((0, 8), (0, 44)))        # (128,128)
    bf2 = jnp.pad(p["fc2_b"], (0, 44)).reshape(1, 128)
    wf3 = jnp.pad(jnp.transpose(p["fc3_w"]), ((0, 44), (0, 0)))        # (128,10)
    bf3 = p["fc3_b"].reshape(1, 10)
    return {
        "w1p": w1p, "b1": p["conv1_b"].reshape(1, 6),
        "w2p": w2p, "b2": p["conv2_b"].reshape(1, 16),
        "wf1": wf1, "bf1": bf1, "wf2": wf2, "bf2": bf2,
        "wf3": wf3, "bf3": bf3,
    }


# ---------------------------------------------------------------------------
# Pure-JAX reference (mirrors the PyTorch module) for a numeric sanity check
# ---------------------------------------------------------------------------
def net2_reference(p, x):
    dn = ("NCHW", "OIHW", "NCHW")
    a = lax.conv_general_dilated(x, p["conv1_w"], (2, 2), ((1, 1), (1, 1)),
                                 dimension_numbers=dn)
    a = jax.nn.relu(a + p["conv1_b"][None, :, None, None])
    a = lax.reduce_window(a, -jnp.inf, lax.max, (1, 1, 2, 2), (1, 1, 2, 2),
                          "VALID")
    b = lax.conv_general_dilated(a, p["conv2_w"], (2, 2), ((1, 1), (1, 1)),
                                 dimension_numbers=dn)
    b = jax.nn.relu(b + p["conv2_b"][None, :, None, None])
    b = lax.reduce_window(b, -jnp.inf, lax.max, (1, 1, 2, 2), (1, 1, 2, 2),
                          "VALID")
    f = b.reshape(b.shape[0], -1)                       # torch x.view(-1, 64)
    h = jax.nn.relu(f @ p["fc1_w"].T + p["fc1_b"])
    h = jax.nn.relu(h @ p["fc2_w"].T + p["fc2_b"])
    return h @ p["fc3_w"].T + p["fc3_b"]


if __name__ == "__main__":
    key = jax.random.PRNGKey(0)
    pkey, xkey = jax.random.split(key)
    params = init_params(pkey)
    kparams = prepare_params(params)          # one-time weight repack
    # Net2 architecturally requires 32x32 inputs (16*2*2 flatten); batch = 2.
    x = jax.random.normal(xkey, (2, 3, 32, 32), jnp.float32)

    out = jax.block_until_ready(net2_forward(kparams, x))
    assert out.shape == (2, 10), out.shape

    ref = jax.block_until_ready(net2_reference(params, x))
    if not jnp.allclose(out, ref, rtol=5e-2, atol=5e-2):
        raise AssertionError(
            f"kernel/reference mismatch, max abs err = {jnp.max(jnp.abs(out - ref))}")
    print("KERNEL_OK")
</pallas_src>

<mosaic_0001>
module attributes {stable_mosaic.version = 11 : i64} {
  func.func @_net2_kernel(%arg0: i32, %arg1: memref<2x17x17x12xf32, #tpu.memory_space<vmem>>, %arg2: memref<48x6xf32, #tpu.memory_space<vmem>>, %arg3: memref<1x6xf32, #tpu.memory_space<vmem>>, %arg4: memref<96x16xf32, #tpu.memory_space<vmem>>, %arg5: memref<1x16xf32, #tpu.memory_space<vmem>>, %arg6: memref<64x128xf32, #tpu.memory_space<vmem>>, %arg7: memref<1x128xf32, #tpu.memory_space<vmem>>, %arg8: memref<128x128xf32, #tpu.memory_space<vmem>>, %arg9: memref<1x128xf32, #tpu.memory_space<vmem>>, %arg10: memref<128x10xf32, #tpu.memory_space<vmem>>, %arg11: memref<1x10xf32, #tpu.memory_space<vmem>>, %arg12: memref<2x10xf32, #tpu.memory_space<vmem>>, %arg13: memref<2x16x16x6xf32, #tpu.memory_space<vmem>>, %arg14: memref<2x10x16x6xf32, #tpu.memory_space<vmem>>, %arg15: memref<2x4x4x16xf32, #tpu.memory_space<vmem>>) attributes {dimension_semantics = [#tpu.dimension_semantics<parallel>], iteration_bounds = array<i64: 1>, scalar_prefetch = 0 : i64, scratch_operands = 3 : i64, tpu.core_type = #tpu.core_type<tc>, window_params = [{transform_indices = @transform_0, window_bounds = array<i64: 2, 17, 17, 12>}, {pipeline_mode = #tpu.pipeline_mode<synchronous>, transform_indices = @transform_1, window_bounds = array<i64: 48, 6>}, {pipeline_mode = #tpu.pipeline_mode<synchronous>, transform_indices = @transform_2, window_bounds = array<i64: 1, 6>}, {pipeline_mode = #tpu.pipeline_mode<synchronous>, transform_indices = @transform_3, window_bounds = array<i64: 96, 16>}, {pipeline_mode = #tpu.pipeline_mode<synchronous>, transform_indices = @transform_4, window_bounds = array<i64: 1, 16>}, {pipeline_mode = #tpu.pipeline_mode<synchronous>, transform_indices = @transform_5, window_bounds = array<i64: 64, 128>}, {pipeline_mode = #tpu.pipeline_mode<synchronous>, transform_indices = @transform_6, window_bounds = array<i64: 1, 128>}, {pipeline_mode = #tpu.pipeline_mode<synchronous>, transform_indices = @transform_7, window_bounds = array<i64: 128, 128>}, {pipeline_mode = #tpu.pipeline_mode<synchronous>, transform_indices = @transform_8, window_bounds = array<i64: 1, 128>}, {pipeline_mode = #tpu.pipeline_mode<synchronous>, transform_indices = @transform_9, window_bounds = array<i64: 128, 10>}, {pipeline_mode = #tpu.pipeline_mode<synchronous>, transform_indices = @transform_10, window_bounds = array<i64: 1, 10>}, {transform_indices = @transform_11, window_bounds = array<i64: 2, 10>}]} {
    %c0 = arith.constant 0 : index
    %c0_0 = arith.constant 0 : index
    %c0_1 = arith.constant 0 : index
    %c0_2 = arith.constant 0 : index
    %0 = vector.load %arg1[%c0, %c0_0, %c0_1, %c0_2] : memref<2x17x17x12xf32, #tpu.memory_space<vmem>>, vector<2x16x16x12xf32>
    %1 = vector.shape_cast %0 : vector<2x16x16x12xf32> to vector<512x12xf32>
    %c0_3 = arith.constant 0 : index
    %c0_4 = arith.constant 0 : index
    %c1 = arith.constant 1 : index
    %c0_5 = arith.constant 0 : index
    %2 = vector.load %arg1[%c0_3, %c0_4, %c1, %c0_5] : memref<2x17x17x12xf32, #tpu.memory_space<vmem>>, vector<2x16x16x12xf32>
    %3 = vector.shape_cast %2 : vector<2x16x16x12xf32> to vector<512x12xf32>
    %c0_6 = arith.constant 0 : index
    %c1_7 = arith.constant 1 : index
    %c0_8 = arith.constant 0 : index
    %c0_9 = arith.constant 0 : index
    %4 = vector.load %arg1[%c0_6, %c1_7, %c0_8, %c0_9] : memref<2x17x17x12xf32, #tpu.memory_space<vmem>>, vector<2x16x16x12xf32>
    %5 = vector.shape_cast %4 : vector<2x16x16x12xf32> to vector<512x12xf32>
    %c0_10 = arith.constant 0 : index
    %c1_11 = arith.constant 1 : index
    %c1_12 = arith.constant 1 : index
    %c0_13 = arith.constant 0 : index
    %6 = vector.load %arg1[%c0_10, %c1_11, %c1_12, %c0_13] : memref<2x17x17x12xf32, #tpu.memory_space<vmem>>, vector<2x16x16x12xf32>
    %7 = vector.shape_cast %6 : vector<2x16x16x12xf32> to vector<512x12xf32>
    %8 = tpu.concatenate %1, %3, %5, %7 in 1 : vector<512x12xf32>, vector<512x12xf32>, vector<512x12xf32>, vector<512x12xf32> -> vector<512x48xf32>
    %c0_14 = arith.constant 0 : index
    %c0_15 = arith.constant 0 : index
    %9 = vector.load %arg2[%c0_14, %c0_15] : memref<48x6xf32, #tpu.memory_space<vmem>>, vector<48x6xf32>
    %cst = arith.constant dense<0.000000e+00> : vector<512x6xf32>
    %10 = tpu.matmul %8, %9, %cst {dimension_numbers = #tpu.dot_dimension_numbers<[1], [0], [0], [1], [0, 0, 1, 1], [], []>} : vector<512x48xf32>, vector<48x6xf32>, vector<512x6xf32> -> vector<512x6xf32>
    %c0_16 = arith.constant 0 : index
    %c0_17 = arith.constant 0 : index
    %11 = vector.load %arg3[%c0_16, %c0_17] : memref<1x6xf32, #tpu.memory_space<vmem>>, vector<1x6xf32>
    %12 = vector.broadcast %11 : vector<1x6xf32> to vector<512x6xf32>
    %13 = arith.addf %10, %12 : vector<512x6xf32>
    %cst_18 = arith.constant 0.000000e+00 : f32
    %14 = vector.broadcast %cst_18 : f32 to vector<512x6xf32>
    %15 = arith.maximumf %13, %14 : vector<512x6xf32>
    %16 = vector.shape_cast %15 : vector<512x6xf32> to vector<2x16x16x6xf32>
    %c0_19 = arith.constant 0 : index
    %c0_20 = arith.constant 0 : index
    %c0_21 = arith.constant 0 : index
    %c0_22 = arith.constant 0 : index
    %17 = vector.load %arg13[%c0_19, %c0_20, %c0_21, %c0_22] : memref<2x16x16x6xf32, #tpu.memory_space<vmem>>, vector<2x16x16x6xf32>
    tpu.vector_store %arg13[%c0_19, %c0_20, %c0_21, %c0_22], %16 {strides = array<i32>} : memref<2x16x16x6xf32, #tpu.memory_space<vmem>>, vector<2x16x16x6xf32>,
    %c0_23 = arith.constant 0 : index
    %c0_24 = arith.constant 0 : index
    %c0_25 = arith.constant 0 : index
    %c0_26 = arith.constant 0 : index
    %18 = tpu.strided_load %arg13[%c0_23, %c0_24, %c0_25, %c0_26] {strides = array<i32: 1, 2, 2, 1>} : memref<2x16x16x6xf32, #tpu.memory_space<vmem>>, vector<2x8x8x6xf32>
    %c0_27 = arith.constant 0 : index
    %c0_28 = arith.constant 0 : index
    %c1_29 = arith.constant 1 : index
    %c0_30 = arith.constant 0 : index
    %19 = tpu.strided_load %arg13[%c0_27, %c0_28, %c1_29, %c0_30] {strides = array<i32: 1, 2, 2, 1>} : memref<2x16x16x6xf32, #tpu.memory_space<vmem>>, vector<2x8x8x6xf32>
    %20 = arith.maximumf %18, %19 : vector<2x8x8x6xf32>
    %c0_31 = arith.constant 0 : index
    %c1_32 = arith.constant 1 : index
    %c0_33 = arith.constant 0 : index
    %c0_34 = arith.constant 0 : index
    %21 = tpu.strided_load %arg13[%c0_31, %c1_32, %c0_33, %c0_34] {strides = array<i32: 1, 2, 2, 1>} : memref<2x16x16x6xf32, #tpu.memory_space<vmem>>, vector<2x8x8x6xf32>
    %c0_35 = arith.constant 0 : index
    %c1_36 = arith.constant 1 : index
    %c1_37 = arith.constant 1 : index
    %c0_38 = arith.constant 0 : index
    %22 = tpu.strided_load %arg13[%c0_35, %c1_36, %c1_37, %c0_38] {strides = array<i32: 1, 2, 2, 1>} : memref<2x16x16x6xf32, #tpu.memory_space<vmem>>, vector<2x8x8x6xf32>
    %23 = arith.maximumf %21, %22 : vector<2x8x8x6xf32>
    %24 = arith.maximumf %20, %23 : vector<2x8x8x6xf32>
    %cst_39 = arith.constant 0.000000e+00 : f32
    %25 = vector.broadcast %cst_39 : f32 to vector<2x16x6xf32>
    %c0_40 = arith.constant 0 : index
    %c0_41 = arith.constant 0 : index
    %c0_42 = arith.constant 0 : index
    %c0_43 = arith.constant 0 : index
    %26 = vector.load %arg14[%c0_40, %c0_41, %c0_42, %c0_43] : memref<2x10x16x6xf32, #tpu.memory_space<vmem>>, vector<2x1x16x6xf32>
    %27 = vector.shape_cast %26 : vector<2x1x16x6xf32> to vector<2x16x6xf32>
    %28 = vector.shape_cast %25 : vector<2x16x6xf32> to vector<2x1x16x6xf32>
    tpu.vector_store %arg14[%c0_40, %c0_41, %c0_42, %c0_43], %28 {strides = array<i32>} : memref<2x10x16x6xf32, #tpu.memory_space<vmem>>, vector<2x1x16x6xf32>,
    %cst_44 = arith.constant 0.000000e+00 : f32
    %29 = vector.broadcast %cst_44 : f32 to vector<2x16x6xf32>
    %c0_45 = arith.constant 0 : index
    %c9 = arith.constant 9 : index
    %c0_46 = arith.constant 0 : index
    %c0_47 = arith.constant 0 : index
    %30 = vector.load %arg14[%c0_45, %c9, %c0_46, %c0_47] : memref<2x10x16x6xf32, #tpu.memory_space<vmem>>, vector<2x1x16x6xf32>
    %31 = vector.shape_cast %30 : vector<2x1x16x6xf32> to vector<2x16x6xf32>
    %32 = vector.shape_cast %29 : vector<2x16x6xf32> to vector<2x1x16x6xf32>
    tpu.vector_store %arg14[%c0_45, %c9, %c0_46, %c0_47], %32 {strides = array<i32>} : memref<2x10x16x6xf32, #tpu.memory_space<vmem>>, vector<2x1x16x6xf32>,
    %cst_48 = arith.constant 0.000000e+00 : f32
    %33 = vector.broadcast %cst_48 : f32 to vector<2x10x6xf32>
    %c0_49 = arith.constant 0 : index
    %c0_50 = arith.constant 0 : index
    %c0_51 = arith.constant 0 : index
    %c0_52 = arith.constant 0 : index
    %34 = vector.load %arg14[%c0_49, %c0_50, %c0_51, %c0_52] : memref<2x10x16x6xf32, #tpu.memory_space<vmem>>, vector<2x10x1x6xf32>
    %35 = vector.shape_cast %34 : vector<2x10x1x6xf32> to vector<2x10x6xf32>
    %36 = vector.shape_cast %33 : vector<2x10x6xf32> to vector<2x10x1x6xf32>
    tpu.vector_store %arg14[%c0_49, %c0_50, %c0_51, %c0_52], %36 {strides = array<i32>} : memref<2x10x16x6xf32, #tpu.memory_space<vmem>>, vector<2x10x1x6xf32>,
    %cst_53 = arith.constant 0.000000e+00 : f32
    %37 = vector.broadcast %cst_53 : f32 to vector<2x10x6xf32>
    %c0_54 = arith.constant 0 : index
    %c0_55 = arith.constant 0 : index
    %c9_56 = arith.constant 9 : index
    %c0_57 = arith.constant 0 : index
    %38 = vector.load %arg14[%c0_54, %c0_55, %c9_56, %c0_57] : memref<2x10x16x6xf32, #tpu.memory_space<vmem>>, vector<2x10x1x6xf32>
    %39 = vector.shape_cast %38 : vector<2x10x1x6xf32> to vector<2x10x6xf32>
    %40 = vector.shape_cast %37 : vector<2x10x6xf32> to vector<2x10x1x6xf32>
    tpu.vector_store %arg14[%c0_54, %c0_55, %c9_56, %c0_57], %40 {strides = array<i32>} : memref<2x10x16x6xf32, #tpu.memory_space<vmem>>, vector<2x10x1x6xf32>,
    %c0_58 = arith.constant 0 : index
    %c1_59 = arith.constant 1 : index
    %c1_60 = arith.constant 1 : index
    %c0_61 = arith.constant 0 : index
    %41 = vector.load %arg14[%c0_58, %c1_59, %c1_60, %c0_61] : memref<2x10x16x6xf32, #tpu.memory_space<vmem>>, vector<2x8x8x6xf32>
    tpu.vector_store %arg14[%c0_58, %c1_59, %c1_60, %c0_61], %24 {strides = array<i32>} : memref<2x10x16x6xf32, #tpu.memory_space<vmem>>, vector<2x8x8x6xf32>,
    %c0_62 = arith.constant 0 : index
    %c0_63 = arith.constant 0 : index
    %c0_64 = arith.constant 0 : index
    %c0_65 = arith.constant 0 : index
    %42 = tpu.strided_load %arg14[%c0_62, %c0_63, %c0_64, %c0_65] {strides = array<i32: 1, 2, 2, 1>} : memref<2x10x16x6xf32, #tpu.memory_space<vmem>>, vector<2x4x4x6xf32>
    %43 = vector.shape_cast %42 : vector<2x4x4x6xf32> to vector<32x6xf32>
    %c0_66 = arith.constant 0 : index
    %c0_67 = arith.constant 0 : index
    %c1_68 = arith.constant 1 : index
    %c0_69 = arith.constant 0 : index
    %44 = tpu.strided_load %arg14[%c0_66, %c0_67, %c1_68, %c0_69] {strides = array<i32: 1, 2, 2, 1>} : memref<2x10x16x6xf32, #tpu.memory_space<vmem>>, vector<2x4x4x6xf32>
    %45 = vector.shape_cast %44 : vector<2x4x4x6xf32> to vector<32x6xf32>
    %c0_70 = arith.constant 0 : index
    %c0_71 = arith.constant 0 : index
    %c2 = arith.constant 2 : index
    %c0_72 = arith.constant 0 : index
    %46 = tpu.strided_load %arg14[%c0_70, %c0_71, %c2, %c0_72] {strides = array<i32: 1, 2, 2, 1>} : memref<2x10x16x6xf32, #tpu.memory_space<vmem>>, vector<2x4x4x6xf32>
    %47 = vector.shape_cast %46 : vector<2x4x4x6xf32> to vector<32x6xf32>
    %c0_73 = arith.constant 0 : index
    %c0_74 = arith.constant 0 : index
    %c3 = arith.constant 3 : index
    %c0_75 = arith.constant 0 : index
    %48 = tpu.strided_load %arg14[%c0_73, %c0_74, %c3, %c0_75] {strides = array<i32: 1, 2, 2, 1>} : memref<2x10x16x6xf32, #tpu.memory_space<vmem>>, vector<2x4x4x6xf32>
    %49 = vector.shape_cast %48 : vector<2x4x4x6xf32> to vector<32x6xf32>
    %c0_76 = arith.constant 0 : index
    %c1_77 = arith.constant 1 : index
    %c0_78 = arith.constant 0 : index
    %c0_79 = arith.constant 0 : index
    %50 = tpu.strided_load %arg14[%c0_76, %c1_77, %c0_78, %c0_79] {strides = array<i32: 1, 2, 2, 1>} : memref<2x10x16x6xf32, #tpu.memory_space<vmem>>, vector<2x4x4x6xf32>
    %51 = vector.shape_cast %50 : vector<2x4x4x6xf32> to vector<32x6xf32>
    %c0_80 = arith.constant 0 : index
    %c1_81 = arith.constant 1 : index
    %c1_82 = arith.constant 1 : index
    %c0_83 = arith.constant 0 : index
    %52 = tpu.strided_load %arg14[%c0_80, %c1_81, %c1_82, %c0_83] {strides = array<i32: 1, 2, 2, 1>} : memref<2x10x16x6xf32, #tpu.memory_space<vmem>>, vector<2x4x4x6xf32>
    %53 = vector.shape_cast %52 : vector<2x4x4x6xf32> to vector<32x6xf32>
    %c0_84 = arith.constant 0 : index
    %c1_85 = arith.constant 1 : index
    %c2_86 = arith.constant 2 : index
    %c0_87 = arith.constant 0 : index
    %54 = tpu.strided_load %arg14[%c0_84, %c1_85, %c2_86, %c0_87] {strides = array<i32: 1, 2, 2, 1>} : memref<2x10x16x6xf32, #tpu.memory_space<vmem>>, vector<2x4x4x6xf32>
    %55 = vector.shape_cast %54 : vector<2x4x4x6xf32> to vector<32x6xf32>
    %c0_88 = arith.constant 0 : index
    %c1_89 = arith.constant 1 : index
    %c3_90 = arith.constant 3 : index
    %c0_91 = arith.constant 0 : index
    %56 = tpu.strided_load %arg14[%c0_88, %c1_89, %c3_90, %c0_91] {strides = array<i32: 1, 2, 2, 1>} : memref<2x10x16x6xf32, #tpu.memory_space<vmem>>, vector<2x4x4x6xf32>
    %57 = vector.shape_cast %56 : vector<2x4x4x6xf32> to vector<32x6xf32>
    %c0_92 = arith.constant 0 : index
    %c2_93 = arith.constant 2 : index
    %c0_94 = arith.constant 0 : index
    %c0_95 = arith.constant 0 : index
    %58 = tpu.strided_load %arg14[%c0_92, %c2_93, %c0_94, %c0_95] {strides = array<i32: 1, 2, 2, 1>} : memref<2x10x16x6xf32, #tpu.memory_space<vmem>>, vector<2x4x4x6xf32>
    %59 = vector.shape_cast %58 : vector<2x4x4x6xf32> to vector<32x6xf32>
    %c0_96 = arith.constant 0 : index
    %c2_97 = arith.constant 2 : index
    %c1_98 = arith.constant 1 : index
    %c0_99 = arith.constant 0 : index
    %60 = tpu.strided_load %arg14[%c0_96, %c2_97, %c1_98, %c0_99] {strides = array<i32: 1, 2, 2, 1>} : memref<2x10x16x6xf32, #tpu.memory_space<vmem>>, vector<2x4x4x6xf32>
    %61 = vector.shape_cast %60 : vector<2x4x4x6xf32> to vector<32x6xf32>
    %c0_100 = arith.constant 0 : index
    %c2_101 = arith.constant 2 : index
    %c2_102 = arith.constant 2 : index
    %c0_103 = arith.constant 0 : index
    %62 = tpu.strided_load %arg14[%c0_100, %c2_101, %c2_102, %c0_103] {strides = array<i32: 1, 2, 2, 1>} : memref<2x10x16x6xf32, #tpu.memory_space<vmem>>, vector<2x4x4x6xf32>
    %63 = vector.shape_cast %62 : vector<2x4x4x6xf32> to vector<32x6xf32>
    %c0_104 = arith.constant 0 : index
    %c2_105 = arith.constant 2 : index
    %c3_106 = arith.constant 3 : index
    %c0_107 = arith.constant 0 : index
    %64 = tpu.strided_load %arg14[%c0_104, %c2_105, %c3_106, %c0_107] {strides = array<i32: 1, 2, 2, 1>} : memref<2x10x16x6xf32, #tpu.memory_space<vmem>>, vector<2x4x4x6xf32>
    %65 = vector.shape_cast %64 : vector<2x4x4x6xf32> to vector<32x6xf32>
    %c0_108 = arith.constant 0 : index
    %c3_109 = arith.constant 3 : index
    %c0_110 = arith.constant 0 : index
    %c0_111 = arith.constant 0 : index
    %66 = tpu.strided_load %arg14[%c0_108, %c3_109, %c0_110, %c0_111] {strides = array<i32: 1, 2, 2, 1>} : memref<2x10x16x6xf32, #tpu.memory_space<vmem>>, vector<2x4x4x6xf32>
    %67 = vector.shape_cast %66 : vector<2x4x4x6xf32> to vector<32x6xf32>
    %c0_112 = arith.constant 0 : index
    %c3_113 = arith.constant 3 : index
    %c1_114 = arith.constant 1 : index
    %c0_115 = arith.constant 0 : index
    %68 = tpu.strided_load %arg14[%c0_112, %c3_113, %c1_114, %c0_115] {strides = array<i32: 1, 2, 2, 1>} : memref<2x10x16x6xf32, #tpu.memory_space<vmem>>, vector<2x4x4x6xf32>
    %69 = vector.shape_cast %68 : vector<2x4x4x6xf32> to vector<32x6xf32>
    %c0_116 = arith.constant 0 : index
    %c3_117 = arith.constant 3 : index
    %c2_118 = arith.constant 2 : index
    %c0_119 = arith.constant 0 : index
    %70 = tpu.strided_load %arg14[%c0_116, %c3_117, %c2_118, %c0_119] {strides = array<i32: 1, 2, 2, 1>} : memref<2x10x16x6xf32, #tpu.memory_space<vmem>>, vector<2x4x4x6xf32>
    %71 = vector.shape_cast %70 : vector<2x4x4x6xf32> to vector<32x6xf32>
    %c0_120 = arith.constant 0 : index
    %c3_121 = arith.constant 3 : index
    %c3_122 = arith.constant 3 : index
    %c0_123 = arith.constant 0 : index
    %72 = tpu.strided_load %arg14[%c0_120, %c3_121, %c3_122, %c0_123] {strides = array<i32: 1, 2, 2, 1>} : memref<2x10x16x6xf32, #tpu.memory_space<vmem>>, vector<2x4x4x6xf32>
    %73 = vector.shape_cast %72 : vector<2x4x4x6xf32> to vector<32x6xf32>
    %74 = tpu.concatenate %43, %45, %47, %49, %51, %53, %55, %57, %59, %61, %63, %65, %67, %69, %71, %73 in 1 : vector<32x6xf32>, vector<32x6xf32>, vector<32x6xf32>, vector<32x6xf32>, vector<32x6xf32>, vector<32x6xf32>, vector<32x6xf32>, vector<32x6xf32>, vector<32x6xf32>, vector<32x6xf32>, vector<32x6xf32>, vector<32x6xf32>, vector<32x6xf32>, vector<32x6xf32>, vector<32x6xf32>, vector<32x6xf32> -> vector<32x96xf32>
    %c0_124 = arith.constant 0 : index
    %c0_125 = arith.constant 0 : index
    %75 = vector.load %arg4[%c0_124, %c0_125] : memref<96x16xf32, #tpu.memory_space<vmem>>, vector<96x16xf32>
    %cst_126 = arith.constant dense<0.000000e+00> : vector<32x16xf32>
    %76 = tpu.matmul %74, %75, %cst_126 {dimension_numbers = #tpu.dot_dimension_numbers<[1], [0], [0], [1], [0, 0, 1, 1], [], []>} : vector<32x96xf32>, vector<96x16xf32>, vector<32x16xf32> -> vector<32x16xf32>
    %c0_127 = arith.constant 0 : index
    %c0_128 = arith.constant 0 : index
    %77 = vector.load %arg5[%c0_127, %c0_128] : memref<1x16xf32, #tpu.memory_space<vmem>>, vector<1x16xf32>
    %78 = vector.broadcast %77 : vector<1x16xf32> to vector<32x16xf32>
    %79 = arith.addf %76, %78 : vector<32x16xf32>
    %cst_129 = arith.constant 0.000000e+00 : f32
    %80 = vector.broadcast %cst_129 : f32 to vector<32x16xf32>
    %81 = arith.maximumf %79, %80 : vector<32x16xf32>
    %82 = vector.shape_cast %81 : vector<32x16xf32> to vector<2x4x4x16xf32>
    %c0_130 = arith.constant 0 : index
    %c0_131 = arith.constant 0 : index
    %c0_132 = arith.constant 0 : index
    %c0_133 = arith.constant 0 : index
    %83 = vector.load %arg15[%c0_130, %c0_131, %c0_132, %c0_133] : memref<2x4x4x16xf32, #tpu.memory_space<vmem>>, vector<2x4x4x16xf32>
    tpu.vector_store %arg15[%c0_130, %c0_131, %c0_132, %c0_133], %82 {strides = array<i32>} : memref<2x4x4x16xf32, #tpu.memory_space<vmem>>, vector<2x4x4x16xf32>,
    %c0_134 = arith.constant 0 : index
    %c0_135 = arith.constant 0 : index
    %c0_136 = arith.constant 0 : index
    %c0_137 = arith.constant 0 : index
    %84 = vector.load %arg15[%c0_134, %c0_135, %c0_136, %c0_137] : memref<2x4x4x16xf32, #tpu.memory_space<vmem>>, vector<2x1x1x16xf32>
    %85 = vector.shape_cast %84 : vector<2x1x1x16xf32> to vector<2x16xf32>
    %c0_138 = arith.constant 0 : index
    %c0_139 = arith.constant 0 : index
    %c1_140 = arith.constant 1 : index
    %c0_141 = arith.constant 0 : index
    %86 = vector.load %arg15[%c0_138, %c0_139, %c1_140, %c0_141] : memref<2x4x4x16xf32, #tpu.memory_space<vmem>>, vector<2x1x1x16xf32>
    %87 = vector.shape_cast %86 : vector<2x1x1x16xf32> to vector<2x16xf32>
    %88 = arith.maximumf %85, %87 : vector<2x16xf32>
    %c0_142 = arith.constant 0 : index
    %c1_143 = arith.constant 1 : index
    %c0_144 = arith.constant 0 : index
    %c0_145 = arith.constant 0 : index
    %89 = vector.load %arg15[%c0_142, %c1_143, %c0_144, %c0_145] : memref<2x4x4x16xf32, #tpu.memory_space<vmem>>, vector<2x1x1x16xf32>
    %90 = vector.shape_cast %89 : vector<2x1x1x16xf32> to vector<2x16xf32>
    %c0_146 = arith.constant 0 : index
    %c1_147 = arith.constant 1 : index
    %c1_148 = arith.constant 1 : index
    %c0_149 = arith.constant 0 : index
    %91 = vector.load %arg15[%c0_146, %c1_147, %c1_148, %c0_149] : memref<2x4x4x16xf32, #tpu.memory_space<vmem>>, vector<2x1x1x16xf32>
    %92 = vector.shape_cast %91 : vector<2x1x1x16xf32> to vector<2x16xf32>
    %93 = arith.maximumf %90, %92 : vector<2x16xf32>
    %94 = arith.maximumf %88, %93 : vector<2x16xf32>
    %c0_150 = arith.constant 0 : index
    %c0_151 = arith.constant 0 : index
    %c2_152 = arith.constant 2 : index
    %c0_153 = arith.constant 0 : index
    %95 = vector.load %arg15[%c0_150, %c0_151, %c2_152, %c0_153] : memref<2x4x4x16xf32, #tpu.memory_space<vmem>>, vector<2x1x1x16xf32>
    %96 = vector.shape_cast %95 : vector<2x1x1x16xf32> to vector<2x16xf32>
    %c0_154 = arith.constant 0 : index
    %c0_155 = arith.constant 0 : index
    %c3_156 = arith.constant 3 : index
    %c0_157 = arith.constant 0 : index
    %97 = vector.load %arg15[%c0_154, %c0_155, %c3_156, %c0_157] : memref<2x4x4x16xf32, #tpu.memory_space<vmem>>, vector<2x1x1x16xf32>
    %98 = vector.shape_cast %97 : vector<2x1x1x16xf32> to vector<2x16xf32>
    %99 = arith.maximumf %96, %98 : vector<2x16xf32>
    %c0_158 = arith.constant 0 : index
    %c1_159 = arith.constant 1 : index
    %c2_160 = arith.constant 2 : index
    %c0_161 = arith.constant 0 : index
    %100 = vector.load %arg15[%c0_158, %c1_159, %c2_160, %c0_161] : memref<2x4x4x16xf32, #tpu.memory_space<vmem>>, vector<2x1x1x16xf32>
    %101 = vector.shape_cast %100 : vector<2x1x1x16xf32> to vector<2x16xf32>
    %c0_162 = arith.constant 0 : index
    %c1_163 = arith.constant 1 : index
    %c3_164 = arith.constant 3 : index
    %c0_165 = arith.constant 0 : index
    %102 = vector.load %arg15[%c0_162, %c1_163, %c3_164, %c0_165] : memref<2x4x4x16xf32, #tpu.memory_space<vmem>>, vector<2x1x1x16xf32>
    %103 = vector.shape_cast %102 : vector<2x1x1x16xf32> to vector<2x16xf32>
    %104 = arith.maximumf %101, %103 : vector<2x16xf32>
    %105 = arith.maximumf %99, %104 : vector<2x16xf32>
    %c0_166 = arith.constant 0 : index
    %c2_167 = arith.constant 2 : index
    %c0_168 = arith.constant 0 : index
    %c0_169 = arith.constant 0 : index
    %106 = vector.load %arg15[%c0_166, %c2_167, %c0_168, %c0_169] : memref<2x4x4x16xf32, #tpu.memory_space<vmem>>, vector<2x1x1x16xf32>
    %107 = vector.shape_cast %106 : vector<2x1x1x16xf32> to vector<2x16xf32>
    %c0_170 = arith.constant 0 : index
    %c2_171 = arith.constant 2 : index
    %c1_172 = arith.constant 1 : index
    %c0_173 = arith.constant 0 : index
    %108 = vector.load %arg15[%c0_170, %c2_171, %c1_172, %c0_173] : memref<2x4x4x16xf32, #tpu.memory_space<vmem>>, vector<2x1x1x16xf32>
    %109 = vector.shape_cast %108 : vector<2x1x1x16xf32> to vector<2x16xf32>
    %110 = arith.maximumf %107, %109 : vector<2x16xf32>
    %c0_174 = arith.constant 0 : index
    %c3_175 = arith.constant 3 : index
    %c0_176 = arith.constant 0 : index
    %c0_177 = arith.constant 0 : index
    %111 = vector.load %arg15[%c0_174, %c3_175, %c0_176, %c0_177] : memref<2x4x4x16xf32, #tpu.memory_space<vmem>>, vector<2x1x1x16xf32>
    %112 = vector.shape_cast %111 : vector<2x1x1x16xf32> to vector<2x16xf32>
    %c0_178 = arith.constant 0 : index
    %c3_179 = arith.constant 3 : index
    %c1_180 = arith.constant 1 : index
    %c0_181 = arith.constant 0 : index
    %113 = vector.load %arg15[%c0_178, %c3_179, %c1_180, %c0_181] : memref<2x4x4x16xf32, #tpu.memory_space<vmem>>, vector<2x1x1x16xf32>
    %114 = vector.shape_cast %113 : vector<2x1x1x16xf32> to vector<2x16xf32>
    %115 = arith.maximumf %112, %114 : vector<2x16xf32>
    %116 = arith.maximumf %110, %115 : vector<2x16xf32>
    %c0_182 = arith.constant 0 : index
    %c2_183 = arith.constant 2 : index
    %c2_184 = arith.constant 2 : index
    %c0_185 = arith.constant 0 : index
    %117 = vector.load %arg15[%c0_182, %c2_183, %c2_184, %c0_185] : memref<2x4x4x16xf32, #tpu.memory_space<vmem>>, vector<2x1x1x16xf32>
    %118 = vector.shape_cast %117 : vector<2x1x1x16xf32> to vector<2x16xf32>
    %c0_186 = arith.constant 0 : index
    %c2_187 = arith.constant 2 : index
    %c3_188 = arith.constant 3 : index
    %c0_189 = arith.constant 0 : index
    %119 = vector.load %arg15[%c0_186, %c2_187, %c3_188, %c0_189] : memref<2x4x4x16xf32, #tpu.memory_space<vmem>>, vector<2x1x1x16xf32>
    %120 = vector.shape_cast %119 : vector<2x1x1x16xf32> to vector<2x16xf32>
    %121 = arith.maximumf %118, %120 : vector<2x16xf32>
    %c0_190 = arith.constant 0 : index
    %c3_191 = arith.constant 3 : index
    %c2_192 = arith.constant 2 : index
    %c0_193 = arith.constant 0 : index
    %122 = vector.load %arg15[%c0_190, %c3_191, %c2_192, %c0_193] : memref<2x4x4x16xf32, #tpu.memory_space<vmem>>, vector<2x1x1x16xf32>
    %123 = vector.shape_cast %122 : vector<2x1x1x16xf32> to vector<2x16xf32>
    %c0_194 = arith.constant 0 : index
    %c3_195 = arith.constant 3 : index
    %c3_196 = arith.constant 3 : index
    %c0_197 = arith.constant 0 : index
    %124 = vector.load %arg15[%c0_194, %c3_195, %c3_196, %c0_197] : memref<2x4x4x16xf32, #tpu.memory_space<vmem>>, vector<2x1x1x16xf32>
    %125 = vector.shape_cast %124 : vector<2x1x1x16xf32> to vector<2x16xf32>
    %126 = arith.maximumf %123, %125 : vector<2x16xf32>
    %127 = arith.maximumf %121, %126 : vector<2x16xf32>
    %128 = tpu.concatenate %94, %105, %116, %127 in 1 : vector<2x16xf32>, vector<2x16xf32>, vector<2x16xf32>, vector<2x16xf32> -> vector<2x64xf32>
    %c0_198 = arith.constant 0 : index
    %c0_199 = arith.constant 0 : index
    %129 = vector.load %arg6[%c0_198, %c0_199] : memref<64x128xf32, #tpu.memory_space<vmem>>, vector<64x128xf32>
    %cst_200 = arith.constant dense<0.000000e+00> : vector<2x128xf32>
    %130 = tpu.matmul %128, %129, %cst_200 {dimension_numbers = #tpu.dot_dimension_numbers<[1], [0], [0], [1], [0, 0, 1, 1], [], []>} : vector<2x64xf32>, vector<64x128xf32>, vector<2x128xf32> -> vector<2x128xf32>
    %c0_201 = arith.constant 0 : index
    %c0_202 = arith.constant 0 : index
    %131 = vector.load %arg7[%c0_201, %c0_202] : memref<1x128xf32, #tpu.memory_space<vmem>>, vector<1x128xf32>
    %132 = vector.broadcast %131 : vector<1x128xf32> to vector<2x128xf32>
    %133 = arith.addf %130, %132 : vector<2x128xf32>
    %cst_203 = arith.constant 0.000000e+00 : f32
    %134 = vector.broadcast %cst_203 : f32 to vector<2x128xf32>
    %135 = arith.maximumf %133, %134 : vector<2x128xf32>
    %c0_204 = arith.constant 0 : index
    %c0_205 = arith.constant 0 : index
    %136 = vector.load %arg8[%c0_204, %c0_205] : memref<128x128xf32, #tpu.memory_space<vmem>>, vector<128x128xf32>
    %cst_206 = arith.constant dense<0.000000e+00> : vector<2x128xf32>
    %137 = tpu.matmul %135, %136, %cst_206 {dimension_numbers = #tpu.dot_dimension_numbers<[1], [0], [0], [1], [0, 0, 1, 1], [], []>} : vector<2x128xf32>, vector<128x128xf32>, vector<2x128xf32> -> vector<2x128xf32>
    %c0_207 = arith.constant 0 : index
    %c0_208 = arith.constant 0 : index
    %138 = vector.load %arg9[%c0_207, %c0_208] : memref<1x128xf32, #tpu.memory_space<vmem>>, vector<1x128xf32>
    %139 = vector.broadcast %138 : vector<1x128xf32> to vector<2x128xf32>
    %140 = arith.addf %137, %139 : vector<2x128xf32>
    %cst_209 = arith.constant 0.000000e+00 : f32
    %141 = vector.broadcast %cst_209 : f32 to vector<2x128xf32>
    %142 = arith.maximumf %140, %141 : vector<2x128xf32>
    %c0_210 = arith.constant 0 : index
    %c0_211 = arith.constant 0 : index
    %143 = vector.load %arg10[%c0_210, %c0_211] : memref<128x10xf32, #tpu.memory_space<vmem>>, vector<128x10xf32>
    %cst_212 = arith.constant dense<0.000000e+00> : vector<2x10xf32>
    %144 = tpu.matmul %142, %143, %cst_212 {dimension_numbers = #tpu.dot_dimension_numbers<[1], [0], [0], [1], [0, 0, 1, 1], [], []>} : vector<2x128xf32>, vector<128x10xf32>, vector<2x10xf32> -> vector<2x10xf32>
    %c0_213 = arith.constant 0 : index
    %c0_214 = arith.constant 0 : index
    %145 = vector.load %arg11[%c0_213, %c0_214] : memref<1x10xf32, #tpu.memory_space<vmem>>, vector<1x10xf32>
    %146 = vector.broadcast %145 : vector<1x10xf32> to vector<2x10xf32>
    %147 = arith.addf %144, %146 : vector<2x10xf32>
    %c0_215 = arith.constant 0 : index
    %c0_216 = arith.constant 0 : index
    %148 = vector.load %arg12[%c0_215, %c0_216] : memref<2x10xf32, #tpu.memory_space<vmem>>, vector<2x10xf32>
    tpu.vector_store %arg12[%c0_215, %c0_216], %147 {strides = array<i32>} : memref<2x10xf32, #tpu.memory_space<vmem>>, vector<2x10xf32>,
    return
  }
  func.func @transform_0(%arg0: i32) -> (i32, i32, i32, i32) {
    %c0_i32 = arith.constant 0 : i32
    %c0_i32_0 = arith.constant 0 : i32
    %c0_i32_1 = arith.constant 0 : i32
    %c0_i32_2 = arith.constant 0 : i32
    return %arg0, %c0_i32, %c0_i32_0, %c0_i32_1 : i32, i32, i32, i32
  }
  func.func @transform_1(%arg0: i32) -> (i32, i32) {
    %c0_i32 = arith.constant 0 : i32
    %c0_i32_0 = arith.constant 0 : i32
    %c0_i32_1 = arith.constant 0 : i32
    return %c0_i32, %c0_i32_0 : i32, i32
  }
  func.func @transform_2(%arg0: i32) -> (i32, i32) {
    %c0_i32 = arith.constant 0 : i32
    %c0_i32_0 = arith.constant 0 : i32
    %c0_i32_1 = arith.constant 0 : i32
    return %c0_i32, %c0_i32_0 : i32, i32
  }
  func.func @transform_3(%arg0: i32) -> (i32, i32) {
    %c0_i32 = arith.constant 0 : i32
    %c0_i32_0 = arith.constant 0 : i32
    %c0_i32_1 = arith.constant 0 : i32
    return %c0_i32, %c0_i32_0 : i32, i32
  }
  func.func @transform_4(%arg0: i32) -> (i32, i32) {
    %c0_i32 = arith.constant 0 : i32
    %c0_i32_0 = arith.constant 0 : i32
    %c0_i32_1 = arith.constant 0 : i32
    return %c0_i32, %c0_i32_0 : i32, i32
  }
  func.func @transform_5(%arg0: i32) -> (i32, i32) {
    %c0_i32 = arith.constant 0 : i32
    %c0_i32_0 = arith.constant 0 : i32
    %c0_i32_1 = arith.constant 0 : i32
    return %c0_i32, %c0_i32_0 : i32, i32
  }
  func.func @transform_6(%arg0: i32) -> (i32, i32) {
    %c0_i32 = arith.constant 0 : i32
    %c0_i32_0 = arith.constant 0 : i32
    %c0_i32_1 = arith.constant 0 : i32
    return %c0_i32, %c0_i32_0 : i32, i32
  }
  func.func @transform_7(%arg0: i32) -> (i32, i32) {
    %c0_i32 = arith.constant 0 : i32
    %c0_i32_0 = arith.constant 0 : i32
    %c0_i32_1 = arith.constant 0 : i32
    return %c0_i32, %c0_i32_0 : i32, i32
  }
  func.func @transform_8(%arg0: i32) -> (i32, i32) {
    %c0_i32 = arith.constant 0 : i32
    %c0_i32_0 = arith.constant 0 : i32
    %c0_i32_1 = arith.constant 0 : i32
    return %c0_i32, %c0_i32_0 : i32, i32
  }
  func.func @transform_9(%arg0: i32) -> (i32, i32) {
    %c0_i32 = arith.constant 0 : i32
    %c0_i32_0 = arith.constant 0 : i32
    %c0_i32_1 = arith.constant 0 : i32
    return %c0_i32, %c0_i32_0 : i32, i32
  }
  func.func @transform_10(%arg0: i32) -> (i32, i32) {
    %c0_i32 = arith.constant 0 : i32
    %c0_i32_0 = arith.constant 0 : i32
    %c0_i32_1 = arith.constant 0 : i32
    return %c0_i32, %c0_i32_0 : i32, i32
  }
  func.func @transform_11(%arg0: i32) -> (i32, i32) {
    %c0_i32 = arith.constant 0 : i32
    %c0_i32_0 = arith.constant 0 : i32
    return %arg0, %c0_i32 : i32, i32
  }
}

</mosaic_0001>

<bundles_post_ra>
// kernel: net2_forward.1
= control target key start
LH: loop header
LB: loop body
LE: loop exit
PB: predicated region body
PF: predicated region fallthrough
CT: control target
= control target key end

     0   :  { %s4172_s21 = smov 24   ;;  %s4173_s22 = smov 12   ;;  %s5986_s0 = inlined_call_operand.vmem [shape: f32[2,17,17,12], index: 0, kind: input, shape index: {}]   ;;  %s5987_s1 = inlined_call_operand.vmem [shape: f32[48,6], index: 1, kind: input, shape index: {}]   ;;  %s5988_s2 = inlined_call_operand.vmem [shape: f32[1,6], index: 2, kind: input, shape index: {}]   ;;  %s5989_s3 = inlined_call_operand.vmem [shape: f32[96,16], index: 3, kind: input, shape index: {}]   ;;  %s5990_s4 = inlined_call_operand.vmem [shape: f32[1,16], index: 4, kind: input, shape index: {}]   ;;  %s5991_s5 = inlined_call_operand.vmem [shape: f32[64,128], index: 5, kind: input, shape index: {}]   ;;  %s5992_s6 = inlined_call_operand.vmem [shape: f32[1,128], index: 6, kind: input, shape index: {}]   ;;  %s5993_s7 = inlined_call_operand.vmem [shape: f32[128,128], index: 7, kind: input, shape index: {}]   ;;  %s5994_s8 = inlined_call_operand.vmem [shape: f32[1,128], index: 8, kind: input, shape index: {}]   ;;  %s5995_s9 = inlined_call_operand.vmem [shape: f32[128,10], index: 9, kind: input, shape index: {}]   ;;  %s5996_s10 = inlined_call_operand.vmem [shape: f32[1,10], index: 10, kind: input, shape index: {}]   ;;  %s5997_s11 = inlined_call_operand.hbm [shape: f32[2,10], index: 11, kind: output, shape index: {}]  }
   0x1   :  { %v4255_v0 = vld [vmem:[%s5986_s0 + $0x18] sm:$0xff]  ;;  %v103_v1 = vld [vmem:[%s5986_s0 + $0x1] sm:$0xff]  ;;  %v104_v3 = vld [vmem:[%s5986_s0 + $0x9] sm:$0xff]  ;;  %s4174_s12 = smov 36  }
   0x2   :  { %616 = vrot.lane.b32.xlu1 %v4255_v0, %s4172_s21  ;;  %360 = vrot.lane.b32.xlu0 %v103_v1, %s4173_s22  ;;  %v4266_v2 = vld [vmem:[%s5986_s0 + $0x20] sm:$0xff]  ;;  %v4287_v6 = vld [vmem:[%s5986_s0 + $0x38] sm:$0xff] }
   0x3   :  { %v3636_v4 = vld [vmem:[%s5986_s0 + $0x21] sm:$0xff]  ;;  %v3635_v5 = vld [vmem:[%s5986_s0 + $0x19] sm:$0xff]  ;;  %v4292_v7 = vld [vmem:[%s5986_s0 + $0x30] sm:$0xff] }
   0x4   :  { %v1264_v8 = vld [vmem:[%s5987_s1 + $0x28] sm:$0xff]  ;;  %v1263_v9 = vld [vmem:[%s5987_s1 + $0x20] sm:$0xff]  ;;  %v1262_v10 = vld [vmem:[%s5987_s1 + $0x18] sm:$0xff] }
   0x5   :  { %3902 = vmatprep.subr.mxu0 %v1264_v8  ;;  %v3638_v11 = vld [vmem:[%s5986_s0 + $0x39] sm:$0xff]  ;;  %v3637_v12 = vld [vmem:[%s5986_s0 + $0x31] sm:$0xff] }
   0x6   :  { %618 = vrot.lane.b32.xlu1 %v4266_v2, %s4172_s21  ;;  %362 = vrot.lane.b32.xlu0 %v104_v3, %s4173_s22  ;;  %v1261_v13 = vld [vmem:[%s5987_s1 + $0x10] sm:$0xff] }
   0x7   :  { %3903 = vmatpush3.msra.mxu0 %v1264_v8 }
   0x8   :  { %3904 = vmatprep.subr.mxu0 %v1263_v9 }
   0x9   :  { %3905 = vmatpush3.msra.mxu0 %v1263_v9 }
   0xa   :  { %874 = vrot.lane.b32.xlu1 %v3636_v4, %s4174_s12  ;;  %872 = vrot.lane.b32.xlu0 %v3635_v5, %s4174_s12 }
   0xb   :  { %3906 = vmatprep.subr.mxu0 %v1262_v10 }
   0xc   :  { %3907 = vmatpush3.msra.mxu0 %v1262_v10 }
   0xe   :  { %366 = vrot.lane.b32.xlu1 %v3636_v4, %s4173_s22  ;;  %364 = vrot.lane.b32.xlu0 %v3635_v5, %s4173_s22 }
  0x12   :  { %622 = vrot.lane.b32.xlu1 %v4287_v6, %s4172_s21  ;;  %620 = vrot.lane.b32.xlu0 %v4292_v7, %s4172_s21 }
  0x16   :  { %878 = vrot.lane.b32.xlu1 %v3638_v11, %s4174_s12  ;;  %876 = vrot.lane.b32.xlu0 %v3637_v12, %s4174_s12 }
  0x17   :  { %16 = vsyncpa [#allocation6], 0  ;;  %3908 = vmatprep.subr.mxu0 %v1261_v13  ;;  %v1260_v14 = vld [vmem:[%s5987_s1 + $0x8] sm:$0xff]  ;;  %v1259_v15 = vld [vmem:[%s5987_s1] sm:$0xff]  ;;  %vm1064_vm0 = vcmask 97280   ;;  %vm1129_vm1 = vcmask 195584  }
  0x18   :  { %3909 = vmatpush3.msra.mxu0 %v1261_v13  ;;  %v4329_v16 = vld [vmem:[%s5986_s0 + $0x50] sm:$0xff]  ;;  %v4334_v17 = vld [vmem:[%s5986_s0 + $0x48] sm:$0xff]  ;;  %v4358_v21 = vld [vmem:[%s5986_s0 + $0x60] sm:$0xff]  ;;  %vm1194_vm2 = vcmask 293888   ;;  %vm1272_vm3 = vcmask 392192   ;;  %vm1914_vm4 = vcmask 48128  }
  0x19   :  { %3910 = vmatprep.subr.mxu0 %v1260_v14  ;;  %v3640_v18 = vld [vmem:[%s5986_s0 + $0x51] sm:$0xff]  ;;  %v3639_v19 = vld [vmem:[%s5986_s0 + $0x49] sm:$0xff]  ;;  %v3641_v23 = vld [vmem:[%s5986_s0 + $0x61] sm:$0xff]  ;;  %vm2163_vm5 = vcmask 40960   ;;  %s4177_s16 = smov 18   ;;  %s4178_s17 = smov 30  }
  0x1a   :  { %370 = vrot.lane.b32.xlu1 %v3638_v11, %s4173_s22  ;;  %368 = vrot.lane.b32.xlu0 %v3637_v12, %s4173_s22  ;;  %v4353_v20 = vld [vmem:[%s5986_s0 + $0x68] sm:$0xff]  ;;  %v4377_v24 = vld [vmem:[%s5986_s0 + $0x80] sm:$0xff]  ;;  %s4179_s18 = smov 42   ;;  %s4181_s1 = smov 54   ;;  %vm2859_vm6 = vcmask 146432   ;;  %vm2868_vm7 = vcmask 244736  }
  0x1b   :  { %3911 = vmatpush3.msra.mxu0 %v1260_v14  ;;  %v3642_v22 = vld [vmem:[%s5986_s0 + $0x69] sm:$0xff]  ;;  %v4382_v25 = vld [vmem:[%s5986_s0 + $0x78] sm:$0xff]  ;;  %v3644_v26 = vld [vmem:[%s5986_s0 + $0x81] sm:$0xff]  ;;  %s4182_s23 = smov 60   ;;  %s4183_s24 = smov 66   ;;  %vm2877_vm8 = vcmask 343040  }
  0x1c   :  { %3912 = vmatprep.subr.mxu0 %v1259_v15  ;;  %v3643_v27 = vld [vmem:[%s5986_s0 + $0x79] sm:$0xff]  ;;  %v4406_v29 = vld [vmem:[%s5986_s0 + $0x90] sm:$0xff]  ;;  %v4430_v33 = vld [vmem:[%s5986_s0 + $0xa8] sm:$0xff]  ;;  %s4184_s25 = smov 72   ;;  %s4185_s26 = smov 78   ;;  %vm2886_vm9 = vcmask 441344  }
  0x1d   :  { %3913 = vmatpush3.msra.mxu0 %v1259_v15  ;;  %v4401_v28 = vld [vmem:[%s5986_s0 + $0x98] sm:$0xff]  ;;  %v4425_v32 = vld [vmem:[%s5986_s0 + $0xb0] sm:$0xff]  ;;  %v4449_v36 = vld [vmem:[%s5986_s0 + $0xc8] sm:$0xff]  ;;  %s4186_s27 = smov 84   ;;  %s4187_s28 = smov 90   ;;  %vm2891_vm10 = vcmask 490496  }
  0x1e   :  { %626 = vrot.lane.b32.xlu1 %v4329_v16, %s4172_s21  ;;  %624 = vrot.lane.b32.xlu0 %v4334_v17, %s4172_s21  ;;  %v3646_v30 = vld [vmem:[%s5986_s0 + $0x99] sm:$0xff]  ;;  %v3645_v31 = vld [vmem:[%s5986_s0 + $0x91] sm:$0xff]  ;;  %vm2901_vm11 = vcmask 588800   ;;  %vm2896_vm12 = vcmask 539648   ;;  %vm2906_vm13 = vcmask 637952   ;;  %vm2911_vm14 = vcmask 687104  }
  0x1f   :  { %v3648_v34 = vld [vmem:[%s5986_s0 + $0xb1] sm:$0xff]  ;;  %v3647_v35 = vld [vmem:[%s5986_s0 + $0xa9] sm:$0xff]  ;;  %v4454_v37 = vld [vmem:[%s5986_s0 + $0xc0] sm:$0xff]  ;;  %vm2916_vm15 = vcmask 736256   ;;  %s4191_s19 = smov [#allocation5]  }
  0x20   :  { %v3650_v38 = vld [vmem:[%s5986_s0 + $0xc9] sm:$0xff]  ;;  %v3649_v39 = vld [vmem:[%s5986_s0 + $0xc1] sm:$0xff]  ;;  %v4478_v41 = vld [vmem:[%s5986_s0 + $0xd8] sm:$0xff]  ;;  %s3439_s20 = sshll.u32 %s4191_s19, 4  ;;  %s3440_s20 = int_to_ptr.vmem [resolvable:$true] %s3439_s20 }
  0x21   :  { %v4473_v40 = vld [vmem:[%s5986_s0 + $0xe0] sm:$0xff]  ;;  %v4497_v44 = vld [vmem:[%s5986_s0 + $0xf8] sm:$0xff]  ;;  %v4502_v45 = vld [vmem:[%s5986_s0 + $0xf0] sm:$0xff]  ;;  %p4155_p1 = scmp.lt.s32.totalorder %s3440_s20, %s3440_s20 }
  0x22   :  { %882 = vrot.lane.b32.xlu1 %v3640_v18, %s4174_s12  ;;  %880 = vrot.lane.b32.xlu0 %v3639_v19, %s4174_s12  ;;  %v3652_v42 = vld [vmem:[%s5986_s0 + $0xe1] sm:$0xff]  ;;  %v3651_v43 = vld [vmem:[%s5986_s0 + $0xd9] sm:$0xff] }
  0x23   :  { %v3654_v46 = vld [vmem:[%s5986_s0 + $0xf9] sm:$0xff]  ;;  %v3653_v47 = vld [vmem:[%s5986_s0 + $0xf1] sm:$0xff]  ;;  %v40_v51 = vld [vmem:[%s5986_s0 + $0x8] sm:$0xff] }
  0x24   :  { %v39_v50 = vld [vmem:[%s5986_s0] sm:$0xff]  ;;  %v4529_v56 = vld [vmem:[%s5986_s0 + $0x110] sm:$0xff]  ;;  %v4534_v57 = vld [vmem:[%s5986_s0 + $0x108] sm:$0xff] }
  0x25   :  { %v3656_v1 = vld [vmem:[%s5986_s0 + $0x111] sm:$0xff]  ;;  %v3655_v3 = vld [vmem:[%s5986_s0 + $0x109] sm:$0xff]  ;;  %v4568_v13 = vld [vmem:[%s5986_s0 + $0x120] sm:$0xff] }
  0x26   :  { %374 = vrot.lane.b32.xlu1 %v3640_v18, %s4173_s22  ;;  %372 = vrot.lane.b32.xlu0 %v3639_v19, %s4173_s22  ;;  %v4563_v12 = vld [vmem:[%s5986_s0 + $0x128] sm:$0xff] }
  0x2a   :  { %630 = vrot.lane.b32.xlu1 %v4353_v20, %s4172_s21  ;;  %628 = vrot.lane.b32.xlu0 %v4358_v21, %s4172_s21 }
  0x2e   :  { %886 = vrot.lane.b32.xlu1 %v3642_v22, %s4174_s12  ;;  %884 = vrot.lane.b32.xlu0 %v3641_v23, %s4174_s12 }
  0x32   :  { %378 = vrot.lane.b32.xlu1 %v3642_v22, %s4173_s22  ;;  %376 = vrot.lane.b32.xlu0 %v3641_v23, %s4173_s22  ;;  %v3658_v22 = vld [vmem:[%s5986_s0 + $0x129] sm:$0xff]  ;;  %v3657_v23 = vld [vmem:[%s5986_s0 + $0x121] sm:$0xff] }
  0x36   :  { %634 = vrot.lane.b32.xlu1 %v4377_v24, %s4172_s21  ;;  %632 = vrot.lane.b32.xlu0 %v4382_v25, %s4172_s21 }
  0x3a   :  { %890 = vrot.lane.b32.xlu1 %v3644_v26, %s4174_s12  ;;  %888 = vrot.lane.b32.xlu0 %v3643_v27, %s4174_s12 }
  0x3e   :  { %382 = vrot.lane.b32.xlu1 %v3644_v26, %s4173_s22  ;;  %380 = vrot.lane.b32.xlu0 %v3643_v27, %s4173_s22 }
  0x42   :  { %638 = vrot.lane.b32.xlu1 %v4401_v28, %s4172_s21  ;;  %636 = vrot.lane.b32.xlu0 %v4406_v29, %s4172_s21 }
  0x46   :  { %894 = vrot.lane.b32.xlu1 %v3646_v30, %s4174_s12  ;;  %892 = vrot.lane.b32.xlu0 %v3645_v31, %s4174_s12 }
  0x4a   :  { %386 = vrot.lane.b32.xlu1 %v3646_v30, %s4173_s22  ;;  %384 = vrot.lane.b32.xlu0 %v3645_v31, %s4173_s22 }
  0x4e   :  { %642 = vrot.lane.b32.xlu1 %v4425_v32, %s4172_s21  ;;  %640 = vrot.lane.b32.xlu0 %v4430_v33, %s4172_s21 }
  0x52   :  { %898 = vrot.lane.b32.xlu1 %v3648_v34, %s4174_s12  ;;  %896 = vrot.lane.b32.xlu0 %v3647_v35, %s4174_s12 }
  0x56   :  { %390 = vrot.lane.b32.xlu1 %v3648_v34, %s4173_s22  ;;  %388 = vrot.lane.b32.xlu0 %v3647_v35, %s4173_s22 }
  0x5a   :  { %646 = vrot.lane.b32.xlu1 %v4449_v36, %s4172_s21  ;;  %644 = vrot.lane.b32.xlu0 %v4454_v37, %s4172_s21 }
  0x5e   :  { %902 = vrot.lane.b32.xlu1 %v3650_v38, %s4174_s12  ;;  %900 = vrot.lane.b32.xlu0 %v3649_v39, %s4174_s12 }
  0x62   :  { %394 = vrot.lane.b32.xlu1 %v3650_v38, %s4173_s22  ;;  %392 = vrot.lane.b32.xlu0 %v3649_v39, %s4173_s22  ;;  %v4597_v38 = vld [vmem:[%s5986_s0 + $0x140] sm:$0xff]  ;;  %v4602_v39 = vld [vmem:[%s5986_s0 + $0x138] sm:$0xff] }
  0x66   :  { %650 = vrot.lane.b32.xlu1 %v4473_v40, %s4172_s21  ;;  %648 = vrot.lane.b32.xlu0 %v4478_v41, %s4172_s21 }
  0x6a   :  { %906 = vrot.lane.b32.xlu1 %v3652_v42, %s4174_s12  ;;  %904 = vrot.lane.b32.xlu0 %v3651_v43, %s4174_s12 }
  0x6e   :  { %398 = vrot.lane.b32.xlu1 %v3652_v42, %s4173_s22  ;;  %396 = vrot.lane.b32.xlu0 %v3651_v43, %s4173_s22 }
  0x72   :  { %654 = vrot.lane.b32.xlu1 %v4497_v44, %s4172_s21  ;;  %652 = vrot.lane.b32.xlu0 %v4502_v45, %s4172_s21 }
  0x74   :  { %v617_v48 = vpop.permute.xlu1 %616  ;;  %v361_v49 = vpop.permute.xlu0 %360 }
  0x75   :  { %v1065_v54 = vsel %vm1064_vm0, %v39_v50, %v361_v49  ;;  %v3659_v49 = vld [vmem:[%s5986_s0 + $0x139] sm:$0xff] }
  0x76   :  { %910 = vrot.lane.b32.xlu1 %v3654_v46, %s4174_s12  ;;  %908 = vrot.lane.b32.xlu0 %v3653_v47, %s4174_s12  ;;  %v1130_v61 = vsel %vm1129_vm1, %v1065_v54, %v617_v48  ;;  %v3660_v48 = vld [vmem:[%s5986_s0 + $0x141] sm:$0xff] }
  0x78   :  { %v619_v52 = vpop.permute.xlu1 %618  ;;  %v363_v53 = vpop.permute.xlu0 %362 }
  0x79   :  { %v1066_v55 = vsel %vm1064_vm0, %v40_v51, %v363_v53 }
  0x7a   :  { %402 = vrot.lane.b32.xlu1 %v3654_v46, %s4173_s22  ;;  %400 = vrot.lane.b32.xlu0 %v3653_v47, %s4173_s22  ;;  %v1131_v59 = vsel %vm1129_vm1, %v1066_v55, %v619_v52 }
  0x7c   :  { %v875_v58 = vpop.permute.xlu1 %874  ;;  %v873_v60 = vpop.permute.xlu0 %872 }
  0x7d   :  { %v1196_v62 = vsel %vm1194_vm2, %v1131_v59, %v875_v58  ;;  %v1195_v63 = vsel %vm1194_vm2, %v1130_v61, %v873_v60  ;;  %v4631_v58 = vld [vmem:[%s5986_s0 + $0x158] sm:$0xff]  ;;  %v4636_v59 = vld [vmem:[%s5986_s0 + $0x150] sm:$0xff] }
  0x7e   :  { %658 = vrot.lane.b32.xlu1 %v4529_v56, %s4172_s21  ;;  %656 = vrot.lane.b32.xlu0 %v4534_v57, %s4172_s21 }
  0x7f   :  { %3914 = vmatprep.mubr.msk.f32.mxu0 %vm1272_vm3, %v1195_v63 }
  0x80   :  { %3915 = vmatmul.mubr.msk.f32.vlgmr.msra.gmra.mxu0 %vm1272_vm3, %v1196_v62  ;;  %v367_v4 = vpop.permute.xlu1 %366  ;;  %v365_v5 = vpop.permute.xlu0 %364 }
  0x81   :  { %v1068_v10 = vsel %vm1064_vm0, %v4266_v2, %v367_v4  ;;  %v1067_v11 = vsel %vm1064_vm0, %v4255_v0, %v365_v5 }
  0x82   :  { %914 = vrot.lane.b32.xlu1 %v3656_v1, %s4174_s12  ;;  %912 = vrot.lane.b32.xlu0 %v3655_v3, %s4174_s12 }
  0x84   :  { %v623_v8 = vpop.permute.xlu1 %622  ;;  %v621_v9 = vpop.permute.xlu0 %620 }
  0x85   :  { %v1133_v14 = vsel %vm1129_vm1, %v1068_v10, %v623_v8  ;;  %v1132_v15 = vsel %vm1129_vm1, %v1067_v11, %v621_v9 }
  0x86   :  { %406 = vrot.lane.b32.xlu1 %v3656_v1, %s4173_s22  ;;  %404 = vrot.lane.b32.xlu0 %v3655_v3, %s4173_s22  ;;  %v3662_v1 = vld [vmem:[%s5986_s0 + $0x159] sm:$0xff]  ;;  %v3661_v3 = vld [vmem:[%s5986_s0 + $0x151] sm:$0xff] }
  0x88   :  { %v879_v18 = vpop.permute.xlu1 %878  ;;  %v877_v19 = vpop.permute.xlu0 %876 }
  0x89   :  { %v1198_v2 = vsel %vm1194_vm2, %v1133_v14, %v879_v18  ;;  %v1197_v0 = vsel %vm1194_vm2, %v1132_v15, %v877_v19  ;;  %v4665_v14 = vld [vmem:[%s5986_s0 + $0x170] sm:$0xff]  ;;  %v4670_v15 = vld [vmem:[%s5986_s0 + $0x168] sm:$0xff] }
  0x8a   :  { %662 = vrot.lane.b32.xlu1 %v4563_v12, %s4172_s21  ;;  %660 = vrot.lane.b32.xlu0 %v4568_v13, %s4172_s21 }
  0x8b   :  { %3917 = vmatprep.mubr.msk.f32.mxu0 %vm1272_vm3, %v1197_v0 }
  0x8c   :  { %3918 = vmatmul.mubr.msk.f32.gmra.mxu0 %vm1272_vm3, %v1198_v2  ;;  %v371_v26 = vpop.permute.xlu1 %370  ;;  %v369_v27 = vpop.permute.xlu0 %368 }
  0x8d   :  { %v1070_v34 = vsel %vm1064_vm0, %v4287_v6, %v371_v26  ;;  %v1069_v35 = vsel %vm1064_vm0, %v4292_v7, %v369_v27 }
  0x8e   :  { %918 = vrot.lane.b32.xlu1 %v3658_v22, %s4174_s12  ;;  %916 = vrot.lane.b32.xlu0 %v3657_v23, %s4174_s12 }
  0x90   :  { %v627_v30 = vpop.permute.xlu1 %626  ;;  %v625_v31 = vpop.permute.xlu0 %624 }
  0x91   :  { %v1135_v42 = vsel %vm1129_vm1, %v1070_v34, %v627_v30  ;;  %v1134_v43 = vsel %vm1129_vm1, %v1069_v35, %v625_v31 }
  0x92   :  { %410 = vrot.lane.b32.xlu1 %v3658_v22, %s4173_s22  ;;  %408 = vrot.lane.b32.xlu0 %v3657_v23, %s4173_s22  ;;  %v3664_v22 = vld [vmem:[%s5986_s0 + $0x171] sm:$0xff]  ;;  %v3663_v23 = vld [vmem:[%s5986_s0 + $0x169] sm:$0xff] }
  0x94   :  { %v883_v46 = vpop.permute.xlu1 %882  ;;  %v881_v47 = vpop.permute.xlu0 %880 }
  0x95   :  { %v1200_v6 = vsel %vm1194_vm2, %v1135_v42, %v883_v46  ;;  %v1199_v7 = vsel %vm1194_vm2, %v1134_v43, %v881_v47  ;;  %v3602_v42 = vld [vmem:[%s5986_s0 + $0x188] sm:$0xff]  ;;  %v3601_v43 = vld [vmem:[%s5986_s0 + $0x180] sm:$0xff] }
  0x96   :  { %666 = vrot.lane.b32.xlu1 %v4597_v38, %s4172_s21  ;;  %664 = vrot.lane.b32.xlu0 %v4602_v39, %s4172_s21 }
  0x97   :  { %3920 = vmatprep.mubr.msk.f32.mxu0 %vm1272_vm3, %v1199_v7 }
  0x98   :  { %3921 = vmatmul.mubr.msk.f32.gmra.mxu0 %vm1272_vm3, %v1200_v6  ;;  %v375_v50 = vpop.permute.xlu1 %374  ;;  %v373_v51 = vpop.permute.xlu0 %372 }
  0x99   :  { %v1072_v54 = vsel %vm1064_vm0, %v4329_v16, %v375_v50  ;;  %v1071_v55 = vsel %vm1064_vm0, %v4334_v17, %v373_v51 }
  0x9a   :  { %922 = vrot.lane.b32.xlu1 %v3660_v48, %s4174_s12  ;;  %920 = vrot.lane.b32.xlu0 %v3659_v49, %s4174_s12 }
  0x9c   :  { %v631_v52 = vpop.permute.xlu1 %630  ;;  %v629_v53 = vpop.permute.xlu0 %628 }
  0x9d   :  { %v1137_v60 = vsel %vm1129_vm1, %v1072_v54, %v631_v52  ;;  %v1136_v61 = vsel %vm1129_vm1, %v1071_v55, %v629_v53  ;;  %v136_v52 = vld [vmem:[%s5986_s0 + $0x1a1] sm:$0xff]  ;;  %v135_v53 = vld [vmem:[%s5986_s0 + $0x199] sm:$0xff] }
  0x9e   :  { %414 = vrot.lane.b32.xlu1 %v3660_v48, %s4173_s22  ;;  %412 = vrot.lane.b32.xlu0 %v3659_v49, %s4173_s22  ;;  %v3665_v49 = vld [vmem:[%s5986_s0 + $0x181] sm:$0xff] }
  0xa0   :  { %v887_v62 = vpop.permute.xlu1 %886  ;;  %v885_v63 = vpop.permute.xlu0 %884 }
  0xa1   :  { %v1202_v16 = vsel %vm1194_vm2, %v1137_v60, %v887_v62  ;;  %v1201_v17 = vsel %vm1194_vm2, %v1136_v61, %v885_v63  ;;  %v4733_v62 = vld [vmem:[%s5986_s0 + $0x1b8] sm:$0xff]  ;;  %v4738_v63 = vld [vmem:[%s5986_s0 + $0x1b0] sm:$0xff] }
  0xa2   :  { %670 = vrot.lane.b32.xlu1 %v4631_v58, %s4172_s21  ;;  %668 = vrot.lane.b32.xlu0 %v4636_v59, %s4172_s21 }
  0xa3   :  { %3923 = vmatprep.mubr.msk.f32.mxu0 %vm1272_vm3, %v1201_v17 }
  0xa4   :  { %3924 = vmatmul.mubr.msk.f32.gmra.mxu0 %vm1272_vm3, %v1202_v16  ;;  %v379_v4 = vpop.permute.xlu1 %378  ;;  %v377_v5 = vpop.permute.xlu0 %376 }
  0xa5   :  { %v1074_v10 = vsel %vm1064_vm0, %v4353_v20, %v379_v4  ;;  %v1073_v11 = vsel %vm1064_vm0, %v4358_v21, %v377_v5  ;;  %v3668_v4 = vld [vmem:[%s5986_s0 + $0x1b9] sm:$0xff]  ;;  %v3667_v5 = vld [vmem:[%s5986_s0 + $0x1b1] sm:$0xff] }
  0xa6   :  { %926 = vrot.lane.b32.xlu1 %v3662_v1, %s4174_s12  ;;  %924 = vrot.lane.b32.xlu0 %v3661_v3, %s4174_s12 }
  0xa8   :  { %v635_v8 = vpop.permute.xlu1 %634  ;;  %v633_v9 = vpop.permute.xlu0 %632 }
  0xa9   :  { %v1139_v18 = vsel %vm1129_vm1, %v1074_v10, %v635_v8  ;;  %v1138_v19 = vsel %vm1129_vm1, %v1073_v11, %v633_v9 }
  0xaa   :  { %418 = vrot.lane.b32.xlu1 %v3662_v1, %s4173_s22  ;;  %416 = vrot.lane.b32.xlu0 %v3661_v3, %s4173_s22 }
  0xac   :  { %v891_v2 = vpop.permute.xlu1 %890  ;;  %v889_v0 = vpop.permute.xlu0 %888 }
  0xad   :  { %v1204_v20 = vsel %vm1194_vm2, %v1139_v18, %v891_v2  ;;  %v1203_v21 = vsel %vm1194_vm2, %v1138_v19, %v889_v0  ;;  %v4767_v2 = vld [vmem:[%s5986_s0 + $0x1d0] sm:$0xff]  ;;  %v4772_v0 = vld [vmem:[%s5986_s0 + $0x1c8] sm:$0xff] }
  0xae   :  { %674 = vrot.lane.b32.xlu1 %v4665_v14, %s4172_s21  ;;  %672 = vrot.lane.b32.xlu0 %v4670_v15, %s4172_s21 }
  0xaf   :  { %3926 = vmatprep.mubr.msk.f32.mxu0 %vm1272_vm3, %v1203_v21 }
  0xb0   :  { %3927 = vmatmul.mubr.msk.f32.gmra.mxu0 %vm1272_vm3, %v1204_v20  ;;  %v383_v26 = vpop.permute.xlu1 %382  ;;  %v381_v27 = vpop.permute.xlu0 %380 }
  0xb1   :  { %v1076_v34 = vsel %vm1064_vm0, %v4377_v24, %v383_v26  ;;  %v1075_v35 = vsel %vm1064_vm0, %v4382_v25, %v381_v27  ;;  %v3666_v25 = vld [vmem:[%s5986_s0 + $0x189] sm:$0xff]  ;;  %v3670_v26 = vld [vmem:[%s5986_s0 + $0x1d1] sm:$0xff] }
  0xb2   :  { %930 = vrot.lane.b32.xlu1 %v3664_v22, %s4174_s12  ;;  %928 = vrot.lane.b32.xlu0 %v3663_v23, %s4174_s12  ;;  %v3669_v27 = vld [vmem:[%s5986_s0 + $0x1c9] sm:$0xff] }
  0xb4   :  { %v639_v30 = vpop.permute.xlu1 %638  ;;  %v637_v31 = vpop.permute.xlu0 %636 }
  0xb5   :  { %v1141_v46 = vsel %vm1129_vm1, %v1076_v34, %v639_v30  ;;  %v1140_v47 = vsel %vm1129_vm1, %v1075_v35, %v637_v31 }
  0xb6   :  { %422 = vrot.lane.b32.xlu1 %v3664_v22, %s4173_s22  ;;  %420 = vrot.lane.b32.xlu0 %v3663_v23, %s4173_s22 }
  0xb8   :  { %v895_v6 = vpop.permute.xlu1 %894  ;;  %v893_v7 = vpop.permute.xlu0 %892 }
  0xb9   :  { %v1206_v48 = vsel %vm1194_vm2, %v1141_v46, %v895_v6  ;;  %v1205_v24 = vsel %vm1194_vm2, %v1140_v47, %v893_v7  ;;  %v4801_v46 = vld [vmem:[%s5986_s0 + $0x1e8] sm:$0xff]  ;;  %v4806_v47 = vld [vmem:[%s5986_s0 + $0x1e0] sm:$0xff] }
  0xba   :  { %678 = vrot.lane.b32.xlu1 %v3602_v42, %s4172_s21  ;;  %676 = vrot.lane.b32.xlu0 %v3601_v43, %s4172_s21 }
  0xbb   :  { %3929 = vmatprep.mubr.msk.f32.mxu0 %vm1272_vm3, %v1205_v24 }
  0xbc   :  { %3930 = vmatmul.mubr.msk.f32.gmra.mxu0 %vm1272_vm3, %v1206_v48  ;;  %v387_v50 = vpop.permute.xlu1 %386  ;;  %v385_v51 = vpop.permute.xlu0 %384 }
  0xbd   :  { %v1078_v60 = vsel %vm1064_vm0, %v4401_v28, %v387_v50  ;;  %v1077_v61 = vsel %vm1064_vm0, %v4406_v29, %v385_v51  ;;  %v4175_v50 = vmov 0.0  }
  0xbe   :  { %934 = vrot.lane.b32.xlu1 %v3666_v25, %s4174_s12  ;;  %932 = vrot.lane.b32.xlu0 %v3665_v49, %s4174_s12  ;;  %v3672_v25 = vld [vmem:[%s5986_s0 + $0x1e9] sm:$0xff]  ;;  %v3671_v49 = vld [vmem:[%s5986_s0 + $0x1e1] sm:$0xff]  ;;  %2154 = vst.msk [vmem:[#allocation3] sm:$0xff] %vm1914_vm4, %v4175_v50  ;;  %2155 = vst.msk [vmem:[#allocation3 + $0x8] sm:$0xff] %vm1914_vm4, %v4175_v50 }
  0xbf   :  { %2156 = vst.msk [vmem:[#allocation3 + $0xa0] sm:$0xff] %vm1914_vm4, %v4175_v50  ;;  %2157 = vst.msk [vmem:[#allocation3 + $0xa8] sm:$0xff] %vm1914_vm4, %v4175_v50 }
  0xc0   :  { %v643_v54 = vpop.permute.xlu1 %642  ;;  %v641_v55 = vpop.permute.xlu0 %640  ;;  %2159 = vst.msk [vmem:[#allocation3 + $0x90] sm:$0xff] %vm1914_vm4, %v4175_v50  ;;  %2160 = vst.msk [vmem:[#allocation3 + $0x98] sm:$0xff] %vm1914_vm4, %v4175_v50 }
  0xc1   :  { %v1143_v16 = vsel %vm1129_vm1, %v1078_v60, %v643_v54  ;;  %v1142_v17 = vsel %vm1129_vm1, %v1077_v61, %v641_v55  ;;  %2161 = vst.msk [vmem:[#allocation3 + $0x130] sm:$0xff] %vm1914_vm4, %v4175_v50  ;;  %2162 = vst.msk [vmem:[#allocation3 + $0x138] sm:$0xff] %vm1914_vm4, %v4175_v50  ;;  %v4931_v61 = vld [vmem:[%s5986_s0 + $0x200] sm:$0xff] }
  0xc2   :  { %426 = vrot.lane.b32.xlu1 %v136_v52, %s4173_s22  ;;  %424 = vrot.lane.b32.xlu0 %v135_v53, %s4173_s22  ;;  %2184 = vst.msk [vmem:[#allocation3 + $0x9] sm:$0x1] %vm2163_vm5, %v4175_v50  ;;  %2186 = vst.msk [vmem:[#allocation3 + $0x29] sm:$0x1] %vm2163_vm5, %v4175_v50 }
  0xc3   :  { %2164 = vst.msk [vmem:[#allocation3] sm:$0x1] %vm2163_vm5, %v4175_v50  ;;  %2165 = vst.msk [vmem:[#allocation3 + $0x10] sm:$0x1] %vm2163_vm5, %v4175_v50 }
  0xc4   :  { %v899_v1 = vpop.permute.xlu1 %898  ;;  %v897_v3 = vpop.permute.xlu0 %896  ;;  %2166 = vst.msk [vmem:[#allocation3 + $0x20] sm:$0x1] %vm2163_vm5, %v4175_v50  ;;  %2167 = vst.msk [vmem:[#allocation3 + $0x30] sm:$0x1] %vm2163_vm5, %v4175_v50 }
  0xc5   :  { %v1208_v28 = vsel %vm1194_vm2, %v1143_v16, %v899_v1  ;;  %v1207_v29 = vsel %vm1194_vm2, %v1142_v17, %v897_v3  ;;  %2168 = vst.msk [vmem:[#allocation3 + $0x40] sm:$0x1] %vm2163_vm5, %v4175_v50  ;;  %2169 = vst.msk [vmem:[#allocation3 + $0x50] sm:$0x1] %vm2163_vm5, %v4175_v50  ;;  %v4936_v16 = vld [vmem:[%s5986_s0 + $0x1f8] sm:$0xff] }
  0xc6   :  { %682 = vrot.lane.b32.xlu1 %v4733_v62, %s4172_s21  ;;  %680 = vrot.lane.b32.xlu0 %v4738_v63, %s4172_s21  ;;  %2170 = vst.msk [vmem:[#allocation3 + $0x60] sm:$0x1] %vm2163_vm5, %v4175_v50  ;;  %2171 = vst.msk [vmem:[#allocation3 + $0x70] sm:$0x1] %vm2163_vm5, %v4175_v50 }
  0xc7   :  { %3932 = vmatprep.mubr.msk.f32.mxu0 %vm1272_vm3, %v1207_v29  ;;  %2172 = vst.msk [vmem:[#allocation3 + $0x80] sm:$0x1] %vm2163_vm5, %v4175_v50  ;;  %2173 = vst.msk [vmem:[#allocation3 + $0x90] sm:$0x1] %vm2163_vm5, %v4175_v50  ;;  %v3674_v29 = vld [vmem:[%s5986_s0 + $0x201] sm:$0xff] }
  0xc8   :  { %3933 = vmatmul.mubr.msk.f32.gmra.mxu0 %vm1272_vm3, %v1208_v28  ;;  %v391_v8 = vpop.permute.xlu1 %390  ;;  %v389_v9 = vpop.permute.xlu0 %388  ;;  %2174 = vst.msk [vmem:[#allocation3 + $0xa0] sm:$0x1] %vm2163_vm5, %v4175_v50  ;;  %2175 = vst.msk [vmem:[#allocation3 + $0xb0] sm:$0x1] %vm2163_vm5, %v4175_v50 }
  0xc9   :  { %v1080_v18 = vsel %vm1064_vm0, %v4425_v32, %v391_v8  ;;  %v1079_v19 = vsel %vm1064_vm0, %v4430_v33, %v389_v9  ;;  %2176 = vst.msk [vmem:[#allocation3 + $0xc0] sm:$0x1] %vm2163_vm5, %v4175_v50  ;;  %2177 = vst.msk [vmem:[#allocation3 + $0xd0] sm:$0x1] %vm2163_vm5, %v4175_v50 }
  0xca   :  { %938 = vrot.lane.b32.xlu1 %v3668_v4, %s4174_s12  ;;  %936 = vrot.lane.b32.xlu0 %v3667_v5, %s4174_s12  ;;  %2178 = vst.msk [vmem:[#allocation3 + $0xe0] sm:$0x1] %vm2163_vm5, %v4175_v50  ;;  %2179 = vst.msk [vmem:[#allocation3 + $0xf0] sm:$0x1] %vm2163_vm5, %v4175_v50 }
  0xcb   :  { %2180 = vst.msk [vmem:[#allocation3 + $0x100] sm:$0x1] %vm2163_vm5, %v4175_v50  ;;  %2181 = vst.msk [vmem:[#allocation3 + $0x110] sm:$0x1] %vm2163_vm5, %v4175_v50 }
  0xcc   :  { %v647_v10 = vpop.permute.xlu1 %646  ;;  %v645_v11 = vpop.permute.xlu0 %644  ;;  %2182 = vst.msk [vmem:[#allocation3 + $0x120] sm:$0x1] %vm2163_vm5, %v4175_v50  ;;  %2183 = vst.msk [vmem:[#allocation3 + $0x130] sm:$0x1] %vm2163_vm5, %v4175_v50 }
  0xcd   :  { %v1145_v20 = vsel %vm1129_vm1, %v1080_v18, %v647_v10  ;;  %v1144_v21 = vsel %vm1129_vm1, %v1079_v19, %v645_v11  ;;  %2185 = vst.msk [vmem:[#allocation3 + $0x19] sm:$0x1] %vm2163_vm5, %v4175_v50  ;;  %2187 = vst.msk [vmem:[#allocation3 + $0x39] sm:$0x1] %vm2163_vm5, %v4175_v50  ;;  %v4965_v19 = vld [vmem:[%s5986_s0 + $0x218] sm:$0xff] }
  0xce   :  { %430 = vrot.lane.b32.xlu1 %v3668_v4, %s4173_s22  ;;  %428 = vrot.lane.b32.xlu0 %v3667_v5, %s4173_s22  ;;  %2188 = vst.msk [vmem:[#allocation3 + $0x49] sm:$0x1] %vm2163_vm5, %v4175_v50  ;;  %2189 = vst.msk [vmem:[#allocation3 + $0x59] sm:$0x1] %vm2163_vm5, %v4175_v50  ;;  %v3673_v4 = vld [vmem:[%s5986_s0 + $0x1f9] sm:$0xff] }
  0xcf   :  { %2190 = vst.msk [vmem:[#allocation3 + $0x69] sm:$0x1] %vm2163_vm5, %v4175_v50  ;;  %2191 = vst.msk [vmem:[#allocation3 + $0x79] sm:$0x1] %vm2163_vm5, %v4175_v50 }
  0xd0   :  { %v903_v22 = vpop.permute.xlu1 %902  ;;  %v901_v23 = vpop.permute.xlu0 %900  ;;  %2192 = vst.msk [vmem:[#allocation3 + $0x89] sm:$0x1] %vm2163_vm5, %v4175_v50  ;;  %2193 = vst.msk [vmem:[#allocation3 + $0x99] sm:$0x1] %vm2163_vm5, %v4175_v50 }
  0xd1   :  { %v1210_v32 = vsel %vm1194_vm2, %v1145_v20, %v903_v22  ;;  %v1209_v33 = vsel %vm1194_vm2, %v1144_v21, %v901_v23  ;;  %2194 = vst.msk [vmem:[#allocation3 + $0xa9] sm:$0x1] %vm2163_vm5, %v4175_v50  ;;  %2195 = vst.msk [vmem:[#allocation3 + $0xb9] sm:$0x1] %vm2163_vm5, %v4175_v50  ;;  %v4970_v20 = vld [vmem:[%s5986_s0 + $0x210] sm:$0xff] }
  0xd2   :  { %686 = vrot.lane.b32.xlu1 %v4767_v2, %s4172_s21  ;;  %684 = vrot.lane.b32.xlu0 %v4772_v0, %s4172_s21  ;;  %2196 = vst.msk [vmem:[#allocation3 + $0xc9] sm:$0x1] %vm2163_vm5, %v4175_v50  ;;  %2197 = vst.msk [vmem:[#allocation3 + $0xd9] sm:$0x1] %vm2163_vm5, %v4175_v50 }
  0xd3   :  { %3935 = vmatprep.mubr.msk.f32.mxu0 %vm1272_vm3, %v1209_v33  ;;  %2198 = vst.msk [vmem:[#allocation3 + $0xe9] sm:$0x1] %vm2163_vm5, %v4175_v50  ;;  %2199 = vst.msk [vmem:[#allocation3 + $0xf9] sm:$0x1] %vm2163_vm5, %v4175_v50  ;;  %v3676_v33 = vld [vmem:[%s5986_s0 + $0x219] sm:$0xff] }
  0xd4   :  { %3936 = vmatmul.mubr.msk.f32.gmra.mxu0 %vm1272_vm3, %v1210_v32  ;;  %v395_v30 = vpop.permute.xlu1 %394  ;;  %v393_v31 = vpop.permute.xlu0 %392  ;;  %2200 = vst.msk [vmem:[#allocation3 + $0x109] sm:$0x1] %vm2163_vm5, %v4175_v50  ;;  %2201 = vst.msk [vmem:[#allocation3 + $0x119] sm:$0x1] %vm2163_vm5, %v4175_v50 }
  0xd5   :  { %v1082_v42 = vsel %vm1064_vm0, %v4449_v36, %v395_v30  ;;  %v1081_v43 = vsel %vm1064_vm0, %v4454_v37, %v393_v31  ;;  %2202 = vst.msk [vmem:[#allocation3 + $0x129] sm:$0x1] %vm2163_vm5, %v4175_v50  ;;  %2203 = vst.msk [vmem:[#allocation3 + $0x139] sm:$0x1] %vm2163_vm5, %v4175_v50  ;;  %vm2940_vm5 = vcmask 785408  }
  0xd6   :  { %942 = vrot.lane.b32.xlu1 %v3670_v26, %s4174_s12  ;;  %940 = vrot.lane.b32.xlu0 %v3669_v27, %s4174_s12 }
  0xd8   :  { %v651_v34 = vpop.permute.xlu1 %650  ;;  %v649_v35 = vpop.permute.xlu0 %648 }
  0xd9   :  { %v1147_v6 = vsel %vm1129_vm1, %v1082_v42, %v651_v34  ;;  %v1146_v7 = vsel %vm1129_vm1, %v1081_v43, %v649_v35  ;;  %v4999_v43 = vld [vmem:[%s5986_s0 + $0x230] sm:$0xff] }
  0xda   :  { %434 = vrot.lane.b32.xlu1 %v3670_v26, %s4173_s22  ;;  %432 = vrot.lane.b32.xlu0 %v3669_v27, %s4173_s22  ;;  %v3675_v26 = vld [vmem:[%s5986_s0 + $0x211] sm:$0xff] }
  0xdc   :  { %v907_v48 = vpop.permute.xlu1 %906  ;;  %v905_v24 = vpop.permute.xlu0 %904 }
  0xdd   :  { %v1212_v36 = vsel %vm1194_vm2, %v1147_v6, %v907_v48  ;;  %v1211_v37 = vsel %vm1194_vm2, %v1146_v7, %v905_v24  ;;  %v5004_v6 = vld [vmem:[%s5986_s0 + $0x228] sm:$0xff] }
  0xde   :  { %690 = vrot.lane.b32.xlu1 %v4801_v46, %s4172_s21  ;;  %688 = vrot.lane.b32.xlu0 %v4806_v47, %s4172_s21 }
  0xdf   :  { %3938 = vmatprep.mubr.msk.f32.mxu0 %vm1272_vm3, %v1211_v37  ;;  %v3678_v37 = vld [vmem:[%s5986_s0 + $0x231] sm:$0xff] }
  0xe0   :  { %3939 = vmatmul.mubr.msk.f32.gmra.mxu0 %vm1272_vm3, %v1212_v36  ;;  %v399_v51 = vpop.permute.xlu1 %398  ;;  %v397_v52 = vpop.permute.xlu0 %396 }
  0xe1   :  { %v1084_v55 = vsel %vm1064_vm0, %v4473_v40, %v399_v51  ;;  %v1083_v60 = vsel %vm1064_vm0, %v4478_v41, %v397_v52 }
  0xe2   :  { %946 = vrot.lane.b32.xlu1 %v3672_v25, %s4174_s12  ;;  %944 = vrot.lane.b32.xlu0 %v3671_v49, %s4174_s12 }
  0xe4   :  { %v655_v53 = vpop.permute.xlu1 %654  ;;  %v653_v54 = vpop.permute.xlu0 %652 }
  0xe5   :  { %v1149_v17 = vsel %vm1129_vm1, %v1084_v55, %v655_v53  ;;  %v1148_v1 = vsel %vm1129_vm1, %v1083_v60, %v653_v54  ;;  %v5033_v60 = vld [vmem:[%s5986_s0 + $0x248] sm:$0xff] }
  0xe6   :  { %438 = vrot.lane.b32.xlu1 %v3672_v25, %s4173_s22  ;;  %436 = vrot.lane.b32.xlu0 %v3671_v49, %s4173_s22  ;;  %v3677_v25 = vld [vmem:[%s5986_s0 + $0x229] sm:$0xff] }
  0xe8   :  { %v911_v3 = vpop.permute.xlu1 %910  ;;  %v909_v28 = vpop.permute.xlu0 %908 }
  0xe9   :  { %v1214_v40 = vsel %vm1194_vm2, %v1149_v17, %v911_v3  ;;  %v1213_v41 = vsel %vm1194_vm2, %v1148_v1, %v909_v28  ;;  %v5038_v17 = vld [vmem:[%s5986_s0 + $0x240] sm:$0xff] }
  0xea   :  { %694 = vrot.lane.b32.xlu1 %v4931_v61, %s4172_s21  ;;  %692 = vrot.lane.b32.xlu0 %v4936_v16, %s4172_s21 }
  0xeb   :  { %3941 = vmatprep.mubr.msk.f32.mxu0 %vm1272_vm3, %v1213_v41  ;;  %v3680_v41 = vld [vmem:[%s5986_s0 + $0x249] sm:$0xff] }
  0xec   :  { %3942 = vmatmul.mubr.msk.f32.gmra.mxu0 %vm1272_vm3, %v1214_v40  ;;  %v403_v5 = vpop.permute.xlu1 %402  ;;  %v401_v8 = vpop.permute.xlu0 %400 }
  0xed   :  { %v1086_v11 = vsel %vm1064_vm0, %v4497_v44, %v403_v5  ;;  %v1085_v18 = vsel %vm1064_vm0, %v4502_v45, %v401_v8 }
  0xee   :  { %950 = vrot.lane.b32.xlu1 %v3674_v29, %s4174_s12  ;;  %948 = vrot.lane.b32.xlu0 %v3673_v4, %s4174_s12 }
  0xf0   :  { %v659_v9 = vpop.permute.xlu1 %658  ;;  %v657_v10 = vpop.permute.xlu0 %656 }
  0xf1   :  { %v1151_v21 = vsel %vm1129_vm1, %v1086_v11, %v659_v9  ;;  %v1150_v22 = vsel %vm1129_vm1, %v1085_v18, %v657_v10  ;;  %v5067_v18 = vld [vmem:[%s5986_s0 + $0x260] sm:$0xff] }
  0xf2   :  { %442 = vrot.lane.b32.xlu1 %v3674_v29, %s4173_s22  ;;  %440 = vrot.lane.b32.xlu0 %v3673_v4, %s4173_s22  ;;  %v3679_v29 = vld [vmem:[%s5986_s0 + $0x241] sm:$0xff] }
  0xf4   :  { %v915_v23 = vpop.permute.xlu1 %914  ;;  %v913_v32 = vpop.permute.xlu0 %912 }
  0xf5   :  { %v1216_v44 = vsel %vm1194_vm2, %v1151_v21, %v915_v23  ;;  %v1215_v45 = vsel %vm1194_vm2, %v1150_v22, %v913_v32  ;;  %v5072_v21 = vld [vmem:[%s5986_s0 + $0x258] sm:$0xff] }
  0xf6   :  { %698 = vrot.lane.b32.xlu1 %v4965_v19, %s4172_s21  ;;  %696 = vrot.lane.b32.xlu0 %v4970_v20, %s4172_s21 }
  0xf7   :  { %3944 = vmatprep.mubr.msk.f32.mxu0 %vm1272_vm3, %v1215_v45  ;;  %v3682_v45 = vld [vmem:[%s5986_s0 + $0x261] sm:$0xff] }
  0xf8   :  { %3945 = vmatmul.mubr.msk.f32.gmra.mxu0 %vm1272_vm3, %v1216_v44  ;;  %v407_v27 = vpop.permute.xlu1 %406  ;;  %v405_v30 = vpop.permute.xlu0 %404 }
  0xf9   :  { %v1088_v35 = vsel %vm1064_vm0, %v4529_v56, %v407_v27  ;;  %v1087_v42 = vsel %vm1064_vm0, %v4534_v57, %v405_v30 }
  0xfa   :  { %954 = vrot.lane.b32.xlu1 %v3676_v33, %s4174_s12  ;;  %952 = vrot.lane.b32.xlu0 %v3675_v26, %s4174_s12 }
  0xfc   :  { %v663_v31 = vpop.permute.xlu1 %662  ;;  %v661_v34 = vpop.permute.xlu0 %660 }
  0xfd   :  { %v1153_v7 = vsel %vm1129_vm1, %v1088_v35, %v663_v31  ;;  %v1152_v48 = vsel %vm1129_vm1, %v1087_v42, %v661_v34  ;;  %v5101_v42 = vld [vmem:[%s5986_s0 + $0x278] sm:$0xff] }
  0xfe   :  { %446 = vrot.lane.b32.xlu1 %v3676_v33, %s4173_s22  ;;  %444 = vrot.lane.b32.xlu0 %v3675_v26, %s4173_s22  ;;  %v3681_v33 = vld [vmem:[%s5986_s0 + $0x259] sm:$0xff] }
 0x100   :  { %v919_v24 = vpop.permute.xlu1 %918  ;;  %v917_v36 = vpop.permute.xlu0 %916 }
 0x101   :  { %v1218_v56 = vsel %vm1194_vm2, %v1153_v7, %v919_v24  ;;  %v1217_v57 = vsel %vm1194_vm2, %v1152_v48, %v917_v36  ;;  %v5106_v7 = vld [vmem:[%s5986_s0 + $0x270] sm:$0xff] }
 0x102   :  { %702 = vrot.lane.b32.xlu1 %v4999_v43, %s4172_s21  ;;  %700 = vrot.lane.b32.xlu0 %v5004_v6, %s4172_s21 }
 0x103   :  { %3947 = vmatprep.mubr.msk.f32.mxu0 %vm1272_vm3, %v1217_v57  ;;  %v3684_v57 = vld [vmem:[%s5986_s0 + $0x279] sm:$0xff] }
 0x104   :  { %3948 = vmatmul.mubr.msk.f32.gmra.mxu0 %vm1272_vm3, %v1218_v56  ;;  %v411_v49 = vpop.permute.xlu1 %410  ;;  %v409_v51 = vpop.permute.xlu0 %408 }
 0x105   :  { %v1090_v54 = vsel %vm1064_vm0, %v4563_v12, %v411_v49  ;;  %v1089_v55 = vsel %vm1064_vm0, %v4568_v13, %v409_v51 }
 0x106   :  { %958 = vrot.lane.b32.xlu1 %v3678_v37, %s4174_s12  ;;  %956 = vrot.lane.b32.xlu0 %v3677_v25, %s4174_s12 }
 0x108   :  { %v667_v52 = vpop.permute.xlu1 %666  ;;  %v665_v53 = vpop.permute.xlu0 %664 }
 0x109   :  { %v1155_v1 = vsel %vm1129_vm1, %v1090_v54, %v667_v52  ;;  %v1154_v3 = vsel %vm1129_vm1, %v1089_v55, %v665_v53  ;;  %v5135_v55 = vld [vmem:[%s5986_s0 + $0x290] sm:$0xff] }
 0x10a   :  { %450 = vrot.lane.b32.xlu1 %v3678_v37, %s4173_s22  ;;  %448 = vrot.lane.b32.xlu0 %v3677_v25, %s4173_s22  ;;  %v3683_v37 = vld [vmem:[%s5986_s0 + $0x271] sm:$0xff] }
 0x10c   :  { %v923_v28 = vpop.permute.xlu1 %922  ;;  %v921_v40 = vpop.permute.xlu0 %920 }
 0x10d   :  { %v1220_v12 = vsel %vm1194_vm2, %v1155_v1, %v923_v28  ;;  %v1219_v13 = vsel %vm1194_vm2, %v1154_v3, %v921_v40  ;;  %v5140_v1 = vld [vmem:[%s5986_s0 + $0x288] sm:$0xff] }
 0x10e   :  { %706 = vrot.lane.b32.xlu1 %v5033_v60, %s4172_s21  ;;  %704 = vrot.lane.b32.xlu0 %v5038_v17, %s4172_s21 }
 0x10f   :  { %3950 = vmatprep.mubr.msk.f32.mxu0 %vm1272_vm3, %v1219_v13  ;;  %v3686_v13 = vld [vmem:[%s5986_s0 + $0x291] sm:$0xff] }
 0x110   :  { %3951 = vmatmul.mubr.msk.f32.gmra.mxu0 %vm1272_vm3, %v1220_v12  ;;  %v415_v4 = vpop.permute.xlu1 %414  ;;  %v413_v5 = vpop.permute.xlu0 %412 }
 0x111   :  { %v1092_v10 = vsel %vm1064_vm0, %v4597_v38, %v415_v4  ;;  %v1091_v11 = vsel %vm1064_vm0, %v4602_v39, %v413_v5  ;;  %v72_v5 = vld [vmem:[%s5986_s0 + $0x1a0] sm:$0xff] }
 0x112   :  { %962 = vrot.lane.b32.xlu1 %v3680_v41, %s4174_s12  ;;  %960 = vrot.lane.b32.xlu0 %v3679_v29, %s4174_s12 }
 0x114   :  { %v671_v8 = vpop.permute.xlu1 %670  ;;  %v669_v9 = vpop.permute.xlu0 %668 }
 0x115   :  { %v1157_v22 = vsel %vm1129_vm1, %v1092_v10, %v671_v8  ;;  %v1156_v23 = vsel %vm1129_vm1, %v1091_v11, %v669_v9  ;;  %v71_v8 = vld [vmem:[%s5986_s0 + $0x198] sm:$0xff] }
 0x116   :  { %454 = vrot.lane.b32.xlu1 %v3680_v41, %s4173_s22  ;;  %452 = vrot.lane.b32.xlu0 %v3679_v29, %s4173_s22  ;;  %v3685_v41 = vld [vmem:[%s5986_s0 + $0x289] sm:$0xff] }
 0x118   :  { %v927_v32 = vpop.permute.xlu1 %926  ;;  %v925_v44 = vpop.permute.xlu0 %924 }
 0x119   :  { %v1222_v38 = vsel %vm1194_vm2, %v1157_v22, %v927_v32  ;;  %v1221_v39 = vsel %vm1194_vm2, %v1156_v23, %v925_v44  ;;  %v5173_v23 = vld [vmem:[%s5986_s0 + $0x2a8] sm:$0xff]  ;;  %v5178_v32 = vld [vmem:[%s5986_s0 + $0x2a0] sm:$0xff] }
 0x11a   :  { %710 = vrot.lane.b32.xlu1 %v5067_v18, %s4172_s21  ;;  %708 = vrot.lane.b32.xlu0 %v5072_v21, %s4172_s21 }
 0x11b   :  { %3953 = vmatprep.mubr.msk.f32.mxu0 %vm1272_vm3, %v1221_v39 }
 0x11c   :  { %3954 = vmatmul.mubr.msk.f32.gmra.mxu0 %vm1272_vm3, %v1222_v38  ;;  %v419_v26 = vpop.permute.xlu1 %418  ;;  %v417_v27 = vpop.permute.xlu0 %416 }
 0x11d   :  { %v1094_v34 = vsel %vm1064_vm0, %v4631_v58, %v419_v26  ;;  %v1093_v35 = vsel %vm1064_vm0, %v4636_v59, %v417_v27  ;;  %v5191_v27 = vld [vmem:[%s5988_s2] ss:$0 sm:$0xff] }
 0x11e   :  { %966 = vrot.lane.b32.xlu1 %v3682_v45, %s4174_s12  ;;  %964 = vrot.lane.b32.xlu0 %v3681_v33, %s4174_s12 }
 0x120   :  { %v675_v30 = vpop.permute.xlu1 %674  ;;  %v673_v31 = vpop.permute.xlu0 %672 }
 0x121   :  { %v1159_v48 = vsel %vm1129_vm1, %v1094_v34, %v675_v30  ;;  %v1158_v24 = vsel %vm1129_vm1, %v1093_v35, %v673_v31  ;;  %v3688_v30 = vld [vmem:[%s5986_s0 + $0x2a9] sm:$0xff]  ;;  %v3687_v31 = vld [vmem:[%s5986_s0 + $0x2a1] sm:$0xff] }
 0x122   :  { %458 = vrot.lane.b32.xlu1 %v3682_v45, %s4173_s22  ;;  %456 = vrot.lane.b32.xlu0 %v3681_v33, %s4173_s22 }
 0x124   :  { %v931_v36 = vpop.permute.xlu1 %930  ;;  %v929_v56 = vpop.permute.xlu0 %928 }
 0x125   :  { %v1224_v58 = vsel %vm1194_vm2, %v1159_v48, %v931_v36  ;;  %v1223_v59 = vsel %vm1194_vm2, %v1158_v24, %v929_v56 }
 0x126   :  { %714 = vrot.lane.b32.xlu1 %v5101_v42, %s4172_s21  ;;  %712 = vrot.lane.b32.xlu0 %v5106_v7, %s4172_s21 }
 0x127   :  { %3956 = vmatprep.mubr.msk.f32.mxu0 %vm1272_vm3, %v1223_v59 }
 0x128   :  { %3957 = vmatmul.mubr.msk.f32.gmra.mxu0 %vm1272_vm3, %v1224_v58  ;;  %v423_v25 = vpop.permute.xlu1 %422  ;;  %v421_v49 = vpop.permute.xlu0 %420 }
 0x129   :  { %v1096_v53 = vsel %vm1064_vm0, %v4665_v14, %v423_v25  ;;  %v1095_v54 = vsel %vm1064_vm0, %v4670_v15, %v421_v49  ;;  %v5214_v49 = vld [vmem:[%s5986_s0 + $0x2c0] sm:$0xff] }
 0x12a   :  { %970 = vrot.lane.b32.xlu1 %v3684_v57, %s4174_s12  ;;  %968 = vrot.lane.b32.xlu0 %v3683_v37, %s4174_s12 }
 0x12c   :  { %v679_v51 = vpop.permute.xlu1 %678  ;;  %v677_v52 = vpop.permute.xlu0 %676 }
 0x12d   :  { %v1161_v3 = vsel %vm1129_vm1, %v1096_v53, %v679_v51  ;;  %v1160_v28 = vsel %vm1129_vm1, %v1095_v54, %v677_v52  ;;  %v5219_v51 = vld [vmem:[%s5986_s0 + $0x2b8] sm:$0xff] }
 0x12e   :  { %462 = vrot.lane.b32.xlu1 %v3684_v57, %s4173_s22  ;;  %460 = vrot.lane.b32.xlu0 %v3683_v37, %s4173_s22 }
 0x130   :  { %v935_v40 = vpop.permute.xlu1 %934  ;;  %v933_v12 = vpop.permute.xlu0 %932 }
 0x131   :  { %v1226_v14 = vsel %vm1194_vm2, %v1161_v3, %v935_v40  ;;  %v1225_v15 = vsel %vm1194_vm2, %v1160_v28, %v933_v12  ;;  %v3689_v12 = vld [vmem:[%s5986_s0 + $0x2b9] sm:$0xff] }
 0x132   :  { %718 = vrot.lane.b32.xlu1 %v5135_v55, %s4172_s21  ;;  %716 = vrot.lane.b32.xlu0 %v5140_v1, %s4172_s21 }
 0x133   :  { %3959 = vmatprep.mubr.msk.f32.mxu0 %vm1272_vm3, %v1225_v15 }
 0x134   :  { %3960 = vmatmul.mubr.msk.f32.gmra.mxu0 %vm1272_vm3, %v1226_v14  ;;  %v427_v29 = vpop.permute.xlu1 %426  ;;  %v425_v4 = vpop.permute.xlu0 %424 }
 0x135   :  { %v1098_v11 = vsel %vm1064_vm0, %v72_v5, %v427_v29  ;;  %v1097_v22 = vsel %vm1064_vm0, %v71_v8, %v425_v4 }
 0x136   :  { %974 = vrot.lane.b32.xlu1 %v3686_v13, %s4174_s12  ;;  %972 = vrot.lane.b32.xlu0 %v3685_v41, %s4174_s12 }
 0x138   :  { %v683_v9 = vpop.permute.xlu1 %682  ;;  %v681_v10 = vpop.permute.xlu0 %680 }
 0x139   :  { %v1163_v44 = vsel %vm1129_vm1, %v1098_v11, %v683_v9  ;;  %v1162_v38 = vsel %vm1129_vm1, %v1097_v22, %v681_v10  ;;  %v5252_v22 = vld [vmem:[%s5986_s0 + $0x2d8] sm:$0xff] }
 0x13a   :  { %466 = vrot.lane.b32.xlu1 %v3686_v13, %s4173_s22  ;;  %464 = vrot.lane.b32.xlu0 %v3685_v41, %s4173_s22 }
 0x13c   :  { %v939_v39 = vpop.permute.xlu1 %938  ;;  %v937_v45 = vpop.permute.xlu0 %936 }
 0x13d   :  { %v1228_v33 = vsel %vm1194_vm2, %v1163_v44, %v939_v39  ;;  %v1227_v26 = vsel %vm1194_vm2, %v1162_v38, %v937_v45  ;;  %v5257_v44 = vld [vmem:[%s5986_s0 + $0x2d0] sm:$0xff] }
 0x13e   :  { %722 = vrot.lane.b32.xlu1 %v5173_v23, %s4172_s21  ;;  %720 = vrot.lane.b32.xlu0 %v5178_v32, %s4172_s21 }
 0x13f   :  { %3962 = vmatprep.mubr.msk.f32.mxu0 %vm1272_vm3, %v1227_v26 }
 0x140   :  { %v3916_v34 = vpop.f32.mrf.mxu0  ;;  %3963 = vmatmul.mubr.msk.f32.gmra.mxu0 %vm1272_vm3, %v1228_v33  ;;  %v431_v35 = vpop.permute.xlu1 %430 }
 0x141   :  { %v1537_v48 = vadd.f32 %v3916_v34, %v5191_v27  ;;  %v429_v24 = vpop.permute.xlu0 %428  ;;  %v1100_v25 = vsel %vm1064_vm0, %v4733_v62, %v431_v35 }
 0x142   :  { %v1531_v36 = vpop.f32.mrf.mxu0  ;;  %978 = vrot.lane.b32.xlu1 %v3688_v30, %s4174_s12  ;;  %976 = vrot.lane.b32.xlu0 %v3687_v31, %s4174_s12  ;;  %v1099_v52 = vsel %vm1064_vm0, %v4738_v63, %v429_v24  ;;  %v3690_v63 = vld [vmem:[%s5986_s0 + $0x2c1] sm:$0xff] }
 0x143   :  { %v1851_v56 = vmax.f32 %v1537_v48, 0.0  ;;  %v1532_v58 = vadd.f32 %v5191_v27, %v1531_v36 }
 0x144   :  { %v687_v59 = vpop.permute.xlu1 %686 }
 0x145   :  { %1916 = vst.msk [vmem:[#allocation2 + $0x8] sm:$0xff] %vm1914_vm4, %v1851_v56  ;;  %v1850_v57 = vmax.f32 %v1532_v58, 0.0  ;;  %v685_v37 = vpop.permute.xlu0 %684  ;;  %v1165_v53 = vsel %vm1129_vm1, %v1100_v25, %v687_v59 }
 0x146   :  { %470 = vrot.lane.b32.xlu1 %v3688_v30, %s4173_s22  ;;  %468 = vrot.lane.b32.xlu0 %v3687_v31, %s4173_s22  ;;  %v1164_v62 = vsel %vm1129_vm1, %v1099_v52, %v685_v37  ;;  %v3691_v31 = vld [vmem:[%s5986_s0 + $0x2d1] sm:$0xff] }
 0x147   :  { %1915 = vst.msk [vmem:[#allocation2] sm:$0xff] %vm1914_vm4, %v1850_v57 }
 0x148   :  { %v943_v54 = vpop.permute.xlu1 %942 }
 0x149   :  { %v1230_v3 = vsel %vm1194_vm2, %v1165_v53, %v943_v54  ;;  %v941_v28 = vpop.permute.xlu0 %940 }
 0x14a   :  { %v1229_v40 = vsel %vm1194_vm2, %v1164_v62, %v941_v28  ;;  %726 = vrot.lane.b32.xlu1 %v5214_v49, %s4172_s21  ;;  %724 = vrot.lane.b32.xlu0 %v5219_v51, %s4172_s21 }
 0x14b   :  { %3965 = vmatprep.mubr.msk.f32.mxu0 %vm1272_vm3, %v1229_v40 }
 0x14c   :  { %v3919_v14 = vpop.f32.mrf.mxu0  ;;  %3966 = vmatmul.mubr.msk.f32.gmra.mxu0 %vm1272_vm3, %v1230_v3  ;;  %v435_v15 = vpop.permute.xlu1 %434 }
 0x14d   :  { %v1547_v13 = vadd.f32 %v3919_v14, %v5191_v27  ;;  %v433_v41 = vpop.permute.xlu0 %432  ;;  %v1102_v11 = vsel %vm1064_vm0, %v4767_v2, %v435_v15 }
 0x14e   :  { %v1541_v29 = vpop.f32.mrf.mxu0  ;;  %982 = vrot.lane.b32.xlu1 %v3690_v63, %s4174_s12  ;;  %980 = vrot.lane.b32.xlu0 %v3689_v12, %s4174_s12  ;;  %v1101_v38 = vsel %vm1064_vm0, %v4772_v0, %v433_v41  ;;  %v3692_v0 = vld [vmem:[%s5986_s0 + $0x2d9] sm:$0xff]  ;;  %v2011_v35 = vld [vmem:[#allocation2 + $0x1] ss:$2 sm:$0xff] }
 0x14f   :  { %v1853_v4 = vmax.f32 %v1547_v13, 0.0  ;;  %v1542_v5 = vadd.f32 %v5191_v27, %v1541_v29  ;;  %v1979_v34 = vld [vmem:[#allocation2] ss:$2 sm:$0xff] }
 0x150   :  { %v691_v8 = vpop.permute.xlu1 %690  ;;  %v2042_v37 = vmax.f32 %v1979_v34, %v2011_v35 }
 0x151   :  { %1918 = vst.msk [vmem:[#allocation2 + $0x18] sm:$0xff] %vm1914_vm4, %v1853_v4  ;;  %v1852_v9 = vmax.f32 %v1542_v5, 0.0  ;;  %v689_v10 = vpop.permute.xlu0 %688  ;;  %v1167_v39 = vsel %vm1129_vm1, %v1102_v11, %v691_v8  ;;  %v3693_v5 = vld [vmem:[%s5986_s0 + $0x2e9] sm:$0xff] }
 0x152   :  { %474 = vrot.lane.b32.xlu1 %v3690_v63, %s4173_s22  ;;  %472 = vrot.lane.b32.xlu0 %v3689_v12, %s4173_s22  ;;  %v1166_v2 = vsel %vm1129_vm1, %v1101_v38, %v689_v10  ;;  %v5291_v63 = vld [vmem:[%s5986_s0 + $0x2f0] sm:$0xff]  ;;  %v5296_v12 = vld [vmem:[%s5986_s0 + $0x2e8] sm:$0xff] }
 0x153   :  { %1917 = vst.msk [vmem:[#allocation2 + $0x10] sm:$0xff] %vm1914_vm4, %v1852_v9 }
 0x154   :  { %v947_v45 = vpop.permute.xlu1 %946 }
 0x155   :  { %v1232_v33 = vsel %vm1194_vm2, %v1167_v39, %v947_v45  ;;  %v945_v26 = vpop.permute.xlu0 %944 }
 0x156   :  { %v1231_v30 = vsel %vm1194_vm2, %v1166_v2, %v945_v26  ;;  %730 = vrot.lane.b32.xlu1 %v5252_v22, %s4172_s21  ;;  %728 = vrot.lane.b32.xlu0 %v5257_v44, %s4172_s21 }
 0x157   :  { %3968 = vmatprep.mubr.msk.f32.mxu0 %vm1272_vm3, %v1231_v30 }
 0x158   :  { %v3922_v48 = vpop.f32.mrf.mxu0  ;;  %3969 = vmatmul.mubr.msk.f32.gmra.mxu0 %vm1272_vm3, %v1232_v33  ;;  %v439_v24 = vpop.permute.xlu1 %438 }
 0x159   :  { %v1557_v36 = vadd.f32 %v3922_v48, %v5191_v27  ;;  %v437_v56 = vpop.permute.xlu0 %436  ;;  %v1104_v40 = vsel %vm1064_vm0, %v4801_v46, %v439_v24 }
 0x15a   :  { %v2059_v58 = vld [vmem:[#allocation2 + $0x10] ss:$2 sm:$0xff]  ;;  %v2091_v59 = vld [vmem:[#allocation2 + $0x11] ss:$2 sm:$0xff]  ;;  %v1551_v57 = vpop.f32.mrf.mxu0  ;;  %986 = vrot.lane.b32.xlu1 %v3692_v0, %s4174_s12  ;;  %984 = vrot.lane.b32.xlu0 %v3691_v31, %s4174_s12  ;;  %v1103_v14 = vsel %vm1064_vm0, %v4806_v47, %v437_v56 }
 0x15b   :  { %v2122_v25 = vmax.f32 %v2059_v58, %v2091_v59  ;;  %v1855_v52 = vmax.f32 %v1557_v36, 0.0  ;;  %v1552_v53 = vadd.f32 %v5191_v27, %v1551_v57  ;;  %v3694_v47 = vld [vmem:[%s5986_s0 + $0x2f1] sm:$0xff]  ;;  %v3695_v58 = vld [vmem:[%s5986_s0 + $0x301] sm:$0xff] }
 0x15c   :  { %v695_v54 = vpop.permute.xlu1 %694 }
 0x15d   :  { %v2138_v62 = vmax.f32 %v2042_v37, %v2122_v25  ;;  %1920 = vst.msk [vmem:[#allocation2 + $0x28] sm:$0xff] %vm1914_vm4, %v1855_v52  ;;  %v1854_v3 = vmax.f32 %v1552_v53, 0.0  ;;  %v693_v28 = vpop.permute.xlu0 %692  ;;  %v1169_v15 = vsel %vm1129_vm1, %v1104_v40, %v695_v54 }
 0x15e   :  { %478 = vrot.lane.b32.xlu1 %v3692_v0, %s4173_s22  ;;  %476 = vrot.lane.b32.xlu0 %v3691_v31, %s4173_s22  ;;  %v1168_v46 = vsel %vm1129_vm1, %v1103_v14, %v693_v28  ;;  %v5329_v0 = vld [vmem:[%s5986_s0 + $0x308] sm:$0xff]  ;;  %v5334_v31 = vld [vmem:[%s5986_s0 + $0x300] sm:$0xff] }
 0x15f   :  { %2205 = vst.msk [vmem:[#allocation3 + $0x11] sm:$0xff] %vm1914_vm4, %v2138_v62  ;;  %1919 = vst.msk [vmem:[#allocation2 + $0x20] sm:$0xff] %vm1914_vm4, %v1854_v3 }
 0x160   :  { %v951_v13 = vpop.permute.xlu1 %950 }
 0x161   :  { %v1234_v41 = vsel %vm1194_vm2, %v1169_v15, %v951_v13  ;;  %v949_v29 = vpop.permute.xlu0 %948 }
 0x162   :  { %v1233_v4 = vsel %vm1194_vm2, %v1168_v46, %v949_v29  ;;  %734 = vrot.lane.b32.xlu1 %v5291_v63, %s4172_s21  ;;  %732 = vrot.lane.b32.xlu0 %v5296_v12, %s4172_s21 }
 0x163   :  { %3971 = vmatprep.mubr.msk.f32.mxu0 %vm1272_vm3, %v1233_v4 }
 0x164   :  { %v3925_v8 = vpop.f32.mrf.mxu0  ;;  %3972 = vmatmul.mubr.msk.f32.gmra.mxu0 %vm1272_vm3, %v1234_v41  ;;  %v443_v9 = vpop.permute.xlu1 %442 }
 0x165   :  { %v1567_v10 = vadd.f32 %v3925_v8, %v5191_v27  ;;  %v441_v11 = vpop.permute.xlu0 %440  ;;  %v1106_v30 = vsel %vm1064_vm0, %v4931_v61, %v443_v9 }
 0x166   :  { %v1561_v38 = vpop.f32.mrf.mxu0  ;;  %990 = vrot.lane.b32.xlu1 %v3694_v47, %s4174_s12  ;;  %988 = vrot.lane.b32.xlu0 %v3693_v5, %s4174_s12  ;;  %v1105_v34 = vsel %vm1064_vm0, %v4936_v16, %v441_v11  ;;  %v3696_v16 = vld [vmem:[%s5986_s0 + $0x309] sm:$0xff] }
 0x167   :  { %v1857_v39 = vmax.f32 %v1567_v10, 0.0  ;;  %v1562_v45 = vadd.f32 %v5191_v27, %v1561_v38  ;;  %v1981_v59 = vld [vmem:[#allocation2 + $0x20] ss:$2 sm:$0xff]  ;;  %v2013_v57 = vld [vmem:[#allocation2 + $0x21] ss:$2 sm:$0xff] }
 0x168   :  { %v699_v2 = vpop.permute.xlu1 %698  ;;  %v2043_v28 = vmax.f32 %v1981_v59, %v2013_v57 }
 0x169   :  { %1922 = vst.msk [vmem:[#allocation2 + $0x38] sm:$0xff] %vm1914_vm4, %v1857_v39  ;;  %v1856_v33 = vmax.f32 %v1562_v45, 0.0  ;;  %v697_v26 = vpop.permute.xlu0 %696  ;;  %v1171_v35 = vsel %vm1129_vm1, %v1106_v30, %v699_v2  ;;  %v3697_v45 = vld [vmem:[%s5986_s0 + $0x319] sm:$0xff] }
 0x16a   :  { %482 = vrot.lane.b32.xlu1 %v3694_v47, %s4173_s22  ;;  %480 = vrot.lane.b32.xlu0 %v3693_v5, %s4173_s22  ;;  %v1170_v61 = vsel %vm1129_vm1, %v1105_v34, %v697_v26  ;;  %v3634_v47 = vld [vmem:[%s5986_s0 + $0x320] sm:$0xff]  ;;  %v3633_v5 = vld [vmem:[%s5986_s0 + $0x318] sm:$0xff] }
 0x16b   :  { %1921 = vst.msk [vmem:[#allocation2 + $0x30] sm:$0xff] %vm1914_vm4, %v1856_v33  ;;  %v2237_v34 = vld [vmem:[#allocation3 + $0x1] ss:$2 sm:$0xf] }
 0x16c   :  { %v955_v48 = vpop.permute.xlu1 %954 }
 0x16d   :  { %v1236_v24 = vsel %vm1194_vm2, %v1171_v35, %v955_v48  ;;  %v953_v36 = vpop.permute.xlu0 %952 }
 0x16e   :  { %v1235_v56 = vsel %vm1194_vm2, %v1170_v61, %v953_v36  ;;  %738 = vrot.lane.b32.xlu1 %v5329_v0, %s4172_s21  ;;  %736 = vrot.lane.b32.xlu0 %v5334_v31, %s4172_s21 }
 0x16f   :  { %3974 = vmatprep.mubr.msk.f32.mxu0 %vm1272_vm3, %v1235_v56 }
 0x170   :  { %v3928_v37 = vpop.f32.mrf.mxu0  ;;  %3975 = vmatmul.mubr.msk.f32.gmra.mxu0 %vm1272_vm3, %v1236_v24  ;;  %v447_v25 = vpop.permute.xlu1 %446 }
 0x171   :  { %v1577_v52 = vadd.f32 %v3928_v37, %v5191_v27  ;;  %v445_v53 = vpop.permute.xlu0 %444  ;;  %v1108_v4 = vsel %vm1064_vm0, %v4965_v19, %v447_v25 }
 0x172   :  { %v2061_v54 = vld [vmem:[#allocation2 + $0x30] ss:$2 sm:$0xff]  ;;  %v2093_v62 = vld [vmem:[#allocation2 + $0x31] ss:$2 sm:$0xff]  ;;  %v1571_v3 = vpop.f32.mrf.mxu0  ;;  %994 = vrot.lane.b32.xlu1 %v3696_v16, %s4174_s12  ;;  %992 = vrot.lane.b32.xlu0 %v3695_v58, %s4174_s12  ;;  %v1107_v8 = vsel %vm1064_vm0, %v4970_v20, %v445_v53  ;;  %v3698_v20 = vld [vmem:[%s5986_s0 + $0x321] sm:$0xff]  ;;  %s4176_s0 = smov 6  }
 0x173   :  { %v2123_v40 = vmax.f32 %v2061_v54, %v2093_v62  ;;  %v1859_v14 = vmax.f32 %v1577_v52, 0.0  ;;  %v1572_v15 = vadd.f32 %v5191_v27, %v1571_v3 }
 0x174   :  { %v703_v13 = vpop.permute.xlu1 %702 }
 0x175   :  { %v2139_v46 = vmax.f32 %v2043_v28, %v2123_v40  ;;  %1924 = vst.msk [vmem:[#allocation2 + $0x48] sm:$0xff] %vm1914_vm4, %v1859_v14  ;;  %v1858_v41 = vmax.f32 %v1572_v15, 0.0  ;;  %v701_v29 = vpop.permute.xlu0 %700  ;;  %v1173_v9 = vsel %vm1129_vm1, %v1108_v4, %v703_v13  ;;  %v2269_v40 = vld [vmem:[#allocation3 + $0x3] ss:$2 sm:$0xf] }
 0x176   :  { %486 = vrot.lane.b32.xlu1 %v3696_v16, %s4173_s22  ;;  %484 = vrot.lane.b32.xlu0 %v3695_v58, %s4173_s22  ;;  %v1172_v11 = vsel %vm1129_vm1, %v1107_v8, %v701_v29  ;;  %v2253_v16 = vld [vmem:[#allocation3 + $0x2] ss:$2 sm:$0xf] }
 0x177   :  { %2206 = vst.msk [vmem:[#allocation3 + $0x21] sm:$0xff] %vm1914_vm4, %v2139_v46  ;;  %1923 = vst.msk [vmem:[#allocation2 + $0x40] sm:$0xff] %vm1914_vm4, %v1858_v41 }
 0x178   :  { %v959_v10 = vpop.permute.xlu1 %958 }
 0x179   :  { %v1238_v19 = vsel %vm1194_vm2, %v1173_v9, %v959_v10  ;;  %v957_v38 = vpop.permute.xlu0 %956 }
 0x17a   :  { %v1237_v39 = vsel %vm1194_vm2, %v1172_v11, %v957_v38  ;;  %742 = vrot.lane.b32.xlu1 %v3634_v47, %s4172_s21  ;;  %740 = vrot.lane.b32.xlu0 %v3633_v5, %s4172_s21 }
 0x17b   :  { %3977 = vmatprep.mubr.msk.f32.mxu0 %vm1272_vm3, %v1237_v39 }
 0x17c   :  { %v3931_v2 = vpop.f32.mrf.mxu0  ;;  %3978 = vmatmul.mubr.msk.f32.gmra.mxu0 %vm1272_vm3, %v1238_v19  ;;  %v451_v33 = vpop.permute.xlu1 %450 }
 0x17d   :  { %v1587_v26 = vadd.f32 %v3931_v2, %v5191_v27  ;;  %v449_v30 = vpop.permute.xlu0 %448  ;;  %v1110_v37 = vsel %vm1064_vm0, %v4999_v43, %v451_v33 }
 0x17e   :  { %v1581_v35 = vpop.f32.mrf.mxu0  ;;  %998 = vrot.lane.b32.xlu1 %v3698_v20, %s4174_s12  ;;  %996 = vrot.lane.b32.xlu0 %v3697_v45, %s4174_s12  ;;  %v2239_v24 = vld [vmem:[#allocation3 + $0x21] ss:$2 sm:$0xf]  ;;  %v2255_v57 = vld [vmem:[#allocation3 + $0x22] ss:$2 sm:$0xf]  ;;  %v1109_v25 = vsel %vm1064_vm0, %v5004_v6, %v449_v30 }
 0x17f   :  { %v1861_v48 = vmax.f32 %v1587_v26, 0.0  ;;  %v1582_v61 = vadd.f32 %v5191_v27, %v1581_v35  ;;  %v2499_v56 = vcombine.low %v2237_v34, %v2239_v24  ;;  %v2523_v54 = vcombine.low %v2253_v16, %v2255_v57  ;;  %v2271_v14 = vld [vmem:[#allocation3 + $0x23] ss:$2 sm:$0xf]  ;;  %v1983_v43 = vld [vmem:[#allocation2 + $0x40] ss:$2 sm:$0xff] }
 0x180   :  { %v707_v36 = vpop.permute.xlu1 %706  ;;  %v2015_v13 = vld [vmem:[#allocation2 + $0x41] ss:$2 sm:$0xff]  ;;  %v2547_v41 = vcombine.low %v2269_v40, %v2271_v14  ;;  %v2284_v16 = vld [vmem:[#allocation3 + $0x10] ss:$2 sm:$0xf] }
 0x181   :  { %1926 = vst.msk [vmem:[#allocation2 + $0x58] sm:$0xff] %vm1914_vm4, %v1861_v48  ;;  %v1860_v58 = vmax.f32 %v1582_v61, 0.0  ;;  %v705_v59 = vpop.permute.xlu0 %704  ;;  %v1175_v52 = vsel %vm1129_vm1, %v1110_v37, %v707_v36  ;;  %v2044_v9 = vmax.f32 %v1983_v43, %v2015_v13 }
 0x182   :  { %2503 = vrot.lane.b32.xlu0 %v2499_v56, %s4176_s0  ;;  %v1174_v62 = vsel %vm1129_vm1, %v1109_v25, %v705_v59 }
 0x183   :  { %1925 = vst.msk [vmem:[#allocation2 + $0x50] sm:$0xff] %vm1914_vm4, %v1860_v58 }
 0x184   :  { %v963_v53 = vpop.permute.xlu1 %962 }
 0x185   :  { %v1240_v3 = vsel %vm1194_vm2, %v1175_v52, %v963_v53  ;;  %v961_v28 = vpop.permute.xlu0 %960 }
 0x186   :  { %v1239_v15 = vsel %vm1194_vm2, %v1174_v62, %v961_v28  ;;  %2527 = vrot.lane.b32.xlu0 %v2523_v54, %s4173_s22 }
 0x187   :  { %3980 = vmatprep.mubr.msk.f32.mxu0 %vm1272_vm3, %v1239_v15 }
 0x188   :  { %v3934_v6 = vpop.f32.mrf.mxu0  ;;  %3981 = vmatmul.mubr.msk.f32.gmra.mxu0 %vm1272_vm3, %v1240_v3  ;;  %v455_v46 = vpop.permute.xlu1 %454 }
 0x189   :  { %v1597_v29 = vadd.f32 %v3934_v6, %v5191_v27  ;;  %v453_v4 = vpop.permute.xlu0 %452  ;;  %v1112_v2 = vsel %vm1064_vm0, %v5033_v60, %v455_v46 }
 0x18a   :  { %v2063_v47 = vld [vmem:[#allocation2 + $0x50] ss:$2 sm:$0xff]  ;;  %v2095_v5 = vld [vmem:[#allocation2 + $0x51] ss:$2 sm:$0xff]  ;;  %v1591_v8 = vpop.f32.mrf.mxu0  ;;  %2551 = vrot.lane.b32.xlu0 %v2547_v41, %s4177_s16  ;;  %v1111_v33 = vsel %vm1064_vm0, %v5038_v17, %v453_v4 }
 0x18b   :  { %v2124_v10 = vmax.f32 %v2063_v47, %v2095_v5  ;;  %v1863_v11 = vmax.f32 %v1597_v29, 0.0  ;;  %v1592_v19 = vadd.f32 %v5191_v27, %v1591_v8 }
 0x18c   :  { %v711_v38 = vpop.permute.xlu1 %710 }
 0x18d   :  { %v2140_v39 = vmax.f32 %v2044_v9, %v2124_v10  ;;  %1928 = vst.msk [vmem:[#allocation2 + $0x68] sm:$0xff] %vm1914_vm4, %v1863_v11  ;;  %v1862_v20 = vmax.f32 %v1592_v19, 0.0  ;;  %v709_v45 = vpop.permute.xlu0 %708  ;;  %v1177_v26 = vsel %vm1129_vm1, %v1112_v2, %v711_v38 }
 0x18e   :  { %v1176_v34 = vsel %vm1129_vm1, %v1111_v33, %v709_v45 }
 0x18f   :  { %2207 = vst.msk [vmem:[#allocation3 + $0x31] sm:$0xff] %vm1914_vm4, %v2140_v39  ;;  %1927 = vst.msk [vmem:[#allocation2 + $0x60] sm:$0xff] %vm1914_vm4, %v1862_v20 }
 0x190   :  { %v967_v30 = vpop.permute.xlu1 %966 }
 0x191   :  { %v1242_v35 = vsel %vm1194_vm2, %v1177_v26, %v967_v30  ;;  %v965_v48 = vpop.permute.xlu0 %964 }
 0x192   :  { %v1241_v61 = vsel %vm1194_vm2, %v1176_v34, %v965_v48 }
 0x193   :  { %3983 = vmatprep.mubr.msk.f32.mxu0 %vm1272_vm3, %v1241_v61 }
 0x194   :  { %v3937_v24 = vpop.f32.mrf.mxu0  ;;  %3984 = vmatmul.mubr.msk.f32.gmra.mxu0 %vm1272_vm3, %v1242_v35  ;;  %v459_v60 = vpop.permute.xlu1 %458 }
 0x195   :  { %v1607_v36 = vadd.f32 %v3937_v24, %v5191_v27  ;;  %v457_v56 = vpop.permute.xlu0 %456  ;;  %v1114_v54 = vsel %vm1064_vm0, %v5067_v18, %v459_v60 }
 0x196   :  { %v1601_v17 = vpop.f32.mrf.mxu0  ;;  %v2286_v57 = vld [vmem:[#allocation3 + $0x30] ss:$2 sm:$0xf]  ;;  %v1113_v62 = vsel %vm1064_vm0, %v5072_v21, %v457_v56  ;;  %v1985_v13 = vld [vmem:[#allocation2 + $0x60] ss:$2 sm:$0xff] }
 0x197   :  { %v1865_v58 = vmax.f32 %v1607_v36, 0.0  ;;  %v1602_v59 = vadd.f32 %v5191_v27, %v1601_v17  ;;  %v2571_v25 = vcombine.low %v2284_v16, %v2286_v57  ;;  %v2017_v6 = vld [vmem:[#allocation2 + $0x61] ss:$2 sm:$0xff] }
 0x198   :  { %v715_v37 = vpop.permute.xlu1 %714  ;;  %v2045_v5 = vmax.f32 %v1985_v13, %v2017_v6 }
 0x199   :  { %1930 = vst.msk [vmem:[#allocation2 + $0x78] sm:$0xff] %vm1914_vm4, %v1865_v58  ;;  %v1864_v52 = vmax.f32 %v1602_v59, 0.0  ;;  %v713_v53 = vpop.permute.xlu0 %712  ;;  %2575 = vrot.lane.b32.xlu0 %v2571_v25, %s4172_s21  ;;  %v1179_v3 = vsel %vm1129_vm1, %v1114_v54, %v715_v37 }
 0x19a   :  { %v1178_v40 = vsel %vm1129_vm1, %v1113_v62, %v713_v53 }
 0x19b   :  { %1929 = vst.msk [vmem:[#allocation2 + $0x70] sm:$0xff] %vm1914_vm4, %v1864_v52 }
 0x19c   :  { %v971_v28 = vpop.permute.xlu1 %970 }
 0x19d   :  { %v1244_v14 = vsel %vm1194_vm2, %v1179_v3, %v971_v28  ;;  %v969_v15 = vpop.permute.xlu0 %968 }
 0x19e   :  { %v1243_v43 = vsel %vm1194_vm2, %v1178_v40, %v969_v15 }
 0x19f   :  { %3986 = vmatprep.mubr.msk.f32.mxu0 %vm1272_vm3, %v1243_v43 }
 0x1a0   :  { %v3940_v18 = vpop.f32.mrf.mxu0  ;;  %3987 = vmatmul.mubr.msk.f32.gmra.mxu0 %vm1272_vm3, %v1244_v14  ;;  %v463_v46 = vpop.permute.xlu1 %462 }
 0x1a1   :  { %v1617_v21 = vadd.f32 %v3940_v18, %v5191_v27  ;;  %v461_v41 = vpop.permute.xlu0 %460  ;;  %v1116_v20 = vsel %vm1064_vm0, %v5101_v42, %v463_v46 }
 0x1a2   :  { %v2065_v29 = vld [vmem:[#allocation2 + $0x70] ss:$2 sm:$0xff]  ;;  %v2097_v4 = vld [vmem:[#allocation2 + $0x71] ss:$2 sm:$0xff]  ;;  %v1611_v47 = vpop.f32.mrf.mxu0  ;;  %v1115_v45 = vsel %vm1064_vm0, %v5106_v7, %v461_v41 }
 0x1a3   :  { %v2125_v8 = vmax.f32 %v2065_v29, %v2097_v4  ;;  %v1867_v9 = vmax.f32 %v1617_v21, 0.0  ;;  %v1612_v10 = vadd.f32 %v5191_v27, %v1611_v47 }
 0x1a4   :  { %v719_v11 = vpop.permute.xlu1 %718 }
 0x1a5   :  { %v2141_v19 = vmax.f32 %v2045_v5, %v2125_v8  ;;  %1932 = vst.msk [vmem:[#allocation2 + $0x88] sm:$0xff] %vm1914_vm4, %v1867_v9  ;;  %v1866_v38 = vmax.f32 %v1612_v10, 0.0  ;;  %v717_v39 = vpop.permute.xlu0 %716  ;;  %v1181_v2 = vsel %vm1129_vm1, %v1116_v20, %v719_v11 }
 0x1a6   :  { %v1180_v26 = vsel %vm1129_vm1, %v1115_v45, %v717_v39 }
 0x1a7   :  { %2208 = vst.msk [vmem:[#allocation3 + $0x41] sm:$0xff] %vm1914_vm4, %v2141_v19  ;;  %1931 = vst.msk [vmem:[#allocation2 + $0x80] sm:$0xff] %vm1914_vm4, %v1866_v38 }
 0x1a8   :  { %v975_v33 = vpop.permute.xlu1 %974 }
 0x1a9   :  { %v1246_v30 = vsel %vm1194_vm2, %v1181_v2, %v975_v33  ;;  %v973_v34 = vpop.permute.xlu0 %972 }
 0x1aa   :  { %v1245_v35 = vsel %vm1194_vm2, %v1180_v26, %v973_v34 }
 0x1ab   :  { %3989 = vmatprep.mubr.msk.f32.mxu0 %vm1272_vm3, %v1245_v35 }
 0x1ac   :  { %v3943_v48 = vpop.f32.mrf.mxu0  ;;  %3990 = vmatmul.mubr.msk.f32.gmra.mxu0 %vm1272_vm3, %v1246_v30  ;;  %v467_v42 = vpop.permute.xlu1 %466 }
 0x1ad   :  { %v1627_v61 = vadd.f32 %v3943_v48, %v5191_v27  ;;  %v465_v24 = vpop.permute.xlu0 %464  ;;  %v1118_v58 = vsel %vm1064_vm0, %v5135_v55, %v467_v42 }
 0x1ae   :  { %v1621_v7 = vpop.f32.mrf.mxu0  ;;  %v1117_v59 = vsel %vm1064_vm0, %v5140_v1, %v465_v24  ;;  %v1987_v62 = vld [vmem:[#allocation2 + $0x80] ss:$2 sm:$0xff]  ;;  %v2019_v3 = vld [vmem:[#allocation2 + $0x81] ss:$2 sm:$0xff] }
 0x1af   :  { %v1869_v60 = vmax.f32 %v1627_v61, 0.0  ;;  %v1622_v36 = vadd.f32 %v5191_v27, %v1621_v7  ;;  %v2046_v13 = vmax.f32 %v1987_v62, %v2019_v3 }
 0x1b0   :  { %v723_v56 = vpop.permute.xlu1 %722 }
 0x1b1   :  { %1934 = vst.msk [vmem:[#allocation2 + $0x98] sm:$0xff] %vm1914_vm4, %v1869_v60  ;;  %v1868_v17 = vmax.f32 %v1622_v36, 0.0  ;;  %v721_v16 = vpop.permute.xlu0 %720  ;;  %v1183_v57 = vsel %vm1129_vm1, %v1118_v58, %v723_v56 }
 0x1b2   :  { %v1182_v25 = vsel %vm1129_vm1, %v1117_v59, %v721_v16 }
 0x1b3   :  { %1933 = vst.msk [vmem:[#allocation2 + $0x90] sm:$0xff] %vm1914_vm4, %v1868_v17 }
 0x1b4   :  { %v979_v37 = vpop.permute.xlu1 %978 }
 0x1b5   :  { %v1248_v52 = vsel %vm1194_vm2, %v1183_v57, %v979_v37  ;;  %v977_v53 = vpop.permute.xlu0 %976 }
 0x1b6   :  { %v1247_v54 = vsel %vm1194_vm2, %v1182_v25, %v977_v53 }
 0x1b7   :  { %3992 = vmatprep.mubr.msk.f32.mxu0 %vm1272_vm3, %v1247_v54 }
 0x1b8   :  { %v3946_v55 = vpop.f32.mrf.mxu0  ;;  %3993 = vmatmul.mubr.msk.f32.gmra.mxu0 %vm1272_vm3, %v1248_v52  ;;  %v471_v28 = vpop.permute.xlu1 %470 }
 0x1b9   :  { %v1637_v1 = vadd.f32 %v3946_v55, %v5191_v27  ;;  %v469_v40 = vpop.permute.xlu0 %468  ;;  %v1120_v47 = vsel %vm1064_vm0, %v5173_v23, %v471_v28 }
 0x1ba   :  { %v2067_v14 = vld [vmem:[#allocation2 + $0x90] ss:$2 sm:$0xff]  ;;  %v2099_v15 = vld [vmem:[#allocation2 + $0x91] ss:$2 sm:$0xff]  ;;  %v1631_v43 = vpop.f32.mrf.mxu0  ;;  %v1119_v5 = vsel %vm1064_vm0, %v5178_v32, %v469_v40 }
 0x1bb   :  { %v2126_v6 = vmax.f32 %v2067_v14, %v2099_v15  ;;  %v1871_v18 = vmax.f32 %v1637_v1, 0.0  ;;  %v1632_v46 = vadd.f32 %v5191_v27, %v1631_v43 }
 0x1bc   :  { %v727_v21 = vpop.permute.xlu1 %726 }
 0x1bd   :  { %v2142_v41 = vmax.f32 %v2046_v13, %v2126_v6  ;;  %1936 = vst.msk [vmem:[#allocation2 + $0xa8] sm:$0xff] %vm1914_vm4, %v1871_v18  ;;  %v1870_v29 = vmax.f32 %v1632_v46, 0.0  ;;  %v725_v4 = vpop.permute.xlu0 %724  ;;  %v1185_v8 = vsel %vm1129_vm1, %v1120_v47, %v727_v21 }
 0x1be   :  { %v1184_v10 = vsel %vm1129_vm1, %v1119_v5, %v725_v4 }
 0x1bf   :  { %2209 = vst.msk [vmem:[#allocation3 + $0x51] sm:$0xff] %vm1914_vm4, %v2142_v41  ;;  %1935 = vst.msk [vmem:[#allocation2 + $0xa0] sm:$0xff] %vm1914_vm4, %v1870_v29  ;;  %v2241_v29 = vld [vmem:[#allocation3 + $0x41] ss:$2 sm:$0xf] }
 0x1c0   :  { %v983_v9 = vpop.permute.xlu1 %982 }
 0x1c1   :  { %v1250_v11 = vsel %vm1194_vm2, %v1185_v8, %v983_v9  ;;  %v981_v19 = vpop.permute.xlu0 %980 }
 0x1c2   :  { %v1249_v38 = vsel %vm1194_vm2, %v1184_v10, %v981_v19 }
 0x1c3   :  { %3995 = vmatprep.mubr.msk.f32.mxu0 %vm1272_vm3, %v1249_v38 }
 0x1c4   :  { %v3949_v39 = vpop.f32.mrf.mxu0  ;;  %3996 = vmatmul.mubr.msk.f32.gmra.mxu0 %vm1272_vm3, %v1250_v11  ;;  %v475_v23 = vpop.permute.xlu1 %474 }
 0x1c5   :  { %v1647_v20 = vadd.f32 %v3949_v39, %v5191_v27  ;;  %v473_v45 = vpop.permute.xlu0 %472  ;;  %v1122_v35 = vsel %vm1064_vm0, %v5214_v49, %v475_v23  ;;  %v2257_v39 = vld [vmem:[#allocation3 + $0x42] ss:$2 sm:$0xf] }
 0x1c6   :  { %v1641_v32 = vpop.f32.mrf.mxu0  ;;  %v1121_v48 = vsel %vm1064_vm0, %v5219_v51, %v473_v45  ;;  %v1989_v56 = vld [vmem:[#allocation2 + $0xa0] ss:$2 sm:$0xff]  ;;  %v2021_v17 = vld [vmem:[#allocation2 + $0xa1] ss:$2 sm:$0xff] }
 0x1c7   :  { %v1873_v2 = vmax.f32 %v1647_v20, 0.0  ;;  %v1642_v33 = vadd.f32 %v5191_v27, %v1641_v32  ;;  %v2047_v25 = vmax.f32 %v1989_v56, %v2021_v17 }
 0x1c8   :  { %v731_v26 = vpop.permute.xlu1 %730 }
 0x1c9   :  { %1938 = vst.msk [vmem:[#allocation2 + $0xb8] sm:$0xff] %vm1914_vm4, %v1873_v2  ;;  %v1872_v30 = vmax.f32 %v1642_v33, 0.0  ;;  %v729_v34 = vpop.permute.xlu0 %728  ;;  %v1187_v42 = vsel %vm1129_vm1, %v1122_v35, %v731_v26 }
 0x1ca   :  { %v1186_v24 = vsel %vm1129_vm1, %v1121_v48, %v729_v34 }
 0x1cb   :  { %1937 = vst.msk [vmem:[#allocation2 + $0xb0] sm:$0xff] %vm1914_vm4, %v1872_v30 }
 0x1cc   :  { %v987_v61 = vpop.permute.xlu1 %986 }
 0x1cd   :  { %v1252_v7 = vsel %vm1194_vm2, %v1187_v42, %v987_v61  ;;  %v985_v60 = vpop.permute.xlu0 %984 }
 0x1ce   :  { %v1251_v36 = vsel %vm1194_vm2, %v1186_v24, %v985_v60  ;;  %v2302_v60 = vld [vmem:[#allocation3 + $0x31] ss:$2 sm:$0xf] }
 0x1cf   :  { %3998 = vmatprep.mubr.msk.f32.mxu0 %vm1272_vm3, %v1251_v36 }
 0x1d0   :  { %v3952_v49 = vpop.f32.mrf.mxu0  ;;  %3999 = vmatmul.mubr.msk.f32.gmra.mxu0 %vm1272_vm3, %v1252_v7  ;;  %v479_v16 = vpop.permute.xlu1 %478 }
 0x1d1   :  { %v1657_v51 = vadd.f32 %v3952_v49, %v5191_v27  ;;  %v477_v58 = vpop.permute.xlu0 %476  ;;  %v1124_v1 = vsel %vm1064_vm0, %v5252_v22, %v479_v16 }
 0x1d2   :  { %v2069_v59 = vld [vmem:[#allocation2 + $0xb0] ss:$2 sm:$0xff]  ;;  %v2101_v57 = vld [vmem:[#allocation2 + $0xb1] ss:$2 sm:$0xff]  ;;  %v1651_v37 = vpop.f32.mrf.mxu0  ;;  %v1123_v40 = vsel %vm1064_vm0, %v5257_v44, %v477_v58 }
 0x1d3   :  { %v2127_v52 = vmax.f32 %v2069_v59, %v2101_v57  ;;  %v1875_v53 = vmax.f32 %v1657_v51, 0.0  ;;  %v1652_v54 = vadd.f32 %v5191_v27, %v1651_v37  ;;  %v2300_v59 = vld [vmem:[#allocation3 + $0x11] ss:$2 sm:$0xf] }
 0x1d4   :  { %v735_v62 = vpop.permute.xlu1 %734  ;;  %v2595_v37 = vcombine.low %v2300_v59, %v2302_v60 }
 0x1d5   :  { %v2143_v3 = vmax.f32 %v2047_v25, %v2127_v52  ;;  %1940 = vst.msk [vmem:[#allocation2 + $0xc8] sm:$0xff] %vm1914_vm4, %v1875_v53  ;;  %v1874_v55 = vmax.f32 %v1652_v54, 0.0  ;;  %v733_v28 = vpop.permute.xlu0 %732  ;;  %v1189_v14 = vsel %vm1129_vm1, %v1124_v1, %v735_v62  ;;  %v2318_v54 = vld [vmem:[#allocation3 + $0x32] ss:$2 sm:$0xf] }
 0x1d6   :  { %v1188_v43 = vsel %vm1129_vm1, %v1123_v40, %v733_v28 }
 0x1d7   :  { %2210 = vst.msk [vmem:[#allocation3 + $0x61] sm:$0xff] %vm1914_vm4, %v2143_v3  ;;  %1939 = vst.msk [vmem:[#allocation2 + $0xc0] sm:$0xff] %vm1914_vm4, %v1874_v55  ;;  %v2316_v3 = vld [vmem:[#allocation3 + $0x12] ss:$2 sm:$0xf] }
 0x1d8   :  { %v991_v15 = vpop.permute.xlu1 %990  ;;  %v2619_v40 = vcombine.low %v2316_v3, %v2318_v54 }
 0x1d9   :  { %v1254_v13 = vsel %vm1194_vm2, %v1189_v14, %v991_v15  ;;  %v989_v6 = vpop.permute.xlu0 %988 }
 0x1da   :  { %v1253_v18 = vsel %vm1194_vm2, %v1188_v43, %v989_v6 }
 0x1db   :  { %4001 = vmatprep.mubr.msk.f32.mxu0 %vm1272_vm3, %v1253_v18 }
 0x1dc   :  { %v3955_v46 = vpop.f32.mrf.mxu0  ;;  %4002 = vmatmul.mubr.msk.f32.gmra.mxu0 %vm1272_vm3, %v1254_v13  ;;  %v483_v22 = vpop.permute.xlu1 %482  ;;  %v2334_v13 = vld [vmem:[#allocation3 + $0x33] ss:$2 sm:$0xf] }
 0x1dd   :  { %v1667_v21 = vadd.f32 %v3955_v46, %v5191_v27  ;;  %v481_v41 = vpop.permute.xlu0 %480  ;;  %v1126_v38 = vsel %vm1064_vm0, %v5291_v63, %v483_v22  ;;  %v2273_v63 = vld [vmem:[#allocation3 + $0x43] ss:$2 sm:$0xf] }
 0x1de   :  { %v1661_v44 = vpop.f32.mrf.mxu0  ;;  %v2243_v5 = vld [vmem:[#allocation3 + $0x61] ss:$2 sm:$0xf]  ;;  %v2259_v19 = vld [vmem:[#allocation3 + $0x62] ss:$2 sm:$0xf]  ;;  %v1125_v23 = vsel %vm1064_vm0, %v5296_v12, %v481_v41 }
 0x1df   :  { %v1877_v4 = vmax.f32 %v1667_v21, 0.0  ;;  %v1662_v47 = vadd.f32 %v5191_v27, %v1661_v44  ;;  %v2500_v9 = vcombine.low %v2241_v29, %v2243_v5  ;;  %v2524_v32 = vcombine.low %v2257_v39, %v2259_v19  ;;  %v2275_v30 = vld [vmem:[#allocation3 + $0x63] ss:$2 sm:$0xf]  ;;  %v1991_v35 = vld [vmem:[#allocation2 + $0xc0] ss:$2 sm:$0xff] }
 0x1e0   :  { %v739_v8 = vpop.permute.xlu1 %738  ;;  %v2023_v48 = vld [vmem:[#allocation2 + $0xc1] ss:$2 sm:$0xff]  ;;  %v2548_v61 = vcombine.low %v2273_v63, %v2275_v30  ;;  %v2288_v21 = vld [vmem:[#allocation3 + $0x50] ss:$2 sm:$0xf] }
 0x1e1   :  { %1942 = vst.msk [vmem:[#allocation2 + $0xd8] sm:$0xff] %vm1914_vm4, %v1877_v4  ;;  %v1876_v10 = vmax.f32 %v1662_v47, 0.0  ;;  %v737_v11 = vpop.permute.xlu0 %736  ;;  %2505 = vrot.lane.b32.xlu1 %v2500_v9, %s4176_s0  ;;  %v1191_v20 = vsel %vm1129_vm1, %v1126_v38, %v739_v8  ;;  %v2048_v49 = vmax.f32 %v1991_v35, %v2023_v48  ;;  %v2304_v8 = vld [vmem:[#allocation3 + $0x51] ss:$2 sm:$0xf] }
 0x1e2   :  { %v1190_v2 = vsel %vm1129_vm1, %v1125_v23, %v737_v11  ;;  %v2320_v11 = vld [vmem:[#allocation3 + $0x52] ss:$2 sm:$0xf]  ;;  %v5555_v63 = vld [vmem:[%s5988_s2] ss:$0 sm:$0xff]  ;;  %s4180_s2 = smov 48  }
 0x1e3   :  { %1941 = vst.msk [vmem:[#allocation2 + $0xd0] sm:$0xff] %vm1914_vm4, %v1876_v10  ;;  %v2336_v48 = vld [vmem:[#allocation3 + $0x53] ss:$2 sm:$0xf] }
 0x1e4   :  { %v995_v45 = vpop.permute.xlu1 %994  ;;  %v2352_v60 = vld [vmem:[#allocation3 + $0x60] ss:$2 sm:$0xf] }
 0x1e5   :  { %v1256_v33 = vsel %vm1194_vm2, %v1191_v20, %v995_v45  ;;  %v993_v26 = vpop.permute.xlu0 %992  ;;  %2529 = vrot.lane.b32.xlu1 %v2524_v32, %s4173_s22 }
 0x1e6   :  { %v1255_v34 = vsel %vm1194_vm2, %v1190_v2, %v993_v26 }
 0x1e7   :  { %4004 = vmatprep.mubr.msk.f32.mxu0 %vm1272_vm3, %v1255_v34 }
 0x1e8   :  { %v3958_v12 = vpop.f32.mrf.mxu0  ;;  %4005 = vmatmul.mubr.msk.f32.gmra.mxu0 %vm1272_vm3, %v1256_v33  ;;  %v487_v42 = vpop.permute.xlu1 %486 }
 0x1e9   :  { %v1677_v24 = vadd.f32 %v3958_v12, %v5191_v27  ;;  %v485_v7 = vpop.permute.xlu0 %484  ;;  %2553 = vrot.lane.b32.xlu1 %v2548_v61, %s4177_s16  ;;  %v1128_v62 = vsel %vm1064_vm0, %v5329_v0, %v487_v42  ;;  %v2332_v0 = vld [vmem:[#allocation3 + $0x13] ss:$2 sm:$0xf] }
 0x1ea   :  { %v2071_v36 = vld [vmem:[#allocation2 + $0xd0] ss:$2 sm:$0xff]  ;;  %v2103_v56 = vld [vmem:[#allocation2 + $0xd1] ss:$2 sm:$0xff]  ;;  %v1671_v17 = vpop.f32.mrf.mxu0  ;;  %v1127_v55 = vsel %vm1064_vm0, %v5334_v31, %v485_v7  ;;  %v2643_v31 = vcombine.low %v2332_v0, %v2334_v13 }
 0x1eb   :  { %v2128_v16 = vmax.f32 %v2071_v36, %v2103_v56  ;;  %v1879_v51 = vmax.f32 %v1677_v24, 0.0  ;;  %v1672_v58 = vadd.f32 %v5191_v27, %v1671_v17  ;;  %v2400_v13 = vld [vmem:[#allocation3 + $0x63] ss:$2 sm:$0xf] }
 0x1ec   :  { %v743_v57 = vpop.permute.xlu1 %742 }
 0x1ed   :  { %v2144_v25 = vmax.f32 %v2048_v49, %v2128_v16  ;;  %1944 = vst.msk [vmem:[#allocation2 + $0xe8] sm:$0xff] %vm1914_vm4, %v1879_v51  ;;  %v1878_v52 = vmax.f32 %v1672_v58, 0.0  ;;  %v741_v53 = vpop.permute.xlu0 %740  ;;  %2599 = vrot.lane.b32.xlu1 %v2595_v37, %s4178_s17  ;;  %v1193_v28 = vsel %vm1129_vm1, %v1128_v62, %v743_v57  ;;  %v2368_v58 = vld [vmem:[#allocation3 + $0x61] ss:$2 sm:$0xf] }
 0x1ee   :  { %v1192_v14 = vsel %vm1129_vm1, %v1127_v55, %v741_v53  ;;  %v2384_v37 = vld [vmem:[#allocation3 + $0x62] ss:$2 sm:$0xf] }
 0x1ef   :  { %2211 = vst.msk [vmem:[#allocation3 + $0x71] sm:$0xff] %vm1914_vm4, %v2144_v25  ;;  %1943 = vst.msk [vmem:[#allocation2 + $0xe0] sm:$0xff] %vm1914_vm4, %v1878_v52 }
 0x1f0   :  { %v999_v1 = vpop.permute.xlu1 %998 }
 0x1f1   :  { %v1258_v15 = vsel %vm1194_vm2, %v1193_v28, %v999_v1  ;;  %v997_v43 = vpop.permute.xlu0 %996  ;;  %2623 = vrot.lane.b32.xlu1 %v2619_v40, %s4174_s12 }
 0x1f2   :  { %v1257_v6 = vsel %vm1194_vm2, %v1192_v14, %v997_v43 }
 0x1f3   :  { %4007 = vmatprep.mubr.msk.f32.mxu0 %vm1272_vm3, %v1257_v6 }
 0x1f4   :  { %v3961_v18 = vpop.f32.mrf.mxu0  ;;  %4008 = vmatmul.mubr.msk.f32.gmra.mxu0 %vm1272_vm3, %v1258_v15 }
 0x1f5   :  { %v1687_v46 = vadd.f32 %v3961_v18, %v5191_v27  ;;  %2647 = vrot.lane.b32.xlu1 %v2643_v31, %s4179_s18 }
 0x1f6   :  { %v1681_v22 = vpop.f32.mrf.mxu0  ;;  %v2290_v29 = vld [vmem:[#allocation3 + $0x70] ss:$2 sm:$0xf]  ;;  %v2306_v5 = vld [vmem:[#allocation3 + $0x71] ss:$2 sm:$0xf] }
 0x1f7   :  { %v1881_v41 = vmax.f32 %v1687_v46, 0.0  ;;  %v1682_v44 = vadd.f32 %v5191_v27, %v1681_v22  ;;  %v2572_v4 = vcombine.low %v2288_v21, %v2290_v29  ;;  %v2596_v9 = vcombine.low %v2304_v8, %v2306_v5  ;;  %v2322_v10 = vld [vmem:[#allocation3 + $0x72] ss:$2 sm:$0xf]  ;;  %v1993_v19 = vld [vmem:[#allocation2 + $0xe0] ss:$2 sm:$0xff] }
 0x1f8   :  { %v2025_v38 = vld [vmem:[#allocation2 + $0xe1] ss:$2 sm:$0xff]  ;;  %v2620_v23 = vcombine.low %v2320_v11, %v2322_v10  ;;  %v2338_v45 = vld [vmem:[#allocation3 + $0x73] ss:$2 sm:$0xf] }
 0x1f9   :  { %1946 = vst.msk [vmem:[#allocation2 + $0xf8] sm:$0xff] %vm1914_vm4, %v1881_v41  ;;  %v1880_v47 = vmax.f32 %v1682_v44, 0.0  ;;  %2577 = vrot.lane.b32.xlu0 %v2572_v4, %s4172_s21  ;;  %v2049_v26 = vmax.f32 %v1993_v19, %v2025_v38  ;;  %v2644_v12 = vcombine.low %v2336_v48, %v2338_v45  ;;  %v2261_v48 = vld [vmem:[#allocation3 + $0xa2] ss:$2 sm:$0xf] }
 0x1fb   :  { %1945 = vst.msk [vmem:[#allocation2 + $0xf0] sm:$0xff] %vm1914_vm4, %v1880_v47 }
 0x1fd   :  { %2601 = vrot.lane.b32.xlu0 %v2596_v9, %s4178_s17 }
 0x200   :  { %v3964_v39 = vpop.f32.mrf.mxu0 }
 0x201   :  { %v1697_v20 = vadd.f32 %v3964_v39, %v5191_v27  ;;  %2625 = vrot.lane.b32.xlu0 %v2620_v23, %s4174_s12 }
 0x202   :  { %v2073_v32 = vld [vmem:[#allocation2 + $0xf0] ss:$2 sm:$0xff]  ;;  %v2105_v2 = vld [vmem:[#allocation2 + $0xf1] ss:$2 sm:$0xff]  ;;  %v1691_v33 = vpop.f32.mrf.mxu0 }
 0x203   :  { %v2129_v30 = vmax.f32 %v2073_v32, %v2105_v2  ;;  %v1883_v34 = vmax.f32 %v1697_v20, 0.0  ;;  %v1692_v35 = vadd.f32 %v5555_v63, %v1691_v33  ;;  %v2245_v2 = vld [vmem:[#allocation3 + $0xa1] ss:$2 sm:$0xf] }
 0x205   :  { %v2145_v42 = vmax.f32 %v2049_v26, %v2129_v30  ;;  %1948 = vst.msk [vmem:[#allocation2 + $0x108] sm:$0xff] %vm1914_vm4, %v1883_v34  ;;  %v1882_v27 = vmax.f32 %v1692_v35, 0.0  ;;  %2649 = vrot.lane.b32.xlu0 %v2644_v12, %s4179_s18 }
 0x207   :  { %2212 = vst.msk [vmem:[#allocation3 + $0x81] sm:$0xff] %vm1914_vm4, %v2145_v42  ;;  %1947 = vst.msk [vmem:[#allocation2 + $0x100] sm:$0xff] %vm1914_vm4, %v1882_v27 }
 0x20c   :  { %v3967_v61 = vpop.f32.mrf.mxu0 }
 0x20d   :  { %v1707_v24 = vadd.f32 %v5555_v63, %v3967_v61  ;;  %v2277_v61 = vld [vmem:[#allocation3 + $0xa3] ss:$2 sm:$0xf] }
 0x20e   :  { %v1701_v7 = vpop.f32.mrf.mxu0  ;;  %v2354_v17 = vld [vmem:[#allocation3 + $0x80] ss:$2 sm:$0xf]  ;;  %v2370_v51 = vld [vmem:[#allocation3 + $0x81] ss:$2 sm:$0xf] }
 0x20f   :  { %v1885_v36 = vmax.f32 %v1707_v24, 0.0  ;;  %v1702_v56 = vadd.f32 %v5555_v63, %v1701_v7  ;;  %v2668_v49 = vcombine.low %v2352_v60, %v2354_v17  ;;  %v2692_v59 = vcombine.low %v2368_v58, %v2370_v51  ;;  %v2386_v57 = vld [vmem:[#allocation3 + $0x82] ss:$2 sm:$0xf]  ;;  %v2027_v52 = vld [vmem:[#allocation2 + $0x101] ss:$2 sm:$0xff] }
 0x210   :  { %v1995_v25 = vld [vmem:[#allocation2 + $0x100] ss:$2 sm:$0xff]  ;;  %v2716_v54 = vcombine.low %v2384_v37, %v2386_v57  ;;  %v2402_v3 = vld [vmem:[#allocation3 + $0x83] ss:$2 sm:$0xf] }
 0x211   :  { %1950 = vst.msk [vmem:[#allocation2 + $0x118] sm:$0xff] %vm1914_vm4, %v1885_v36  ;;  %v1884_v16 = vmax.f32 %v1702_v56, 0.0  ;;  %2673 = vrot.lane.b32.xlu0 %v2668_v49, %s4180_s2  ;;  %v2050_v40 = vmax.f32 %v1995_v25, %v2027_v52  ;;  %v2740_v6 = vcombine.low %v2400_v13, %v2402_v3  ;;  %v2350_v49 = vld [vmem:[#allocation3 + $0x40] ss:$2 sm:$0xf]  ;;  %v2504_v3 = vpop.permute.xlu0 %2503 }
 0x212   :  { %v2348_v52 = vld [vmem:[#allocation3 + $0x20] ss:$2 sm:$0xf] }
 0x213   :  { %1949 = vst.msk [vmem:[#allocation2 + $0x110] sm:$0xff] %vm1914_vm4, %v1884_v16 }
 0x215   :  { %2697 = vrot.lane.b32.xlu0 %v2692_v59, %s4181_s1 }
 0x218   :  { %v3970_v53 = vpop.f32.mrf.mxu0 }
 0x219   :  { %v1717_v62 = vadd.f32 %v5555_v63, %v3970_v53  ;;  %2721 = vrot.lane.b32.xlu0 %v2716_v54, %s4182_s23  ;;  %v2667_v53 = vcombine.low %v2348_v52, %v2350_v49 }
 0x21a   :  { %v2075_v55 = vld [vmem:[#allocation2 + $0x110] ss:$2 sm:$0xff]  ;;  %v2107_v28 = vld [vmem:[#allocation2 + $0x111] ss:$2 sm:$0xff]  ;;  %v1711_v1 = vpop.f32.mrf.mxu0 }
 0x21b   :  { %v2130_v14 = vmax.f32 %v2075_v55, %v2107_v28  ;;  %v1887_v15 = vmax.f32 %v1717_v62, 0.0  ;;  %v1712_v43 = vadd.f32 %v5555_v63, %v1711_v1  ;;  %v2227_v55 = vld [vmem:[#allocation3 + $0x60] ss:$2 sm:$0xf] }
 0x21d   :  { %v2146_v0 = vmax.f32 %v2050_v40, %v2130_v14  ;;  %1952 = vst.msk [vmem:[#allocation2 + $0x128] sm:$0xff] %vm1914_vm4, %v1887_v15  ;;  %v1886_v18 = vmax.f32 %v1712_v43, 0.0  ;;  %2745 = vrot.lane.b32.xlu0 %v2740_v6, %s4183_s24  ;;  %v2528_v40 = vpop.permute.xlu0 %2527  ;;  %v2225_v14 = vld [vmem:[#allocation3 + $0x40] ss:$2 sm:$0xf] }
 0x21e   :  { %v2484_v43 = vcombine.low %v2225_v14, %v2227_v55 }
 0x21f   :  { %2213 = vst.msk [vmem:[#allocation3 + $0xb1] sm:$0xff] %vm1914_vm4, %v2146_v0  ;;  %1951 = vst.msk [vmem:[#allocation2 + $0x120] sm:$0xff] %vm1914_vm4, %v1886_v18 }
 0x224   :  { %v3973_v31 = vpop.f32.mrf.mxu0 }
 0x225   :  { %v1727_v46 = vadd.f32 %v5555_v63, %v3973_v31 }
 0x226   :  { %v1721_v22 = vpop.f32.mrf.mxu0  ;;  %v1997_v29 = vld [vmem:[#allocation2 + $0x120] ss:$2 sm:$0xff]  ;;  %v2029_v4 = vld [vmem:[#allocation2 + $0x121] ss:$2 sm:$0xff] }
 0x227   :  { %v1889_v21 = vmax.f32 %v1727_v46, 0.0  ;;  %v1722_v41 = vadd.f32 %v5555_v63, %v1721_v22  ;;  %v2051_v11 = vmax.f32 %v1997_v29, %v2029_v4  ;;  %v2292_v6 = vld [vmem:[#allocation3 + $0xb0] ss:$2 sm:$0xf] }
 0x228   :  { %v2221_v4 = vld [vmem:[#allocation3] ss:$2 sm:$0xf] }
 0x229   :  { %1954 = vst.msk [vmem:[#allocation2 + $0x138] sm:$0xff] %vm1914_vm4, %v1889_v21  ;;  %v1888_v44 = vmax.f32 %v1722_v41, 0.0 }
 0x22b   :  { %1953 = vst.msk [vmem:[#allocation2 + $0x130] sm:$0xff] %vm1914_vm4, %v1888_v44 }
 0x230   :  { %v3976_v47 = vpop.f32.mrf.mxu0 }
 0x231   :  { %v1737_v5 = vadd.f32 %v5555_v63, %v3976_v47  ;;  %v2223_v47 = vld [vmem:[#allocation3 + $0x20] ss:$2 sm:$0xf] }
 0x232   :  { %v2077_v8 = vld [vmem:[#allocation2 + $0x130] ss:$2 sm:$0xff]  ;;  %v2109_v9 = vld [vmem:[#allocation2 + $0x131] ss:$2 sm:$0xff]  ;;  %v1731_v10 = vpop.f32.mrf.mxu0 }
 0x233   :  { %v2131_v19 = vmax.f32 %v2077_v8, %v2109_v9  ;;  %v1891_v38 = vmax.f32 %v1737_v5, 0.0  ;;  %v1732_v39 = vadd.f32 %v5555_v63, %v1731_v10  ;;  %v2552_v5 = vpop.permute.xlu0 %2551  ;;  %v2308_v8 = vld [vmem:[#allocation3 + $0xb1] ss:$2 sm:$0xf] }
 0x235   :  { %v2147_v23 = vmax.f32 %v2051_v11, %v2131_v19  ;;  %1956 = vst.msk [vmem:[#allocation2 + $0x148] sm:$0xff] %vm1914_vm4, %v1891_v38  ;;  %v1890_v20 = vmax.f32 %v1732_v39, 0.0  ;;  %v2483_v11 = vcombine.low %v2221_v4, %v2223_v47  ;;  %v2366_v38 = vld [vmem:[#allocation3 + $0x41] ss:$2 sm:$0xf] }
 0x237   :  { %2214 = vst.msk [vmem:[#allocation3 + $0xc1] sm:$0xff] %vm1914_vm4, %v2147_v23  ;;  %1955 = vst.msk [vmem:[#allocation2 + $0x140] sm:$0xff] %vm1914_vm4, %v1890_v20  ;;  %v2851_v39 = vsel %vm1914_vm4, %v2483_v11, %v2504_v3  ;;  %v2576_v23 = vpop.permute.xlu0 %2575  ;;  %v2364_v20 = vld [vmem:[#allocation3 + $0x21] ss:$2 sm:$0xf] }
 0x23c   :  { %v3979_v45 = vpop.f32.mrf.mxu0 }
 0x23d   :  { %v1747_v32 = vadd.f32 %v5555_v63, %v3979_v45  ;;  %v2855_v45 = vsel %vm1064_vm0, %v2851_v39, %v2528_v40 }
 0x23e   :  { %v1741_v33 = vpop.f32.mrf.mxu0  ;;  %v2247_v34 = vld [vmem:[#allocation3 + $0xc1] ss:$2 sm:$0xf]  ;;  %v2263_v42 = vld [vmem:[#allocation3 + $0xc2] ss:$2 sm:$0xf] }
 0x23f   :  { %v1893_v26 = vmax.f32 %v1747_v32, 0.0  ;;  %v1742_v30 = vadd.f32 %v5555_v63, %v1741_v33  ;;  %v2501_v35 = vcombine.low %v2245_v2, %v2247_v34  ;;  %v2525_v27 = vcombine.low %v2261_v48, %v2263_v42  ;;  %v2279_v24 = vld [vmem:[#allocation3 + $0xc3] ss:$2 sm:$0xf]  ;;  %v1999_v7 = vld [vmem:[#allocation2 + $0x140] ss:$2 sm:$0xff] }
 0x240   :  { %v2031_v60 = vld [vmem:[#allocation2 + $0x141] ss:$2 sm:$0xff]  ;;  %v2549_v56 = vcombine.low %v2277_v61, %v2279_v24  ;;  %v2860_v34 = vsel %vm2859_vm6, %v2855_v45, %v2552_v5 }
 0x241   :  { %1958 = vst.msk [vmem:[#allocation2 + $0x158] sm:$0xff] %vm1914_vm4, %v1893_v26  ;;  %v1892_v12 = vmax.f32 %v1742_v30, 0.0  ;;  %2507 = vrot.lane.b32.xlu1 %v2501_v35, %s4176_s0  ;;  %v2052_v59 = vmax.f32 %v1999_v7, %v2031_v60  ;;  %v2691_v30 = vcombine.low %v2364_v20, %v2366_v38 }
 0x243   :  { %1957 = vst.msk [vmem:[#allocation2 + $0x150] sm:$0xff] %vm1914_vm4, %v1892_v12  ;;  %v2864_v12 = vsel %vm1129_vm1, %v2860_v34, %v2576_v23 }
 0x245   :  { %2531 = vrot.lane.b32.xlu1 %v2525_v27, %s4173_s22 }
 0x248   :  { %v3982_v36 = vpop.f32.mrf.mxu0 }
 0x249   :  { %v1757_v17 = vadd.f32 %v5555_v63, %v3982_v36  ;;  %2555 = vrot.lane.b32.xlu1 %v2549_v56, %s4177_s16  ;;  %v2324_v56 = vld [vmem:[#allocation3 + $0xb2] ss:$2 sm:$0xf] }
 0x24a   :  { %v2079_v16 = vld [vmem:[#allocation2 + $0x150] ss:$2 sm:$0xff]  ;;  %v2111_v51 = vld [vmem:[#allocation2 + $0x151] ss:$2 sm:$0xff]  ;;  %v1751_v58 = vpop.f32.mrf.mxu0 }
 0x24b   :  { %v2132_v57 = vmax.f32 %v2079_v16, %v2111_v51  ;;  %v1895_v37 = vmax.f32 %v1757_v17, 0.0  ;;  %v1752_v25 = vadd.f32 %v5555_v63, %v1751_v58 }
 0x24d   :  { %v2148_v54 = vmax.f32 %v2052_v59, %v2132_v57  ;;  %1960 = vst.msk [vmem:[#allocation2 + $0x168] sm:$0xff] %vm1914_vm4, %v1895_v37  ;;  %v1894_v62 = vmax.f32 %v1752_v25, 0.0  ;;  %2671 = vrot.lane.b32.xlu1 %v2667_v53, %s4180_s2  ;;  %v2382_v57 = vld [vmem:[#allocation3 + $0x42] ss:$2 sm:$0xf] }
 0x24e   :  { %v2380_v37 = vld [vmem:[#allocation3 + $0x22] ss:$2 sm:$0xf]  ;;  %v2340_v53 = vld [vmem:[#allocation3 + $0xb3] ss:$2 sm:$0xf] }
 0x24f   :  { %2215 = vst.msk [vmem:[#allocation3 + $0xd1] sm:$0xff] %vm1914_vm4, %v2148_v54  ;;  %1959 = vst.msk [vmem:[#allocation2 + $0x160] sm:$0xff] %vm1914_vm4, %v1894_v62  ;;  %v2715_v25 = vcombine.low %v2380_v37, %v2382_v57 }
 0x253   :  { %v2506_v28 = vpop.permute.xlu1 %2505 }
 0x254   :  { %v3985_v1 = vpop.f32.mrf.mxu0  ;;  %v2852_v46 = vsel %vm1914_vm4, %v2484_v43, %v2506_v28  ;;  %v2396_v43 = vld [vmem:[#allocation3 + $0x23] ss:$2 sm:$0xf] }
 0x255   :  { %v1767_v15 = vadd.f32 %v5555_v63, %v3985_v1  ;;  %v2398_v1 = vld [vmem:[#allocation3 + $0x43] ss:$2 sm:$0xf] }
 0x256   :  { %v1761_v13 = vpop.f32.mrf.mxu0  ;;  %v2294_v31 = vld [vmem:[#allocation3 + $0xd0] ss:$2 sm:$0xf]  ;;  %v2310_v29 = vld [vmem:[#allocation3 + $0xd1] ss:$2 sm:$0xf] }
 0x257   :  { %v1897_v0 = vmax.f32 %v1767_v15, 0.0  ;;  %v1762_v18 = vadd.f32 %v5555_v63, %v1761_v13  ;;  %v2530_v22 = vpop.permute.xlu1 %2529  ;;  %v2573_v21 = vcombine.low %v2292_v6, %v2294_v31  ;;  %v2597_v10 = vcombine.low %v2308_v8, %v2310_v29  ;;  %v2001_v32 = vld [vmem:[#allocation2 + $0x160] ss:$2 sm:$0xff]  ;;  %v2033_v2 = vld [vmem:[#allocation2 + $0x161] ss:$2 sm:$0xff] }
 0x258   :  { %v2856_v44 = vsel %vm1064_vm0, %v2852_v46, %v2530_v22  ;;  %v2326_v48 = vld [vmem:[#allocation3 + $0xd2] ss:$2 sm:$0xf]  ;;  %v2053_v24 = vmax.f32 %v2001_v32, %v2033_v2  ;;  %v2342_v52 = vld [vmem:[#allocation3 + $0xd3] ss:$2 sm:$0xf]  ;;  %v2739_v6 = vcombine.low %v2396_v43, %v2398_v1 }
 0x259   :  { %1962 = vst.msk [vmem:[#allocation2 + $0x178] sm:$0xff] %vm1914_vm4, %v1897_v0  ;;  %v1896_v41 = vmax.f32 %v1762_v18, 0.0  ;;  %2579 = vrot.lane.b32.xlu1 %v2573_v21, %s4172_s21  ;;  %v2621_v16 = vcombine.low %v2324_v56, %v2326_v48  ;;  %v2645_v3 = vcombine.low %v2340_v53, %v2342_v52  ;;  %v2356_v46 = vld [vmem:[#allocation3 + $0xc0] ss:$2 sm:$0xf] }
 0x25a   :  { %v2412_v29 = vld [vmem:[#allocation3 + $0x30] ss:$2 sm:$0xf]  ;;  %v2428_v48 = vld [vmem:[#allocation3 + $0x31] ss:$2 sm:$0xf] }
 0x25b   :  { %1961 = vst.msk [vmem:[#allocation2 + $0x170] sm:$0xff] %vm1914_vm4, %v1896_v41  ;;  %v2554_v9 = vpop.permute.xlu1 %2553  ;;  %v2446_v56 = vld [vmem:[#allocation3 + $0x52] ss:$2 sm:$0xf] }
 0x25c   :  { %v2861_v19 = vsel %vm2859_vm6, %v2856_v44, %v2554_v9  ;;  %v2414_v44 = vld [vmem:[#allocation3 + $0x50] ss:$2 sm:$0xf]  ;;  %v2462_v53 = vld [vmem:[#allocation3 + $0x53] ss:$2 sm:$0xf] }
 0x25d   :  { %2603 = vrot.lane.b32.xlu1 %v2597_v10, %s4178_s17  ;;  %v2763_v9 = vcombine.low %v2412_v29, %v2414_v44 }
 0x25f   :  { %v2600_v33 = vpop.permute.xlu1 %2599 }
 0x260   :  { %v3988_v26 = vpop.f32.mrf.mxu0  ;;  %v2869_v17 = vsel %vm2868_vm7, %v2864_v12, %v2600_v33  ;;  %v2372_v33 = vld [vmem:[#allocation3 + $0xc1] ss:$2 sm:$0xf] }
 0x261   :  { %v1777_v35 = vadd.f32 %v5555_v63, %v3988_v26  ;;  %2695 = vrot.lane.b32.xlu1 %v2691_v30, %s4181_s1 }
 0x262   :  { %v2081_v42 = vld [vmem:[#allocation2 + $0x170] ss:$2 sm:$0xff]  ;;  %v2113_v27 = vld [vmem:[#allocation2 + $0x171] ss:$2 sm:$0xff]  ;;  %v1771_v61 = vpop.f32.mrf.mxu0 }
 0x263   :  { %v2133_v7 = vmax.f32 %v2081_v42, %v2113_v27  ;;  %v1899_v60 = vmax.f32 %v1777_v35, 0.0  ;;  %v1772_v36 = vadd.f32 %v5555_v63, %v1771_v61  ;;  %v2624_v49 = vpop.permute.xlu1 %2623  ;;  %v2430_v35 = vld [vmem:[#allocation3 + $0x51] ss:$2 sm:$0xf] }
 0x264   :  { %v5616_v59 = vsel %vm1194_vm2, %v2869_v17, %v2624_v49  ;;  %v2787_v12 = vcombine.low %v2428_v48, %v2430_v35  ;;  %v2388_v27 = vld [vmem:[#allocation3 + $0xc2] ss:$2 sm:$0xf] }
 0x265   :  { %v2149_v51 = vmax.f32 %v2053_v24, %v2133_v7  ;;  %1964 = vst.msk [vmem:[#allocation2 + $0x188] sm:$0xff] %vm1914_vm4, %v1899_v60  ;;  %v1898_v58 = vmax.f32 %v1772_v36, 0.0  ;;  %2627 = vrot.lane.b32.xlu1 %v2621_v16, %s4174_s12 }
 0x267   :  { %2216 = vst.msk [vmem:[#allocation3 + $0xe1] sm:$0xff] %vm1914_vm4, %v2149_v51  ;;  %1963 = vst.msk [vmem:[#allocation2 + $0x180] sm:$0xff] %vm1914_vm4, %v1898_v58  ;;  %v2444_v51 = vld [vmem:[#allocation3 + $0x32] ss:$2 sm:$0xf] }
 0x268   :  { %v2811_v58 = vcombine.low %v2444_v51, %v2446_v56 }
 0x269   :  { %2719 = vrot.lane.b32.xlu1 %v2715_v25, %s4182_s23  ;;  %v2404_v25 = vld [vmem:[#allocation3 + $0xc3] ss:$2 sm:$0xf] }
 0x26b   :  { %v2578_v54 = vpop.permute.xlu0 %2577 }
 0x26c   :  { %v3991_v62 = vpop.f32.mrf.mxu0  ;;  %v2865_v55 = vsel %vm1129_vm1, %v2861_v19, %v2578_v54  ;;  %v2460_v54 = vld [vmem:[#allocation3 + $0x33] ss:$2 sm:$0xf] }
 0x26d   :  { %v1787_v28 = vadd.f32 %v5555_v63, %v3991_v62  ;;  %2651 = vrot.lane.b32.xlu1 %v2645_v3, %s4179_s18 }
 0x26e   :  { %v1781_v40 = vpop.f32.mrf.mxu0  ;;  %v2358_v31 = vld [vmem:[#allocation3 + $0xe0] ss:$2 sm:$0xf]  ;;  %v2035_v47 = vld [vmem:[#allocation2 + $0x181] ss:$2 sm:$0xff] }
 0x26f   :  { %v1901_v14 = vmax.f32 %v1787_v28, 0.0  ;;  %v1782_v15 = vadd.f32 %v5555_v63, %v1781_v40  ;;  %v2602_v13 = vpop.permute.xlu0 %2601  ;;  %v2669_v21 = vcombine.low %v2356_v46, %v2358_v31  ;;  %v2003_v4 = vld [vmem:[#allocation2 + $0x180] ss:$2 sm:$0xff]  ;;  %v2374_v19 = vld [vmem:[#allocation3 + $0xe1] ss:$2 sm:$0xf]  ;;  %v2835_v28 = vcombine.low %v2460_v54, %v2462_v53 }
 0x270   :  { %v2870_v18 = vsel %vm2868_vm7, %v2865_v55, %v2602_v13  ;;  %v2054_v20 = vmax.f32 %v2003_v4, %v2035_v47  ;;  %v2693_v26 = vcombine.low %v2372_v33, %v2374_v19  ;;  %v2390_v42 = vld [vmem:[#allocation3 + $0xe2] ss:$2 sm:$0xf]  ;;  %v2406_v37 = vld [vmem:[#allocation3 + $0xe3] ss:$2 sm:$0xf] }
 0x271   :  { %1966 = vst.msk [vmem:[#allocation2 + $0x198] sm:$0xff] %vm1914_vm4, %v1901_v14  ;;  %v1900_v0 = vmax.f32 %v1782_v15, 0.0  ;;  %2743 = vrot.lane.b32.xlu1 %v2739_v6, %s4183_s24  ;;  %v2717_v7 = vcombine.low %v2388_v27, %v2390_v42  ;;  %v2741_v52 = vcombine.low %v2404_v25, %v2406_v37  ;;  %v2420_v31 = vld [vmem:[#allocation3 + $0xd0] ss:$2 sm:$0xf] }
 0x272   :  { %v2249_v4 = vld [vmem:[#allocation3 + $0xe1] ss:$2 sm:$0xf]  ;;  %v2265_v19 = vld [vmem:[#allocation3 + $0xe2] ss:$2 sm:$0xf] }
 0x273   :  { %1965 = vst.msk [vmem:[#allocation2 + $0x190] sm:$0xff] %vm1914_vm4, %v1900_v0  ;;  %v2626_v22 = vpop.permute.xlu0 %2625 }
 0x274   :  { %v2874_v41 = vsel %vm1194_vm2, %v2870_v18, %v2626_v22 }
 0x275   :  { %2675 = vrot.lane.b32.xlu1 %v2669_v21, %s4180_s2 }
 0x277   :  { %v2650_v5 = vpop.permute.xlu0 %2649 }
 0x278   :  { %v3994_v8 = vpop.f32.mrf.mxu0  ;;  %v2879_v10 = vsel %vm2877_vm8, %v2874_v41, %v2650_v5 }
 0x279   :  { %v1797_v11 = vadd.f32 %v5555_v63, %v3994_v8  ;;  %2767 = vrot.lane.b32.xlu1 %v2763_v9, %s4184_s25 }
 0x27a   :  { %v2083_v38 = vld [vmem:[#allocation2 + $0x190] ss:$2 sm:$0xff]  ;;  %v2115_v39 = vld [vmem:[#allocation2 + $0x191] ss:$2 sm:$0xff]  ;;  %v1791_v23 = vpop.f32.mrf.mxu0 }
 0x27b   :  { %v2134_v45 = vmax.f32 %v2083_v38, %v2115_v39  ;;  %v1903_v32 = vmax.f32 %v1797_v11, 0.0  ;;  %v1792_v2 = vadd.f32 %v5555_v63, %v1791_v23  ;;  %v2281_v23 = vld [vmem:[#allocation3 + $0xe3] ss:$2 sm:$0xf] }
 0x27d   :  { %v2150_v30 = vmax.f32 %v2054_v20, %v2134_v45  ;;  %1968 = vst.msk [vmem:[#allocation2 + $0x1a8] sm:$0xff] %vm1914_vm4, %v1903_v32  ;;  %v1902_v34 = vmax.f32 %v1792_v2, 0.0  ;;  %2699 = vrot.lane.b32.xlu1 %v2693_v26, %s4181_s1 }
 0x27f   :  { %2217 = vst.msk [vmem:[#allocation3 + $0xf1] sm:$0xff] %vm1914_vm4, %v2150_v30  ;;  %1967 = vst.msk [vmem:[#allocation2 + $0x1a0] sm:$0xff] %vm1914_vm4, %v1902_v34 }
 0x281   :  { %2791 = vrot.lane.b32.xlu1 %v2787_v12, %s4185_s26 }
 0x283   :  { %v2674_v61 = vpop.permute.xlu0 %2673 }
 0x284   :  { %v3997_v24 = vpop.f32.mrf.mxu0  ;;  %v5642_v60 = vsel %vm1272_vm3, %v2879_v10, %v2674_v61 }
 0x285   :  { %v1807_v36 = vadd.f32 %v5555_v63, %v3997_v24  ;;  %2723 = vrot.lane.b32.xlu1 %v2717_v7, %s4182_s23  ;;  %v5670_v24 = vpop.permute.xlu1 %2647  ;;  %v2229_v7 = vld [vmem:[#allocation3 + $0xa0] ss:$2 sm:$0xf] }
 0x286   :  { %v1801_v17 = vpop.f32.mrf.mxu0  ;;  %v2005_v62 = vld [vmem:[#allocation2 + $0x1a0] ss:$2 sm:$0xff]  ;;  %v2037_v3 = vld [vmem:[#allocation2 + $0x1a1] ss:$2 sm:$0xff] }
 0x287   :  { %v1905_v49 = vmax.f32 %v1807_v36, 0.0  ;;  %v1802_v16 = vadd.f32 %v5555_v63, %v1801_v17  ;;  %v2422_v40 = vld [vmem:[#allocation3 + $0xf0] ss:$2 sm:$0xf]  ;;  %v2055_v13 = vmax.f32 %v2005_v62, %v2037_v3 }
 0x288   :  { %v2765_v46 = vcombine.low %v2420_v31, %v2422_v40  ;;  %v2231_v36 = vld [vmem:[#allocation3 + $0xc0] ss:$2 sm:$0xf]  ;;  %v2296_v3 = vld [vmem:[#allocation3 + $0xf0] ss:$2 sm:$0xf] }
 0x289   :  { %1970 = vst.msk [vmem:[#allocation2 + $0x1b8] sm:$0xff] %vm1914_vm4, %v1905_v49  ;;  %v1904_v57 = vmax.f32 %v1802_v16, 0.0  ;;  %2815 = vrot.lane.b32.xlu1 %v2811_v58, %s4186_s27  ;;  %v2426_v16 = vld [vmem:[#allocation3 + $0x130] ss:$2 sm:$0xf]  ;;  %v2485_v51 = vcombine.low %v2229_v7, %v2231_v36 }
 0x28a   :  { %v2458_v31 = vld [vmem:[#allocation3 + $0x132] ss:$2 sm:$0xf] }
 0x28b   :  { %1969 = vst.msk [vmem:[#allocation2 + $0x1b0] sm:$0xff] %vm1914_vm4, %v1904_v57 }
 0x28d   :  { %2747 = vrot.lane.b32.xlu1 %v2741_v52, %s4183_s24  ;;  %v2442_v52 = vld [vmem:[#allocation3 + $0x131] ss:$2 sm:$0xf] }
 0x290   :  { %v4000_v55 = vpop.f32.mrf.mxu0 }
 0x291   :  { %v1817_v1 = vadd.f32 %v5555_v63, %v4000_v55  ;;  %2839 = vrot.lane.b32.xlu1 %v2835_v28, %s4187_s28 }
 0x292   :  { %v2085_v14 = vld [vmem:[#allocation2 + $0x1b0] ss:$2 sm:$0xff]  ;;  %v2117_v15 = vld [vmem:[#allocation2 + $0x1b1] ss:$2 sm:$0xff]  ;;  %v1811_v43 = vpop.f32.mrf.mxu0 }
 0x293   :  { %v2135_v6 = vmax.f32 %v2085_v14, %v2117_v15  ;;  %v1907_v0 = vmax.f32 %v1817_v1, 0.0  ;;  %v1812_v18 = vadd.f32 %v5555_v63, %v1811_v43 }
 0x295   :  { %v2151_v22 = vmax.f32 %v2055_v13, %v2135_v6  ;;  %1972 = vst.msk [vmem:[#allocation2 + $0x1c8] sm:$0xff] %vm1914_vm4, %v1907_v0  ;;  %v1906_v21 = vmax.f32 %v1812_v18, 0.0  ;;  %2771 = vrot.lane.b32.xlu1 %v2765_v46, %s4184_s25  ;;  %v2312_v13 = vld [vmem:[#allocation3 + $0xf1] ss:$2 sm:$0xf] }
 0x297   :  { %2218 = vst.msk [vmem:[#allocation3 + $0x101] sm:$0xff] %vm1914_vm4, %v2151_v22  ;;  %1971 = vst.msk [vmem:[#allocation2 + $0x1c0] sm:$0xff] %vm1914_vm4, %v1906_v21  ;;  %v2328_v22 = vld [vmem:[#allocation3 + $0xf2] ss:$2 sm:$0xf] }
 0x298   :  { %v2474_v21 = vld [vmem:[#allocation3 + $0x133] ss:$2 sm:$0xf] }
 0x29c   :  { %v4003_v41 = vpop.f32.mrf.mxu0 }
 0x29d   :  { %v1827_v44 = vadd.f32 %v5555_v63, %v4003_v41 }
 0x29e   :  { %v1821_v29 = vpop.f32.mrf.mxu0  ;;  %v2251_v8 = vld [vmem:[#allocation3 + $0x101] ss:$2 sm:$0xf]  ;;  %v2267_v11 = vld [vmem:[#allocation3 + $0x102] ss:$2 sm:$0xf] }
 0x29f   :  { %v1909_v47 = vmax.f32 %v1827_v44, 0.0  ;;  %v1822_v5 = vadd.f32 %v5555_v63, %v1821_v29  ;;  %v2502_v9 = vcombine.low %v2249_v4, %v2251_v8  ;;  %v2526_v38 = vcombine.low %v2265_v19, %v2267_v11  ;;  %v2283_v39 = vld [vmem:[#allocation3 + $0x103] ss:$2 sm:$0xf]  ;;  %v2007_v20 = vld [vmem:[#allocation2 + $0x1c0] ss:$2 sm:$0xff] }
 0x2a0   :  { %v2039_v45 = vld [vmem:[#allocation2 + $0x1c1] ss:$2 sm:$0xff]  ;;  %v2550_v2 = vcombine.low %v2281_v23, %v2283_v39  ;;  %v2932_v39 = vld [vmem:[%s5989_s3 + $0x58] sm:$0xff]  ;;  %v2931_v23 = vld [vmem:[%s5989_s3 + $0x50] sm:$0xff] }
 0x2a1   :  { %1974 = vst.msk [vmem:[#allocation2 + $0x1d8] sm:$0xff] %vm1914_vm4, %v1909_v47  ;;  %v1908_v10 = vmax.f32 %v1822_v5, 0.0  ;;  %2509 = vrot.lane.b32.xlu0 %v2502_v9, %s4176_s0  ;;  %v2056_v35 = vmax.f32 %v2007_v20, %v2039_v45  ;;  %4010 = vmatprep.subr.mxu1 %v2932_v39 }
 0x2a2   :  { %4011 = vmatpush3.msra.mxu1 %v2932_v39  ;;  %v2470_v39 = vld [vmem:[#allocation3 + $0xf3] ss:$2 sm:$0xf] }
 0x2a3   :  { %1973 = vst.msk [vmem:[#allocation2 + $0x1d0] sm:$0xff] %vm1914_vm4, %v1908_v10  ;;  %4012 = vmatprep.subr.mxu1 %v2931_v23 }
 0x2a4   :  { %4013 = vmatpush3.msra.mxu1 %v2931_v23 }
 0x2a5   :  { %2533 = vrot.lane.b32.xlu0 %v2526_v38, %s4173_s22  ;;  %v2344_v38 = vld [vmem:[#allocation3 + $0xf3] ss:$2 sm:$0xf] }
 0x2a8   :  { %v4006_v32 = vpop.f32.mrf.mxu0 }
 0x2a9   :  { %v1837_v33 = vadd.f32 %v5555_v63, %v4006_v32  ;;  %2557 = vrot.lane.b32.xlu0 %v2550_v2, %s4177_s16  ;;  %v2416_v32 = vld [vmem:[#allocation3 + $0x70] ss:$2 sm:$0xf] }
 0x2aa   :  { %v2087_v26 = vld [vmem:[#allocation2 + $0x1d0] ss:$2 sm:$0xff]  ;;  %v2119_v30 = vld [vmem:[#allocation2 + $0x1d1] ss:$2 sm:$0xff]  ;;  %v1831_v34 = vpop.f32.mrf.mxu0 }
 0x2ab   :  { %v2136_v48 = vmax.f32 %v2087_v26, %v2119_v30  ;;  %v1911_v12 = vmax.f32 %v1837_v33, 0.0  ;;  %v1832_v42 = vadd.f32 %v5555_v63, %v1831_v34  ;;  %v2418_v2 = vld [vmem:[#allocation3 + $0x90] ss:$2 sm:$0xf]  ;;  %v2930_v26 = vld [vmem:[%s5989_s3 + $0x48] sm:$0xff]  ;;  %v2929_v30 = vld [vmem:[%s5989_s3 + $0x40] sm:$0xff] }
 0x2ac   :  { %v2764_v34 = vcombine.low %v2416_v32, %v2418_v2  ;;  %4014 = vmatprep.subr.mxu1 %v2930_v26 }
 0x2ad   :  { %v2152_v27 = vmax.f32 %v2056_v35, %v2136_v48  ;;  %1976 = vst.msk [vmem:[#allocation2 + $0x1e8] sm:$0xff] %vm1914_vm4, %v1911_v12  ;;  %v1910_v61 = vmax.f32 %v1832_v42, 0.0  ;;  %4015 = vmatpush3.msra.mxu1 %v2930_v26  ;;  %v2928_v48 = vld [vmem:[%s5989_s3 + $0x38] sm:$0xff]  ;;  %v2927_v12 = vld [vmem:[%s5989_s3 + $0x30] sm:$0xff] }
 0x2ae   :  { %4016 = vmatprep.subr.mxu1 %v2929_v30 }
 0x2af   :  { %2219 = vst.msk [vmem:[#allocation3 + $0x111] sm:$0xff] %vm1914_vm4, %v2152_v27  ;;  %1975 = vst.msk [vmem:[#allocation2 + $0x1e0] sm:$0xff] %vm1914_vm4, %v1910_v61  ;;  %4017 = vmatpush3.msra.mxu1 %v2929_v30  ;;  %v2360_v27 = vld [vmem:[#allocation3 + $0x100] ss:$2 sm:$0xf] }
 0x2b0   :  { %4018 = vmatprep.subr.mxu1 %v2928_v48 }
 0x2b1   :  { %4019 = vmatpush3.msra.mxu1 %v2928_v48 }
 0x2b2   :  { %4020 = vmatprep.subr.mxu1 %v2927_v12 }
 0x2b3   :  { %v2508_v56 = vpop.permute.xlu1 %2507  ;;  %4021 = vmatpush3.msra.mxu1 %v2927_v12 }
 0x2b4   :  { %v4009_v17 = vpop.f32.mrf.mxu0  ;;  %v2853_v53 = vsel %vm1914_vm4, %v2485_v51, %v2508_v56  ;;  %v2376_v51 = vld [vmem:[#allocation3 + $0x101] ss:$2 sm:$0xf] }
 0x2b5   :  { %v1847_v49 = vadd.f32 %v5555_v63, %v4009_v17  ;;  %v2926_v17 = vld [vmem:[%s5989_s3 + $0x28] sm:$0xff] }
 0x2b6   :  { %v1841_v58 = vpop.f32.mrf.mxu0  ;;  %v2424_v25 = vld [vmem:[#allocation3 + $0x110] ss:$2 sm:$0xf]  ;;  %v2440_v14 = vld [vmem:[#allocation3 + $0x111] ss:$2 sm:$0xf]  ;;  %4022 = vmatprep.subr.mxu1 %v2926_v17 }
 0x2b7   :  { %v1913_v57 = vmax.f32 %v1847_v49, 0.0  ;;  %v1842_v37 = vadd.f32 %v5555_v63, %v1841_v58  ;;  %v2532_v54 = vpop.permute.xlu1 %2531  ;;  %v2766_v62 = vcombine.low %v2424_v25, %v2426_v16  ;;  %v2298_v55 = vld [vmem:[#allocation3 + $0x110] ss:$2 sm:$0xf]  ;;  %v2790_v43 = vcombine.low %v2440_v14, %v2442_v52  ;;  %v2009_v41 = vld [vmem:[#allocation2 + $0x1e0] ss:$2 sm:$0xff]  ;;  %4023 = vmatpush3.msra.mxu1 %v2926_v17 }
 0x2b8   :  { %v2857_v1 = vsel %vm1064_vm0, %v2853_v53, %v2532_v54  ;;  %v2574_v40 = vcombine.low %v2296_v3, %v2298_v55  ;;  %v2314_v15 = vld [vmem:[#allocation3 + $0x111] ss:$2 sm:$0xf]  ;;  %v2456_v18 = vld [vmem:[#allocation3 + $0x112] ss:$2 sm:$0xf] }
 0x2b9   :  { %1978 = vst.msk [vmem:[#allocation2 + $0x1f8] sm:$0xff] %vm1914_vm4, %v1913_v57  ;;  %v1912_v28 = vmax.f32 %v1842_v37, 0.0  ;;  %2773 = vrot.lane.b32.xlu1 %v2766_v62, %s4184_s25  ;;  %v2598_v0 = vcombine.low %v2312_v13, %v2314_v15  ;;  %v2330_v46 = vld [vmem:[#allocation3 + $0x112] ss:$2 sm:$0xf]  ;;  %v2814_v29 = vcombine.low %v2456_v18, %v2458_v31  ;;  %v2925_v49 = vld [vmem:[%s5989_s3 + $0x20] sm:$0xff] }
 0x2ba   :  { %2581 = vrot.lane.b32.xlu0 %v2574_v40, %s4172_s21  ;;  %v2041_v44 = vld [vmem:[#allocation2 + $0x1e1] ss:$2 sm:$0xff]  ;;  %v2622_v4 = vcombine.low %v2328_v22, %v2330_v46  ;;  %v2472_v47 = vld [vmem:[#allocation3 + $0x113] ss:$2 sm:$0xf]  ;;  %4024 = vmatprep.subr.mxu1 %v2925_v49 }
 0x2bb   :  { %1977 = vst.msk [vmem:[#allocation2 + $0x1f0] sm:$0xff] %vm1914_vm4, %v1912_v28  ;;  %v2556_v63 = vpop.permute.xlu1 %2555  ;;  %v2346_v5 = vld [vmem:[#allocation3 + $0x113] ss:$2 sm:$0xf]  ;;  %v2057_v10 = vmax.f32 %v2009_v41, %v2041_v44  ;;  %v2838_v19 = vcombine.low %v2472_v47, %v2474_v21  ;;  %4025 = vmatpush3.msra.mxu1 %v2925_v49  ;;  %v2921_v40 = vld [vmem:[%s5989_s3] sm:$0xff] }
 0x2bc   :  { %v2862_v6 = vsel %vm2859_vm6, %v2857_v1, %v2556_v63  ;;  %v2646_v45 = vcombine.low %v2344_v38, %v2346_v5  ;;  %v2434_v57 = vld [vmem:[#allocation3 + $0x91] ss:$2 sm:$0xf]  ;;  %v2924_v52 = vld [vmem:[%s5989_s3 + $0x18] sm:$0xff]  ;;  %v2922_v1 = vld [vmem:[%s5989_s3 + $0x8] sm:$0xff] }
 0x2bd   :  { %2797 = vrot.lane.b32.xlu1 %v2790_v43, %s4185_s26  ;;  %v2432_v25 = vld [vmem:[#allocation3 + $0x71] ss:$2 sm:$0xf]  ;;  %4026 = vmatprep.subr.mxu1 %v2924_v52  ;;  %v2392_v28 = vld [vmem:[#allocation3 + $0x102] ss:$2 sm:$0xf] }
 0x2be   :  { %2605 = vrot.lane.b32.xlu0 %v2598_v0, %s4178_s17  ;;  %v2923_v53 = vld [vmem:[%s5989_s3 + $0x10] sm:$0xff]  ;;  %4027 = vmatpush3.msra.mxu1 %v2924_v52  ;;  %v2788_v54 = vcombine.low %v2432_v25, %v2434_v57  ;;  %v2408_v31 = vld [vmem:[#allocation3 + $0x103] ss:$2 sm:$0xf] }
 0x2bf   :  { %v5694_v33 = vpop.permute.xlu1 %2671  ;;  %4028 = vmatprep.subr.mxu1 %v2923_v53  ;;  %v2448_v63 = vld [vmem:[#allocation3 + $0x72] ss:$2 sm:$0xf]  ;;  %v2464_v21 = vld [vmem:[#allocation3 + $0x73] ss:$2 sm:$0xf] }
 0x2c0   :  { %4029 = vmatpush3.msra.mxu1 %v2923_v53  ;;  %v2450_v43 = vld [vmem:[#allocation3 + $0x92] ss:$2 sm:$0xf]  ;;  %v2466_v41 = vld [vmem:[#allocation3 + $0x93] ss:$2 sm:$0xf] }
 0x2c1   :  { %2821 = vrot.lane.b32.xlu1 %v2814_v29, %s4186_s27  ;;  %4030 = vmatprep.subr.mxu1 %v2922_v1  ;;  %v2812_v13 = vcombine.low %v2448_v63, %v2450_v43  ;;  %v2836_v44 = vcombine.low %v2464_v21, %v2466_v41  ;;  %v2436_v5 = vld [vmem:[#allocation3 + $0xd1] ss:$2 sm:$0xf] }
 0x2c2   :  { %v2089_v8 = vld [vmem:[#allocation2 + $0x1f0] ss:$2 sm:$0xff]  ;;  %v2121_v9 = vld [vmem:[#allocation2 + $0x1f1] ss:$2 sm:$0xff]  ;;  %2629 = vrot.lane.b32.xlu0 %v2622_v4, %s4174_s12  ;;  %4031 = vmatpush3.msra.mxu1 %v2922_v1  ;;  %s4189_s12 = smov 32  }
 0x2c3   :  { %v2137_v11 = vmax.f32 %v2089_v8, %v2121_v9  ;;  %4032 = vmatprep.subr.mxu1 %v2921_v40  ;;  %v2438_v4 = vld [vmem:[#allocation3 + $0xf1] ss:$2 sm:$0xf]  ;;  %v2233_v1 = vld [vmem:[#allocation3 + $0xe0] ss:$2 sm:$0xf] }
 0x2c4   :  { %4033 = vmatpush3.msra.mxu1 %v2921_v40  ;;  %v2789_v8 = vcombine.low %v2436_v5, %v2438_v4 }
 0x2c5   :  { %v2153_v20 = vmax.f32 %v2057_v10, %v2137_v11  ;;  %2845 = vrot.lane.b32.xlu1 %v2838_v19, %s4187_s28  ;;  %4040 = vmatprep.subr.mxu1 %v4175_v50  ;;  %v2454_v10 = vld [vmem:[#allocation3 + $0xf2] ss:$2 sm:$0xf] }
 0x2c6   :  { %2653 = vrot.lane.b32.xlu0 %v2646_v45, %s4179_s18  ;;  %v2452_v11 = vld [vmem:[#allocation3 + $0xd2] ss:$2 sm:$0xf] }
 0x2c7   :  { %2220 = vst.msk [vmem:[#allocation3 + $0x121] sm:$0xff] %vm1914_vm4, %v2153_v20  ;;  %v2813_v19 = vcombine.low %v2452_v11, %v2454_v10  ;;  %v2468_v20 = vld [vmem:[#allocation3 + $0xd3] ss:$2 sm:$0xf] }
 0x2c8   :  { %v2837_v45 = vcombine.low %v2468_v20, %v2470_v39 }
 0x2ca   :  { %2769 = vrot.lane.b32.xlu0 %v2764_v34, %s4184_s25  ;;  %v2878_v34 = vsel %vm2877_vm8, %v5616_v59, %v5670_v24 }
 0x2cb   :  { %v2580_v35 = vpop.permute.xlu1 %2579 }
 0x2cc   :  { %v2866_v42 = vsel %vm1129_vm1, %v2862_v6, %v2580_v35  ;;  %v2882_v35 = vsel %vm1272_vm3, %v2878_v34, %v5694_v33 }
 0x2ce   :  { %v2362_v61 = vld [vmem:[#allocation3 + $0x120] ss:$2 sm:$0xf]  ;;  %v2378_v56 = vld [vmem:[#allocation3 + $0x121] ss:$2 sm:$0xf] }
 0x2cf   :  { %v2670_v7 = vcombine.low %v2360_v27, %v2362_v61  ;;  %v2604_v36 = vpop.permute.xlu1 %2603  ;;  %v2694_v58 = vcombine.low %v2376_v51, %v2378_v56  ;;  %v2394_v3 = vld [vmem:[#allocation3 + $0x122] ss:$2 sm:$0xf]  ;;  %v2410_v0 = vld [vmem:[#allocation3 + $0x123] ss:$2 sm:$0xf]  ;;  %v2698_v56 = vpop.permute.xlu0 %2697 }
 0x2d0   :  { %v2871_v16 = vsel %vm2868_vm7, %v2866_v42, %v2604_v36  ;;  %v2718_v14 = vcombine.low %v2392_v28, %v2394_v3  ;;  %v2742_v46 = vcombine.low %v2408_v31, %v2410_v0 }
 0x2d1   :  { %2677 = vrot.lane.b32.xlu0 %v2670_v7, %s4180_s2 }
 0x2d3   :  { %v5718_v37 = vpop.permute.xlu1 %2695  ;;  %v2722_v17 = vpop.permute.xlu0 %2721 }
 0x2d4   :  { %v2887_v48 = vsel %vm2886_vm9, %v2882_v35, %v5718_v37 }
 0x2d5   :  { %2701 = vrot.lane.b32.xlu0 %v2694_v58, %s4181_s1 }
 0x2d7   :  { %v2628_v62 = vpop.permute.xlu1 %2627  ;;  %v2746_v49 = vpop.permute.xlu0 %2745 }
 0x2d8   :  { %v2875_v55 = vsel %vm1194_vm2, %v2871_v16, %v2628_v62 }
 0x2d9   :  { %2793 = vrot.lane.b32.xlu0 %v2788_v54, %s4185_s26 }
 0x2db   :  { %v2720_v15 = vpop.permute.xlu1 %2719 }
 0x2dc   :  { %v2892_v12 = vsel %vm2891_vm10, %v2887_v48, %v2720_v15 }
 0x2dd   :  { %2725 = vrot.lane.b32.xlu0 %v2718_v14, %s4182_s23 }
 0x2df   :  { %v2652_v6 = vpop.permute.xlu1 %2651 }
 0x2e0   :  { %v2880_v18 = vsel %vm2877_vm8, %v2875_v55, %v2652_v6  ;;  %v2235_v55 = vld [vmem:[#allocation3 + $0x100] ss:$2 sm:$0xf]  ;;  %v2888_v6 = vsel %vm2886_vm9, %v5642_v60, %v2698_v56 }
 0x2e1   :  { %2817 = vrot.lane.b32.xlu0 %v2812_v13, %s4186_s27  ;;  %v2486_v40 = vcombine.low %v2233_v1, %v2235_v55  ;;  %v2893_v31 = vsel %vm2891_vm10, %v2888_v6, %v2722_v17 }
 0x2e2   :  { %v2898_v21 = vsel %vm2896_vm12, %v2893_v31, %v2746_v49 }
 0x2e3   :  { %v2744_v22 = vpop.permute.xlu1 %2743 }
 0x2e4   :  { %v2897_v27 = vsel %vm2896_vm12, %v2892_v12, %v2744_v22 }
 0x2e5   :  { %2749 = vrot.lane.b32.xlu0 %v2742_v46, %s4183_s24 }
 0x2e7   :  { %v2676_v29 = vpop.permute.xlu1 %2675 }
 0x2e8   :  { %v2884_v47 = vsel %vm1272_vm3, %v2880_v18, %v2676_v29 }
 0x2e9   :  { %2841 = vrot.lane.b32.xlu0 %v2836_v44, %s4187_s28 }
 0x2eb   :  { %v2768_v9 = vpop.permute.xlu1 %2767 }
 0x2ec   :  { %v2902_v7 = vsel %vm2901_vm11, %v2897_v27, %v2768_v9  ;;  %v3160_v27 = vld [vmem:[%s5991_s5 + $0x30] sm:$0xff] }
 0x2ed   :  { %2795 = vrot.lane.b32.xlu0 %v2789_v8, %s4185_s26 }
 0x2ef   :  { %v2700_v38 = vpop.permute.xlu1 %2699 }
 0x2f0   :  { %v2889_v23 = vsel %vm2886_vm9, %v2884_v47, %v2700_v38 }
 0x2f1   :  { %2819 = vrot.lane.b32.xlu0 %v2813_v19, %s4186_s27 }
 0x2f3   :  { %v2792_v32 = vpop.permute.xlu1 %2791 }
 0x2f4   :  { %v2907_v59 = vsel %vm2906_vm13, %v2902_v7, %v2792_v32  ;;  %v3158_v7 = vld [vmem:[%s5991_s5 + $0x20] sm:$0xff] }
 0x2f5   :  { %2843 = vrot.lane.b32.xlu0 %v2837_v45, %s4187_s28 }
 0x2f7   :  { %v2724_v2 = vpop.permute.xlu1 %2723 }
 0x2f8   :  { %v2894_v26 = vsel %vm2891_vm10, %v2889_v23, %v2724_v2 }
 0x2fb   :  { %v2816_v30 = vpop.permute.xlu1 %2815 }
 0x2fc   :  { %v2912_v24 = vsel %vm2911_vm14, %v2907_v59, %v2816_v30  ;;  %v3764_v59 = vld [vmem:[%s5990_s4] ss:$0 sm:$0xff] }
 0x2ff   :  { %v2748_v42 = vpop.permute.xlu1 %2747 }
 0x300   :  { %v2899_v61 = vsel %vm2896_vm12, %v2894_v26, %v2748_v42  ;;  %v3161_v42 = vld [vmem:[%s5991_s5 + $0x38] sm:$0xff] }
 0x303   :  { %v2840_v33 = vpop.permute.xlu1 %2839 }
 0x304   :  { %v2917_v36 = vsel %vm2916_vm15, %v2912_v24, %v2840_v33 }
 0x305   :  { %4034 = vmatprep.mubr.msk.f32.mxu1 %vm2940_vm5, %v2917_v36 }
 0x307   :  { %v2772_v14 = vpop.permute.xlu1 %2771 }
 0x308   :  { %v2904_v32 = vsel %vm2901_vm11, %v2899_v61, %v2772_v14  ;;  %v3159_v61 = vld [vmem:[%s5991_s5 + $0x28] sm:$0xff]  ;;  %v3156_v14 = vld [vmem:[%s5991_s5 + $0x10] sm:$0xff] }
 0x313   :  { %v2510_v16 = vpop.permute.xlu0 %2509 }
 0x314   :  { %v2854_v15 = vsel %vm1914_vm4, %v2486_v40, %v2510_v16  ;;  %vm3149_vm4 = vcmask 130048  }
 0x317   :  { %v2534_v51 = vpop.permute.xlu0 %2533 }
 0x318   :  { %v2858_v43 = vsel %vm1064_vm0, %v2854_v15, %v2534_v51  ;;  %vm3054_vm0 = vcmask 125952   ;;  %v3155_v15 = vld [vmem:[%s5991_s5 + $0x8] sm:$0xff] }
 0x31b   :  { %v2558_v58 = vpop.permute.xlu0 %2557 }
 0x31c   :  { %v2863_v13 = vsel %vm2859_vm6, %v2858_v43, %v2558_v58  ;;  %vm3151_vm6 = vcmask 261120  }
 0x32b   :  { %v2774_v0 = vpop.permute.xlu1 %2773 }
 0x32c   :  { %v2582_v57 = vpop.permute.xlu0 %2581 }
 0x32d   :  { %v2867_v18 = vsel %vm1129_vm1, %v2863_v13, %v2582_v57  ;;  %vm3125_vm1 = vcmask 1041409  }
 0x32f   :  { %v2798_v9 = vpop.permute.xlu1 %2797 }
 0x330   :  { %v2606_v37 = vpop.permute.xlu0 %2605 }
 0x331   :  { %v2872_v46 = vsel %vm2868_vm7, %v2867_v18, %v2606_v37  ;;  %vm3169_vm7 = vcmask 523264  }
 0x333   :  { %v2822_v23 = vpop.permute.xlu1 %2821 }
 0x334   :  { %v2630_v25 = vpop.permute.xlu0 %2629 }
 0x335   :  { %v2876_v41 = vsel %vm1194_vm2, %v2872_v46, %v2630_v25  ;;  %vm4188_vm2 = vmmov 0  }
 0x337   :  { %v2846_v35 = vpop.permute.xlu1 %2845 }
 0x338   :  { %v2654_v52 = vpop.permute.xlu0 %2653 }
 0x339   :  { %v2881_v44 = vsel %vm2877_vm8, %v2876_v41, %v2654_v52 }
 0x33c   :  { %v2770_v53 = vpop.permute.xlu0 %2769 }
 0x33d   :  { %v2903_v29 = vsel %vm2901_vm11, %v2898_v21, %v2770_v53 }
 0x343   :  { %v2678_v54 = vpop.permute.xlu0 %2677 }
 0x344   :  { %v2885_v4 = vsel %vm1272_vm3, %v2881_v44, %v2678_v54 }
 0x347   :  { %v2702_v62 = vpop.permute.xlu0 %2701 }
 0x348   :  { %v2890_v47 = vsel %vm2886_vm9, %v2885_v4, %v2702_v62 }
 0x34b   :  { %v2794_v3 = vpop.permute.xlu0 %2793 }
 0x34c   :  { %v2908_v60 = vsel %vm2906_vm13, %v2903_v29, %v2794_v3  ;;  %v3157_v3 = vld [vmem:[%s5991_s5 + $0x18] sm:$0xff] }
 0x34f   :  { %v2726_v28 = vpop.permute.xlu0 %2725 }
 0x350   :  { %v2895_v10 = vsel %vm2891_vm10, %v2890_v47, %v2726_v28 }
 0x353   :  { %v2818_v63 = vpop.permute.xlu0 %2817 }
 0x354   :  { %v2913_v5 = vsel %vm2911_vm14, %v2908_v60, %v2818_v63 }
 0x357   :  { %v2750_v22 = vpop.permute.xlu0 %2749 }
 0x358   :  { %v2900_v19 = vsel %vm2896_vm12, %v2895_v10, %v2750_v22 }
 0x359   :  { %v2905_v39 = vsel %vm2901_vm11, %v2900_v19, %v2774_v0 }
 0x35a   :  { %v2910_v20 = vsel %vm2906_vm13, %v2905_v39, %v2798_v9 }
 0x35b   :  { %v2842_v8 = vpop.permute.xlu0 %2841  ;;  %v2915_v26 = vsel %vm2911_vm14, %v2910_v20, %v2822_v23 }
 0x35c   :  { %v2918_v11 = vsel %vm2916_vm15, %v2913_v5, %v2842_v8  ;;  %v2920_v12 = vsel %vm2916_vm15, %v2915_v26, %v2846_v35  ;;  %v3154_v26 = vld [vmem:[%s5991_s5] sm:$0xff]  ;;  %s4190_s5 = smov 16  }
 0x35d   :  { %4035 = vmatmul.mubr.msk.f32.vlgmr.msra.gmra.mxu1 %vm2940_vm5, %v2918_v11 }
 0x35e   :  { %4041 = vmatpush3.msra.mxu1 %v3161_v42 }
 0x35f   :  { %v2796_v38 = vpop.permute.xlu0 %2795  ;;  %4042 = vmatprep.subr.mxu1 %v4175_v50 }
 0x360   :  { %v2909_v2 = vsel %vm2906_vm13, %v2904_v32, %v2796_v38  ;;  %4043 = vmatpush3.msra.mxu1 %v3160_v27 }
 0x361   :  { %4044 = vmatprep.subr.mxu1 %v4175_v50 }
 0x362   :  { %4045 = vmatpush3.msra.mxu1 %v3159_v61 }
 0x363   :  { %v2820_v45 = vpop.permute.xlu0 %2819  ;;  %4046 = vmatprep.subr.mxu1 %v4175_v50 }
 0x364   :  { %v2914_v30 = vsel %vm2911_vm14, %v2909_v2, %v2820_v45  ;;  %4047 = vmatpush3.msra.mxu1 %v3158_v7 }
 0x365   :  { %4048 = vmatprep.subr.mxu1 %v4175_v50 }
 0x366   :  { %4049 = vmatpush3.msra.mxu1 %v3157_v3 }
 0x367   :  { %v2844_v34 = vpop.permute.xlu0 %2843  ;;  %4050 = vmatprep.subr.mxu1 %v4175_v50 }
 0x368   :  { %v2919_v48 = vsel %vm2916_vm15, %v2914_v30, %v2844_v34  ;;  %4051 = vmatpush3.msra.mxu1 %v3156_v14 }
 0x369   :  { %4037 = vmatprep.mubr.msk.f32.mxu1 %vm2940_vm5, %v2919_v48  ;;  %4052 = vmatprep.subr.mxu1 %v4175_v50 }
 0x36a   :  { %4038 = vmatmul.mubr.msk.f32.gmra.mxu1 %vm2940_vm5, %v2920_v12 }
 0x36b   :  { %4053 = vmatpush3.msra.mxu1 %v3155_v15  ;;  %4056 = vmatprep.mubr.msk.f32.mxu1 %vm4188_vm2, %v4175_v50 }
 0x36c   :  { %4054 = vmatprep.subr.mxu1 %v4175_v50 }
 0x36d   :  { %4055 = vmatpush3.msra.mxu1 %v3154_v26  ;;  %v3349_v26 = vld [vmem:[%s5995_s9 + $0x58] sm:$0xff] }
 0x36e   :  { %4059 = vmatprep.subr.mxu1 %v4175_v50 }
 0x41d   :  { %v4036_v24 = vpop.f32.mrf.mxu1 }
 0x41e   :  { %v3025_v33 = vadd.f32 %v4036_v24, %v3764_v59 }
 0x41f   :  { %v3019_v36 = vpop.f32.mrf.mxu1 }
 0x420   :  { %v3039_v56 = vmax.f32 %v3025_v33, 0.0  ;;  %v3020_v17 = vadd.f32 %v3764_v59, %v3019_v36 }
 0x422   :  { %v3047_v49 = vcombine.high %v3039_v56, %v3039_v56  ;;  %3057 = vst.msk [vmem:[#allocation4 + $0x8] sm:$0xf] %vm3054_vm0, %v3039_v56  ;;  %v3038_v16 = vmax.f32 %v3020_v17, 0.0 }
 0x424   :  { %3058 = vst.msk [vmem:[#allocation4 + $0xc] sm:$0xf] %vm3054_vm0, %v3047_v49  ;;  %v3046_v51 = vcombine.high %v3038_v16, %v3038_v16  ;;  %3055 = vst.msk [vmem:[#allocation4] sm:$0xf] %vm3054_vm0, %v3038_v16 }
 0x426   :  { %3056 = vst.msk [vmem:[#allocation4 + $0x4] sm:$0xf] %vm3054_vm0, %v3046_v51 }
 0x429   :  { %v3093_v28 = vld [vmem:[#allocation4 + $0x8] sm:$0x1]  ;;  %v3095_v1 = vld [vmem:[#allocation4 + $0x9] sm:$0x1]  ;;  %v3108_v12 = vld [vmem:[#allocation4 + $0xa] sm:$0x1] }
 0x42a   :  { %v4039_v58 = vpop.f32.mrf.mxu1  ;;  %v3097_v8 = vmax.f32 %v3093_v28, %v3095_v1  ;;  %v3110_v42 = vld [vmem:[#allocation4 + $0xb] sm:$0x1] }
 0x42b   :  { %v3035_v57 = vadd.f32 %v4039_v58, %v3764_v59  ;;  %v3100_v55 = vld [vmem:[#allocation4 + $0xc] sm:$0x1]  ;;  %v3102_v40 = vld [vmem:[#allocation4 + $0xd] sm:$0x1]  ;;  %v3078_v6 = vld [vmem:[#allocation4 + $0x2] sm:$0x1]  ;;  %v3112_v33 = vmax.f32 %v3108_v12, %v3110_v42 }
 0x42c   :  { %v3029_v37 = vpop.f32.mrf.mxu1  ;;  %v3080_v0 = vld [vmem:[#allocation4 + $0x3] sm:$0x1]  ;;  %v3104_v29 = vmax.f32 %v3100_v55, %v3102_v40  ;;  %v3114_v32 = vld [vmem:[#allocation4 + $0xe] sm:$0x1]  ;;  %v3116_v2 = vld [vmem:[#allocation4 + $0xf] sm:$0x1] }
 0x42d   :  { %v3041_v25 = vmax.f32 %v3035_v57, 0.0  ;;  %v3030_v52 = vadd.f32 %v3764_v59, %v3029_v37  ;;  %v3084_v13 = vld [vmem:[#allocation4 + $0x6] sm:$0x1]  ;;  %v3086_v18 = vld [vmem:[#allocation4 + $0x7] sm:$0x1]  ;;  %v3082_v45 = vmax.f32 %v3078_v6, %v3080_v0  ;;  %v3118_v59 = vmax.f32 %v3114_v32, %v3116_v2  ;;  %v3259_v6 = vld [vmem:[%s5993_s7 + $0x78] sm:$0xff] }
 0x42e   :  { %v3088_v11 = vmax.f32 %v3084_v13, %v3086_v18  ;;  %v3106_v30 = vmax.f32 %v3097_v8, %v3104_v29  ;;  %v3258_v18 = vld [vmem:[%s5993_s7 + $0x70] sm:$0xff]  ;;  %v3251_v29 = vld [vmem:[%s5993_s7 + $0x38] sm:$0xff]  ;;  %v3351_v32 = vld [vmem:[%s5995_s9 + $0x68] sm:$0xff] }
 0x42f   :  { %v3049_v53 = vcombine.high %v3041_v25, %v3041_v25  ;;  %3061 = vst.msk [vmem:[#allocation4 + $0x18] sm:$0xf] %vm3054_vm0, %v3041_v25  ;;  %v3040_v54 = vmax.f32 %v3030_v52, 0.0  ;;  %v3120_v56 = vmax.f32 %v3112_v33, %v3118_v59  ;;  %v3070_v25 = vld [vmem:[#allocation4 + $0x4] sm:$0x1]  ;;  %v3246_v8 = vld [vmem:[%s5993_s7 + $0x10] sm:$0xff] }
 0x430   :  { %v3090_v61 = vmax.f32 %v3082_v45, %v3088_v11  ;;  %v3072_v52 = vld [vmem:[#allocation4 + $0x5] sm:$0x1]  ;;  %v3769_v11 = vld [vmem:[%s5992_s6] ss:$0 sm:$0xff]  ;;  %v3352_v45 = vld [vmem:[%s5995_s9 + $0x70] sm:$0xff] }
 0x431   :  { %3062 = vst.msk [vmem:[#allocation4 + $0x1c] sm:$0xf] %vm3054_vm0, %v3049_v53  ;;  %v3048_v62 = vcombine.high %v3040_v54, %v3040_v54  ;;  %3059 = vst.msk [vmem:[#allocation4 + $0x10] sm:$0xf] %vm3054_vm0, %v3040_v54  ;;  %v3063_v54 = vld [vmem:[#allocation4] sm:$0x1]  ;;  %v3074_v3 = vmax.f32 %v3070_v25, %v3072_v52 }
 0x432   :  { %v3350_v2 = vld [vmem:[%s5995_s9 + $0x60] sm:$0xff]  ;;  %v3344_v12 = vld [vmem:[%s5995_s9 + $0x30] sm:$0xff]  ;;  %v3343_v42 = vld [vmem:[%s5995_s9 + $0x28] sm:$0xff] }
 0x433   :  { %3060 = vst.msk [vmem:[#allocation4 + $0x14] sm:$0xf] %vm3054_vm0, %v3048_v62  ;;  %v3065_v62 = vld [vmem:[#allocation4 + $0x1] sm:$0x1]  ;;  %v3339_v59 = vld [vmem:[%s5995_s9 + $0x8] sm:$0xff] }
 0x434   :  { %v3067_v55 = vmax.f32 %v3063_v54, %v3065_v62  ;;  %v3771_v33 = vld [vmem:[%s5994_s8] ss:$0 sm:$0xff] }
 0x436   :  { %v3094_v63 = vld [vmem:[#allocation4 + $0x18] sm:$0x1]  ;;  %v3096_v43 = vld [vmem:[#allocation4 + $0x19] sm:$0x1]  ;;  %v3109_v31 = vld [vmem:[#allocation4 + $0x1a] sm:$0x1]  ;;  %v3076_v1 = vmax.f32 %v3067_v55, %v3074_v3 }
 0x437   :  { %v3111_v46 = vld [vmem:[#allocation4 + $0x1b] sm:$0x1]  ;;  %v3098_v44 = vmax.f32 %v3094_v63, %v3096_v43 }
 0x438   :  { %v3101_v22 = vld [vmem:[#allocation4 + $0x1c] sm:$0x1]  ;;  %v3103_v21 = vld [vmem:[#allocation4 + $0x1d] sm:$0x1]  ;;  %v3079_v41 = vld [vmem:[#allocation4 + $0x12] sm:$0x1]  ;;  %v3113_v20 = vmax.f32 %v3109_v31, %v3111_v46 }
 0x439   :  { %v3105_v4 = vmax.f32 %v3101_v22, %v3103_v21  ;;  %v3081_v60 = vld [vmem:[#allocation4 + $0x13] sm:$0x1]  ;;  %v3115_v47 = vld [vmem:[#allocation4 + $0x1e] sm:$0x1]  ;;  %v3117_v5 = vld [vmem:[#allocation4 + $0x1f] sm:$0x1] }
 0x43a   :  { %v3085_v9 = vld [vmem:[#allocation4 + $0x16] sm:$0x1]  ;;  %v3087_v10 = vld [vmem:[#allocation4 + $0x17] sm:$0x1]  ;;  %v3119_v19 = vmax.f32 %v3115_v47, %v3117_v5  ;;  %v3083_v39 = vmax.f32 %v3079_v41, %v3081_v60  ;;  %v3071_v49 = vld [vmem:[#allocation4 + $0x14] sm:$0x1] }
 0x43b   :  { %v3107_v38 = vmax.f32 %v3098_v44, %v3105_v4  ;;  %v3089_v23 = vmax.f32 %v3085_v9, %v3087_v10  ;;  %v3073_v16 = vld [vmem:[#allocation4 + $0x15] sm:$0x1]  ;;  %v3064_v51 = vld [vmem:[#allocation4 + $0x10] sm:$0x1]  ;;  %v3066_v58 = vld [vmem:[#allocation4 + $0x11] sm:$0x1] }
 0x43c   :  { %v3121_v48 = vmax.f32 %v3113_v20, %v3119_v19  ;;  %v3075_v57 = vmax.f32 %v3071_v49, %v3073_v16  ;;  %v3068_v37 = vmax.f32 %v3064_v51, %v3066_v58  ;;  %v3257_v31 = vld [vmem:[%s5993_s7 + $0x68] sm:$0xff]  ;;  %v3256_v46 = vld [vmem:[%s5993_s7 + $0x60] sm:$0xff]  ;;  %v3255_v22 = vld [vmem:[%s5993_s7 + $0x58] sm:$0xff] }
 0x43d   :  { %v3137_v34 = vrot.slane %v3107_v38, 7  ;;  %v3091_v35 = vmax.f32 %v3083_v39, %v3089_v23  ;;  %v3254_v21 = vld [vmem:[%s5993_s7 + $0x50] sm:$0xff]  ;;  %v3253_v41 = vld [vmem:[%s5993_s7 + $0x48] sm:$0xff]  ;;  %v3252_v44 = vld [vmem:[%s5993_s7 + $0x40] sm:$0xff] }
 0x43e   :  { %v3144_v36 = vrot.slane %v3121_v48, 7  ;;  %v3077_v53 = vmax.f32 %v3068_v37, %v3075_v57  ;;  %v3250_v4 = vld [vmem:[%s5993_s7 + $0x30] sm:$0xff]  ;;  %v3249_v60 = vld [vmem:[%s5993_s7 + $0x28] sm:$0xff]  ;;  %v3248_v47 = vld [vmem:[%s5993_s7 + $0x20] sm:$0xff] }
 0x43f   :  { %v3138_v27 = vsel %vm3125_vm1, %v3137_v34, %v3106_v30  ;;  %v3130_v7 = vrot.slane %v3091_v35, 7  ;;  %v3247_v5 = vld [vmem:[%s5993_s7 + $0x18] sm:$0xff]  ;;  %v3245_v9 = vld [vmem:[%s5993_s7 + $0x8] sm:$0xff]  ;;  %v3244_v10 = vld [vmem:[%s5993_s7] sm:$0xff] }
 0x440   :  { %3139 = vrot.lane.b32.xlu1 %v3138_v27, %s4189_s12  ;;  %v3145_v17 = vsel %vm3125_vm1, %v3144_v36, %v3120_v56  ;;  %v3124_v28 = vrot.slane %v3077_v53, 7  ;;  %v3353_v20 = vld [vmem:[%s5995_s9 + $0x78] sm:$0xff]  ;;  %v3348_v30 = vld [vmem:[%s5995_s9 + $0x50] sm:$0xff]  ;;  %v3347_v34 = vld [vmem:[%s5995_s9 + $0x48] sm:$0xff] }
 0x441   :  { %v3131_v24 = vsel %vm3125_vm1, %v3130_v7, %v3090_v61  ;;  %v3346_v35 = vld [vmem:[%s5995_s9 + $0x40] sm:$0xff]  ;;  %v3345_v48 = vld [vmem:[%s5995_s9 + $0x38] sm:$0xff]  ;;  %v3340_v7 = vld [vmem:[%s5995_s9 + $0x10] sm:$0xff] }
 0x442   :  { %3132 = vrot.lane.b32.xlu0 %v3131_v24, %s4190_s5  ;;  %v3126_v14 = vsel %vm3125_vm1, %v3124_v28, %v3076_v1  ;;  %v3342_v27 = vld [vmem:[%s5995_s9 + $0x20] sm:$0xff]  ;;  %v3341_v61 = vld [vmem:[%s5995_s9 + $0x18] sm:$0xff] }
 0x443   :  { %v3338_v24 = vld [vmem:[%s5995_s9] sm:$0xff]  ;;  %s4150_s9 = scalar_lea.vmem %s3440_s20, 32 }
 0x444   :  { %v3772_v16 = vld [vmem:[%s5996_s10] ss:$0 sm:$0xff]  ;;  %p4151_p0 = scmp.ne.s32.totalorder %s3440_s20, %s4150_s9  ;;  %p4156_p2 = scmp.lt.s32.totalorder %s4150_s9, %s4150_s9 }
 0x446   :  { %3146 = vrot.lane.b32.xlu0 %v3145_v17, %s4180_s2  ;;  %p4157_p3 = por %p4156_p2, %p4155_p1 }
 0x448   :  { %p4158_p4 = pnand %p4157_p3, %p4151_p0 }
 0x4b2   :  { %v3140_v63 = vpop.permute.xlu1 %3139 }
 0x4b4   :  { %v3133_v40 = vpop.permute.xlu0 %3132 }
 0x4b5   :  { %v3150_v15 = vsel %vm3149_vm4, %v3126_v14, %v3133_v40 }
 0x4b6   :  { %v3152_v13 = vsel %vm3151_vm6, %v3150_v15, %v3140_v63 }
 0x4b8   :  { %v3147_v43 = vpop.permute.xlu0 %3146 }
 0x4b9   :  { %v3153_v0 = vsel %vm1272_vm3, %v3152_v13, %v3147_v43  ;;  %vm3431_vm3 = vcmask 74752  }
 0x4ba   :  { %4057 = vmatmul.mubr.msk.f32.vlgmr.msra.gmra.mxu1 %vm3169_vm7, %v3153_v0 }
 0x4bb   :  { %4060 = vmatpush3.msra.mxu1 %v3259_v6  ;;  %4091 = vmatprep.mubr.msk.f32.mxu1 %vm4188_vm2, %v4175_v50 }
 0x4bc   :  { %4061 = vmatprep.subr.mxu1 %v4175_v50 }
 0x4bd   :  { %4062 = vmatpush3.msra.mxu1 %v3258_v18 }
 0x4be   :  { %4063 = vmatprep.subr.mxu1 %v4175_v50 }
 0x4bf   :  { %4064 = vmatpush3.msra.mxu1 %v3257_v31 }
 0x4c0   :  { %4065 = vmatprep.subr.mxu1 %v4175_v50 }
 0x4c1   :  { %4066 = vmatpush3.msra.mxu1 %v3256_v46 }
 0x4c2   :  { %4067 = vmatprep.subr.mxu1 %v4175_v50 }
 0x4c3   :  { %4068 = vmatpush3.msra.mxu1 %v3255_v22 }
 0x4c4   :  { %4069 = vmatprep.subr.mxu1 %v4175_v50 }
 0x4c5   :  { %4070 = vmatpush3.msra.mxu1 %v3254_v21 }
 0x4c6   :  { %4071 = vmatprep.subr.mxu1 %v4175_v50 }
 0x4c7   :  { %4072 = vmatpush3.msra.mxu1 %v3253_v41 }
 0x4c8   :  { %4073 = vmatprep.subr.mxu1 %v4175_v50 }
 0x4c9   :  { %4074 = vmatpush3.msra.mxu1 %v3252_v44 }
 0x4ca   :  { %4075 = vmatprep.subr.mxu1 %v4175_v50 }
 0x4cb   :  { %4076 = vmatpush3.msra.mxu1 %v3251_v29 }
 0x4cc   :  { %4077 = vmatprep.subr.mxu1 %v4175_v50 }
 0x4cd   :  { %4078 = vmatpush3.msra.mxu1 %v3250_v4 }
 0x4ce   :  { %4079 = vmatprep.subr.mxu1 %v4175_v50 }
 0x4cf   :  { %4080 = vmatpush3.msra.mxu1 %v3249_v60 }
 0x4d0   :  { %4081 = vmatprep.subr.mxu1 %v4175_v50 }
 0x4d1   :  { %4082 = vmatpush3.msra.mxu1 %v3248_v47 }
 0x4d2   :  { %4083 = vmatprep.subr.mxu1 %v4175_v50 }
 0x4d3   :  { %4084 = vmatpush3.msra.mxu1 %v3247_v5 }
 0x4d4   :  { %4085 = vmatprep.subr.mxu1 %v4175_v50 }
 0x4d5   :  { %4086 = vmatpush3.msra.mxu1 %v3246_v8 }
 0x4d6   :  { %4087 = vmatprep.subr.mxu1 %v4175_v50 }
 0x4d7   :  { %4088 = vmatpush3.msra.mxu1 %v3245_v9 }
 0x4d8   :  { %4089 = vmatprep.subr.mxu1 %v4175_v50 }
 0x4d9   :  { %4090 = vmatpush3.msra.mxu1 %v3244_v10 }
 0x4da   :  { %4094 = vmatprep.subr.mxu1 %v4175_v50 }
 0x57a   :  { %v3239_v19 = vpop.f32.mrf.mxu1 }
 0x57b   :  { %v3240_v38 = vadd.f32 %v3769_v11, %v3239_v19 }
 0x57c   :  { %v4058_v39 = vpop.f32.mrf.mxu1 }
 0x57d   :  { %v3243_v23 = vmax.f32 %v3240_v38, 0.0 }
 0x57f   :  { %4092 = vmatmul.mubr.f32.vlgmr.msra.gmra.mxu1 %v3243_v23 }
 0x580   :  { %4095 = vmatpush3.msra.mxu1 %v3353_v20  ;;  %4126 = vmatprep.mubr.msk.f32.mxu1 %vm4188_vm2, %v4175_v50 }
 0x581   :  { %4096 = vmatprep.subr.mxu1 %v4175_v50 }
 0x582   :  { %4097 = vmatpush3.msra.mxu1 %v3352_v45 }
 0x583   :  { %4098 = vmatprep.subr.mxu1 %v4175_v50 }
 0x584   :  { %4099 = vmatpush3.msra.mxu1 %v3351_v32 }
 0x585   :  { %4100 = vmatprep.subr.mxu1 %v4175_v50 }
 0x586   :  { %4101 = vmatpush3.msra.mxu1 %v3350_v2 }
 0x587   :  { %4102 = vmatprep.subr.mxu1 %v4175_v50 }
 0x588   :  { %4103 = vmatpush3.msra.mxu1 %v3349_v26 }
 0x589   :  { %4104 = vmatprep.subr.mxu1 %v4175_v50 }
 0x58a   :  { %4105 = vmatpush3.msra.mxu1 %v3348_v30 }
 0x58b   :  { %4106 = vmatprep.subr.mxu1 %v4175_v50 }
 0x58c   :  { %4107 = vmatpush3.msra.mxu1 %v3347_v34 }
 0x58d   :  { %4108 = vmatprep.subr.mxu1 %v4175_v50 }
 0x58e   :  { %4109 = vmatpush3.msra.mxu1 %v3346_v35 }
 0x58f   :  { %4110 = vmatprep.subr.mxu1 %v4175_v50 }
 0x590   :  { %4111 = vmatpush3.msra.mxu1 %v3345_v48 }
 0x591   :  { %4112 = vmatprep.subr.mxu1 %v4175_v50 }
 0x592   :  { %4113 = vmatpush3.msra.mxu1 %v3344_v12 }
 0x593   :  { %4114 = vmatprep.subr.mxu1 %v4175_v50 }
 0x594   :  { %4115 = vmatpush3.msra.mxu1 %v3343_v42 }
 0x595   :  { %4116 = vmatprep.subr.mxu1 %v4175_v50 }
 0x596   :  { %4117 = vmatpush3.msra.mxu1 %v3342_v27 }
 0x597   :  { %4118 = vmatprep.subr.mxu1 %v4175_v50 }
 0x598   :  { %4119 = vmatpush3.msra.mxu1 %v3341_v61 }
 0x599   :  { %4120 = vmatprep.subr.mxu1 %v4175_v50 }
 0x59a   :  { %4121 = vmatpush3.msra.mxu1 %v3340_v7 }
 0x59b   :  { %4122 = vmatprep.subr.mxu1 %v4175_v50 }
 0x59c   :  { %4123 = vmatpush3.msra.mxu1 %v3339_v59 }
 0x59d   :  { %4124 = vmatprep.subr.mxu1 %v4175_v50 }
 0x59e   :  { %4125 = vmatpush3.msra.mxu1 %v3338_v24 }
 0x63f   :  { %v3333_v36 = vpop.f32.mrf.mxu1 }
 0x640   :  { %v3334_v56 = vadd.f32 %v3771_v33, %v3333_v36 }
 0x641   :  { %v4093_v17 = vpop.f32.mrf.mxu1 }
 0x642   :  { %v3337_v49 = vmax.f32 %v3334_v56, 0.0 }
 0x644   :  { %4127 = vmatmul.mubr.f32.vlgmr.msra.gmra.mxu1 %v3337_v49 }
 0x704   :  { %v3427_v51 = vpop.f32.mrf.mxu1 }
 0x705   :  { %v3428_v58 = vadd.f32 %v3772_v16, %v3427_v51 }
 0x706   :  { %v4128_v50 = vpop.f32.mrf.mxu1 }
 0x707   :  { %3432 = vst.msk [vmem:[#allocation5] sm:$0x3] %vm3431_vm3, %v3428_v58 }
 0x708   :  { %4161 = shalt.err (!%p4158_p4)
}
 0x709   :  { %3442 = dma.vmem_to_hbm [thread:$0]  %s3440_s20, 32, %s5997_s11, [#allocation6]  }
 0x70a   :  { %4170 = dma.done.wait [#allocation6], 32  }
 0x70b   :  { %4171 = vsyncadd [#allocation6], 4294967264 }
 0x70c   :  { %3446 = vsyncpa [#allocation6], 1 }

</bundles_post_ra>
